<compile_context>
chip_gen: v5e
topology: v5e:2x2
jax: 0.10.0
libtpu: 0.0.40
codegen_flags: <defaults>
</compile_context>

<pallas_src>
import functools

import jax
import jax.numpy as jnp
from jax import lax
from jax.experimental import pallas as pl
from jax.experimental.pallas import tpu as pltpu


def _round_up(x, m):
    return ((x + m - 1) // m) * m


def _pe_rows_kernel(sin_x_ref, cos_x_ref, gy_ref, out_ref, *,
                    f, h, w, wg, r_group, hg_blk):
    """One grouped-row block of the CHW positional encoding.

    sin_x_ref/cos_x_ref: (F, Wg)  lane-periodic x-angle tables (period w)
    gy_ref:              (F, 1)   2*pi * G[1, :] (y frequencies)
    out_ref:             (2F, hg_blk, Wg) grouped CHW tile
                         (grouped row ig, lane rr*w + j) <-> image (ig*R + rr, j)
    """
    r = pl.program_id(0)
    row0 = r * hg_blk                                   # first grouped row of this tile

    # Hoisted lane-periodic x tables -> (F, 1, Wg).
    sx = sin_x_ref[...][:, None, :]
    cx = cos_x_ref[...][:, None, :]

    # Per-segment y tables, computed in-kernel (tiny: F x hg_blk sin/cos per
    # segment, non-redundant across grid steps so nothing is recomputed).
    ib = lax.broadcasted_iota(jnp.int32, (1, hg_blk), 1)

    def y_tables(rr):
        i_img = (row0 + ib) * r_group + rr              # image row index (int32)
        yn = (2.0 / h) * (i_img.astype(jnp.float32) + 0.5) - 1.0   # (1, hg_blk)
        ang = gy_ref[...] * yn                          # (F, 1)*(1, hg_blk) -> (F, hg_blk)
        return jnp.sin(ang)[:, :, None], jnp.cos(ang)[:, :, None]  # (F, hg_blk, 1)

    if r_group == 1:
        sy, cy = y_tables(0)
    else:  # r_group == 2: lanes [0, w) are even image rows, [w, 2w) are odd rows.
        sy0, cy0 = y_tables(0)
        sy1, cy1 = y_tables(1)
        lane = lax.broadcasted_iota(jnp.int32, (1, 1, wg), 2)
        first_seg = lane < w
        sy = jnp.where(first_seg, sy0, sy1)             # (F, hg_blk, Wg)
        cy = jnp.where(first_seg, cy0, cy1)

    # Angle-addition combine:
    #   sin(A + B) = sinA*cosB + cosA*sinB
    #   cos(A + B) = cosA*cosB - sinA*sinB
    out_ref[0:f, :, :] = (sx * cy + cx * sy).astype(out_ref.dtype)       # sin half
    out_ref[f:2 * f, :, :] = (cx * cy - sx * sy).astype(out_ref.dtype)   # cos half


def _choose_group_factor(h, w):
    """Rows-per-lane-group R: pack R image rows into one lane row when it makes
    the lane dim a multiple of 128 (SAM's default w=64 -> R=2)."""
    if w % 128 == 0:
        return 1
    if (2 * w) % 128 == 0 and h % 2 == 0:
        return 2
    return 1


def _choose_row_block(hg, wg, two_f, itemsize, tile_budget_bytes, vmem_limit_bytes):
    """Pick hg_blk (grouped rows per grid step).

    Legality: hg_blk must be a multiple of 8 or equal hg (sublane tiling).
    Accounting (per review): lane padding to 128, x2 output double-buffering,
    plus ~2 output-tile-equivalents of f32 elementwise temporaries.  When the
    budget would allow a single block, split in two so the 'parallel' grid axis
    shards across both TensorCores on v7x.
    """
    wg_pad = max(_round_up(wg, 128), 128)
    out_row_bytes = two_f * wg_pad * itemsize                     # one copy, one grouped row
    work_row_bytes = two_f * wg_pad * (2 * itemsize + 2 * 4)      # 2x out + ~2x f32 temps
    rows_budget = max(1, tile_budget_bytes // out_row_bytes)
    rows_vmem = max(1, int(0.7 * vmem_limit_bytes) // work_row_bytes)
    rows = min(rows_budget, rows_vmem)

    if hg <= 8:
        return hg                                   # single full-extent block (always legal)
    if rows >= hg:
        return max(8, _round_up(pl.cdiv(hg, 2), 8))  # force >=2 grid steps (megacore)
    return max(8, min(hg, (rows // 8) * 8))          # 8 is the minimum legal granularity


def position_embedding_random_forward(gaussian_matrix, size, *,
                                      out_dtype=jnp.float32,
                                      tile_budget_bytes=8 * 1024 * 1024,
                                      vmem_limit_bytes=48 * 1024 * 1024):
    """JAX wrapper mirroring PositionEmbeddingRandom.forward(size) -> (2F, h, w)."""
    h, w = int(size[0]), int(size[1])
    f = int(gaussian_matrix.shape[1])
    two_f = 2 * f
    itemsize = jnp.dtype(out_dtype).itemsize

    g = gaussian_matrix.astype(jnp.float32)
    gx = (2.0 * jnp.pi) * g[0]                       # (F,) x frequencies (2*pi folded in)
    gy = (2.0 * jnp.pi) * g[1]                       # (F,) y frequencies

    r_group = _choose_group_factor(h, w)
    wg = r_group * w                                 # grouped lane width
    hg = h // r_group                                # grouped row count

    # Hoisted, lane-periodic x-angle tables (identical for every grid step).
    xn = (2.0 / w) * (jnp.arange(w, dtype=jnp.float32) + 0.5) - 1.0     # (w,) in [-1, 1]
    xn_t = jnp.tile(xn, r_group)                     # (Wg,), period w
    x_ang = gx[:, None] * xn_t[None, :]              # (F, Wg)
    sin_x = jnp.sin(x_ang)
    cos_x = jnp.cos(x_ang)
    gy_col = gy.reshape(f, 1)                        # (F, 1) for the in-kernel y table

    hg_blk = _choose_row_block(hg, wg, two_f, itemsize,
                               tile_budget_bytes, vmem_limit_bytes)
    grid = (pl.cdiv(hg, hg_blk),)

    kernel = functools.partial(_pe_rows_kernel, f=f, h=h, w=w, wg=wg,
                               r_group=r_group, hg_blk=hg_blk)
    out = pl.pallas_call(
        kernel,
        out_shape=jax.ShapeDtypeStruct((two_f, hg, wg), out_dtype),
        grid=grid,
        in_specs=[
            # Constant index_map -> tables stay VMEM-resident across all steps.
            pl.BlockSpec((f, wg), lambda r: (0, 0)),
            pl.BlockSpec((f, wg), lambda r: (0, 0)),
            pl.BlockSpec((f, 1), lambda r: (0, 0)),
        ],
        out_specs=pl.BlockSpec((two_f, hg_blk, wg), lambda r: (0, r, 0)),
        compiler_params=pltpu.CompilerParams(
            # Row blocks are fully independent -> shard across both TensorCores
            # on v7x; harmless on v5e/v6e.
            dimension_semantics=("parallel",),
            vmem_limit_bytes=int(vmem_limit_bytes),   # <= 48 MiB: safe on v7x (64 MiB/TC)
        ),
    )(sin_x, cos_x, gy_col)

    # (2F, h/R, R*w) -> (2F, h, w): same row-major bytes, free reshape.
    return out.reshape(two_f, h, w)


def _reference_forward(gaussian_matrix, size):
    """Pure-JAX reference matching the PyTorch module line-for-line."""
    h, w = size
    grid = jnp.ones((h, w), jnp.float32)
    y_embed = (jnp.cumsum(grid, axis=0) - 0.5) / h
    x_embed = (jnp.cumsum(grid, axis=1) - 0.5) / w
    coords = jnp.stack([x_embed, y_embed], axis=-1)
    coords = 2.0 * coords - 1.0
    coords = coords @ gaussian_matrix
    coords = 2.0 * jnp.pi * coords
    pe = jnp.concatenate([jnp.sin(coords), jnp.cos(coords)], axis=-1)
    return jnp.transpose(pe, (2, 0, 1))


if __name__ == "__main__":
    num_pos_feats = 64
    scale = 1.0

    key = jax.random.PRNGKey(0)
    gaussian_matrix = scale * jax.random.normal(
        key, (2, num_pos_feats), dtype=jnp.float32
    )

    # --- test 1: small grid, padded-lane fallback path (w=16) ----------------
    h, w = 16, 16
    pe = jax.block_until_ready(
        position_embedding_random_forward(gaussian_matrix, (h, w))
    )
    assert pe.shape == (2 * num_pos_feats, h, w), pe.shape
    assert pe.dtype == jnp.float32
    ref = jax.block_until_ready(_reference_forward(gaussian_matrix, (h, w)))
    assert jnp.allclose(pe, ref, atol=1e-4, rtol=1e-4), "mismatch vs reference (16x16)"

    # --- test 2: SAM default size -> lane-dense grouped path (R=2, 2 steps) --
    h2, w2 = 64, 64
    pe2 = jax.block_until_ready(
        position_embedding_random_forward(gaussian_matrix, (h2, w2))
    )
    assert pe2.shape == (2 * num_pos_feats, h2, w2), pe2.shape
    ref2 = jax.block_until_ready(_reference_forward(gaussian_matrix, (h2, w2)))
    assert jnp.allclose(pe2, ref2, atol=1e-4, rtol=1e-4), "mismatch vs reference (64x64)"

    # --- test 3: non-divisible grid, fallback layout, partial last block -----
    h3, w3 = 100, 48
    pe3 = jax.block_until_ready(
        position_embedding_random_forward(gaussian_matrix, (h3, w3))
    )
    assert pe3.shape == (2 * num_pos_feats, h3, w3), pe3.shape
    ref3 = jax.block_until_ready(_reference_forward(gaussian_matrix, (h3, w3)))
    assert jnp.allclose(pe3, ref3, atol=1e-4, rtol=1e-4), "mismatch vs reference (100x48)"

    # --- test 4: optional bf16 output (halves HBM write traffic) -------------
    pe4 = jax.block_until_ready(
        position_embedding_random_forward(gaussian_matrix, (h2, w2),
                                          out_dtype=jnp.bfloat16)
    )
    assert pe4.shape == (2 * num_pos_feats, h2, w2), pe4.shape
    assert pe4.dtype == jnp.bfloat16
    assert jnp.allclose(pe4.astype(jnp.float32), ref2, atol=2e-2), "bf16 mismatch (64x64)"

    print("KERNEL_OK")
</pallas_src>

<mosaic_0001>
module attributes {stable_mosaic.version = 11 : i64} {
  func.func @_pe_rows_kernel(%arg0: i32, %arg1: memref<64x16xf32, #tpu.memory_space<vmem>>, %arg2: memref<64x16xf32, #tpu.memory_space<vmem>>, %arg3: memref<64x1xf32, #tpu.memory_space<vmem>>, %arg4: memref<128x8x16xf32, #tpu.memory_space<vmem>>) attributes {dimension_semantics = [#tpu.dimension_semantics<parallel>], iteration_bounds = array<i64: 2>, scalar_prefetch = 0 : i64, scratch_operands = 0 : i64, tpu.core_type = #tpu.core_type<tc>, window_params = [{pipeline_mode = #tpu.pipeline_mode<synchronous>, transform_indices = @transform_0, window_bounds = array<i64: 64, 16>}, {pipeline_mode = #tpu.pipeline_mode<synchronous>, transform_indices = @transform_1, window_bounds = array<i64: 64, 16>}, {pipeline_mode = #tpu.pipeline_mode<synchronous>, transform_indices = @transform_2, window_bounds = array<i64: 64, 1>}, {transform_indices = @transform_3, window_bounds = array<i64: 128, 8, 16>}]} {
    %c8_i32 = arith.constant 8 : i32
    %0 = arith.muli %arg0, %c8_i32 : i32
    %c0 = arith.constant 0 : index
    %c0_0 = arith.constant 0 : index
    %1 = vector.load %arg1[%c0, %c0_0] : memref<64x16xf32, #tpu.memory_space<vmem>>, vector<64x16xf32>
    %2 = vector.shape_cast %1 : vector<64x16xf32> to vector<64x1x16xf32>
    %c0_1 = arith.constant 0 : index
    %c0_2 = arith.constant 0 : index
    %3 = vector.load %arg2[%c0_1, %c0_2] : memref<64x16xf32, #tpu.memory_space<vmem>>, vector<64x16xf32>
    %4 = vector.shape_cast %3 : vector<64x16xf32> to vector<64x1x16xf32>
    %5 = tpu.iota {dimensions = array<i32: 1>} : vector<1x8xi32>
    %6 = vector.broadcast %0 : i32 to vector<1x8xi32>
    %7 = arith.addi %6, %5 : vector<1x8xi32>
    %c1_i32 = arith.constant 1 : i32
    %8 = vector.broadcast %c1_i32 : i32 to vector<1x8xi32>
    %9 = arith.muli %7, %8 : vector<1x8xi32>
    %c0_i32 = arith.constant 0 : i32
    %10 = vector.broadcast %c0_i32 : i32 to vector<1x8xi32>
    %11 = arith.addi %9, %10 : vector<1x8xi32>
    %12 = arith.sitofp %11 : vector<1x8xi32> to vector<1x8xf32>
    %cst = arith.constant 5.000000e-01 : f32
    %13 = vector.broadcast %cst : f32 to vector<1x8xf32>
    %14 = arith.addf %12, %13 : vector<1x8xf32>
    %cst_3 = arith.constant 1.250000e-01 : f32
    %15 = vector.broadcast %cst_3 : f32 to vector<1x8xf32>
    %16 = arith.mulf %15, %14 : vector<1x8xf32>
    %cst_4 = arith.constant 1.000000e+00 : f32
    %17 = vector.broadcast %cst_4 : f32 to vector<1x8xf32>
    %18 = arith.subf %16, %17 : vector<1x8xf32>
    %c0_5 = arith.constant 0 : index
    %c0_6 = arith.constant 0 : index
    %19 = vector.load %arg3[%c0_5, %c0_6] : memref<64x1xf32, #tpu.memory_space<vmem>>, vector<64x1xf32>
    %20 = vector.broadcast %19 : vector<64x1xf32> to vector<64x8xf32>
    %21 = vector.broadcast %18 : vector<1x8xf32> to vector<64x8xf32>
    %22 = arith.mulf %20, %21 : vector<64x8xf32>
    %23 = math.sin %22 : vector<64x8xf32>
    %24 = vector.shape_cast %23 : vector<64x8xf32> to vector<64x8x1xf32>
    %25 = math.cos %22 : vector<64x8xf32>
    %26 = vector.shape_cast %25 : vector<64x8xf32> to vector<64x8x1xf32>
    %27 = vector.broadcast %2 : vector<64x1x16xf32> to vector<64x8x16xf32>
    %28 = vector.broadcast %26 : vector<64x8x1xf32> to vector<64x8x16xf32>
    %29 = arith.mulf %27, %28 : vector<64x8x16xf32>
    %30 = vector.broadcast %4 : vector<64x1x16xf32> to vector<64x8x16xf32>
    %31 = vector.broadcast %24 : vector<64x8x1xf32> to vector<64x8x16xf32>
    %32 = arith.mulf %30, %31 : vector<64x8x16xf32>
    %33 = arith.addf %29, %32 : vector<64x8x16xf32>
    %c0_7 = arith.constant 0 : index
    %c0_8 = arith.constant 0 : index
    %c0_9 = arith.constant 0 : index
    %34 = vector.load %arg4[%c0_7, %c0_8, %c0_9] : memref<128x8x16xf32, #tpu.memory_space<vmem>>, vector<64x8x16xf32>
    tpu.vector_store %arg4[%c0_7, %c0_8, %c0_9], %33 {strides = array<i32>} : memref<128x8x16xf32, #tpu.memory_space<vmem>>, vector<64x8x16xf32>,
    %35 = vector.broadcast %4 : vector<64x1x16xf32> to vector<64x8x16xf32>
    %36 = vector.broadcast %26 : vector<64x8x1xf32> to vector<64x8x16xf32>
    %37 = arith.mulf %35, %36 : vector<64x8x16xf32>
    %38 = vector.broadcast %2 : vector<64x1x16xf32> to vector<64x8x16xf32>
    %39 = vector.broadcast %24 : vector<64x8x1xf32> to vector<64x8x16xf32>
    %40 = arith.mulf %38, %39 : vector<64x8x16xf32>
    %41 = arith.subf %37, %40 : vector<64x8x16xf32>
    %c64 = arith.constant 64 : index
    %c0_10 = arith.constant 0 : index
    %c0_11 = arith.constant 0 : index
    %42 = vector.load %arg4[%c64, %c0_10, %c0_11] : memref<128x8x16xf32, #tpu.memory_space<vmem>>, vector<64x8x16xf32>
    tpu.vector_store %arg4[%c64, %c0_10, %c0_11], %41 {strides = array<i32>} : memref<128x8x16xf32, #tpu.memory_space<vmem>>, vector<64x8x16xf32>,
    return
  }
  func.func @transform_0(%arg0: i32) -> (i32, i32) {
    %c0_i32 = arith.constant 0 : i32
    %c0_i32_0 = arith.constant 0 : i32
    %c0_i32_1 = arith.constant 0 : i32
    return %c0_i32, %c0_i32_0 : i32, i32
  }
  func.func @transform_1(%arg0: i32) -> (i32, i32) {
    %c0_i32 = arith.constant 0 : i32
    %c0_i32_0 = arith.constant 0 : i32
    %c0_i32_1 = arith.constant 0 : i32
    return %c0_i32, %c0_i32_0 : i32, i32
  }
  func.func @transform_2(%arg0: i32) -> (i32, i32) {
    %c0_i32 = arith.constant 0 : i32
    %c0_i32_0 = arith.constant 0 : i32
    %c0_i32_1 = arith.constant 0 : i32
    return %c0_i32, %c0_i32_0 : i32, i32
  }
  func.func @transform_3(%arg0: i32) -> (i32, i32, i32) {
    %c0_i32 = arith.constant 0 : i32
    %c0_i32_0 = arith.constant 0 : i32
    %c0_i32_1 = arith.constant 0 : i32
    return %c0_i32, %arg0, %c0_i32_0 : i32, i32, i32
  }
}

</mosaic_0001>

<bundles_post_ra>
// kernel: tpu_custom_call.1
= control target key start
LH: loop header
LB: loop body
LE: loop exit
PB: predicated region body
PF: predicated region fallthrough
CT: control target
= control target key end

     0   :  { %s5291_s12 = smov 0   ;;  %s5293_s13 = smov 0   ;;  %s7498_s0 = inlined_call_operand.vmem [shape: f32[64,16], index: 0, kind: input, shape index: {}]   ;;  %s7499_s1 = inlined_call_operand.vmem [shape: f32[64,16], index: 1, kind: input, shape index: {}]   ;;  %s7500_s2 = inlined_call_operand.vmem [shape: f32[64,1], index: 2, kind: input, shape index: {}]   ;;  %s7501_s3 = inlined_call_operand.vmem [shape: f32[128,16,16], index: 3, kind: output, shape index: {}]  }
   0x1   :  { %s5295_s14 = smov 0  }
   0x2 LB: > { %s5080_s15 = sadd.s32 4294967295, %s5262_s14   ;;  %s5308_s16 = sadd.s32 1, %s5262_s14   ;;  %s5262_s14 = sphi %s5295_s14, %s7703_s14   ;;  %s5258_s13 = sphi %s5293_s13, %s7702_s13   ;;  %s5254_s12 = sphi %s5291_s12, %s7701_s12  }
   0x3   : > { %s80_s17 = ssub.s32 %s5262_s14, %s5308_s16  ;;  %s83_s18 = sadd.s32 1, %s5258_s13 }
   0x4   : > { %p81_p0 = scmp.eq.s32.totalorder %s80_s17, 0  ;;  %p93_p1 = scmp.ne.s32.totalorder %s5258_s13, %s5254_s12 }
   0x5   : > { %p94_p2 = scmp.eq.s32.totalorder %s5080_s15, 1  ;;  %p5083_p3 = scmp.ge.s32.totalorder %s5262_s14, 1 }
   0x6   : > { %s5319_s19 = scalar_select %p81_p0, %s5258_s13, %s83_s18  }
   0x7   : > { %p5321_p4 = por %p94_p2, %p93_p1  ;;  %p127_p5 = scmp.lt.s32.totalorder %s5262_s14, 3 }
   0x9   : > { %p128_p6 = pnand %p5083_p3, %p127_p5 }
   0xb   : > { %131 = sbr.rel (%p128_p6) target bundleno = 985 (0x3d9), region = 32 }
  0x10   : > { %v300_v0 = vld [vmem:[%s7500_s2 + $0x10] sm:$0xff]  ;;  %v298_v1 = vld [vmem:[%s7500_s2] sm:$0xff]  ;;  %v7526_v2 = vmov 0   ;;  %v301_v4 = vld [vmem:[%s7500_s2 + $0x18] sm:$0xff]  ;;  %v7508_v9 = vlaneseq  ;;  %s5355_s10 = sshll.u32 %s5080_s15, 3  ;;  %s142_s18 = sand.u32 1, %s5254_s12  }
  0x11   : > { %5235 = vset.pattern.permute.xlu1 %v7526_v2  ;;  %5234 = vset.pattern.permute.xlu0 %v7526_v2  ;;  %v302_v3 = vld [vmem:[%s7500_s2 + $0x20] sm:$0xff]  ;;  %v299_v5 = vld [vmem:[%s7500_s2 + $0x8] sm:$0xff]  ;;  %v305_v7 = vld [vmem:[%s7500_s2 + $0x38] sm:$0xff]  ;;  %v292_v11 = vstv %s5355_s10  ;;  %v7530_v36 = vmov 683565275   ;;  %s5084_s21 = sshll.u32 %s142_s18, 10  ;;  %s7230_s4 = scalar_lea.vmem (%p5321_p4), %s7501_s3, %s5355_s10 }
  0x12   : > { %318 = vperm.xlu1 %5235, %v300_v0   ;;  %308 = vperm.xlu0 %5234, %v298_v1   ;;  %v303_v6 = vld [vmem:[%s7500_s2 + $0x28] sm:$0xff]  ;;  %v304_v8 = vld [vmem:[%s7500_s2 + $0x30] sm:$0xff]  ;;  %v291_v10 = vand.u32 127, %v7508_v9  ;;  %v7522_v38 = vmov 2475754826   ;;  %s6577_s12 = scalar_lea.vmem [#allocation2], %s5084_s21 }
  0x13   : > { %5236 = vset.pattern.permute.xlu2 %v7526_v2  ;;  %v7519_v40 = vmov 2131351028   ;;  %v7517_v42 = vmov 2102212464   ;;  %v7515_v44 = vmov 920167782  }
  0x14   : > { %328 = vperm.xlu2 %5236, %v302_v3   ;;  %v293_v12 = vadd.s32 %v292_v11, %v291_v10  ;;  %v7510_v53 = vmov 1326507024  }
  0x16   : > { %v294_v13 = vcvt.s32.f32 %v293_v12 }
  0x18   : > { %v295_v14 = vadd.f32 0.5, %v294_v13 }
  0x1a   : > { %323 = vperm.xlu1 %5235, %v301_v4   ;;  %313 = vperm.xlu0 %5234, %v299_v5   ;;  %v296_v15 = vmul.f32 0.125, %v295_v14 }
  0x1c   : > { %333 = vperm.xlu2 %5236, %v303_v6   ;;  %v5359_v16 = vadd.f32 -1.0, %v296_v15 }
  0x22   : > { %343 = vperm.xlu1 %5235, %v305_v7   ;;  %338 = vperm.xlu0 %5234, %v304_v8  }
  0x6e   : > { %v329_v17 = vpop.permute.xlu2 %328 }
  0x6f   : > { %v5362_v18 = vmul.f32 %v5359_v16, %v329_v17 }
  0x71   : > { %v974_v19 = vand.u32 2147483647, %v5362_v18  ;;  %v977_v20 = vand.u32 2139095040, %v5362_v18 }
  0x73   : > { %v978_v21 = vshrl.u32 %v977_v20, 23  ;;  %v981_v22 = vand.u32 8388607, %v974_v19 }
  0x75   : > { %v5099_v23 = vadd.s32 4294967169, %v978_v21  ;;  %v982_v24 = vor.u32 8388608, %v981_v22 }
  0x76   : > { %v334_v25 = vpop.permute.xlu2 %333 }
  0x77   : > { %v984_v26 = vadd.s32 1, %v5099_v23  ;;  %v5369_v27 = vmul.f32 %v5359_v16, %v334_v25  ;;  %v5371_v29 = vshll.u32 %v982_v24, 8 }
  0x79   : > { %7578 = vst [vmem:[#allocation3_spill] sm:$0xff] %v5369_v27  ;;  %vm985_vm0 = vcmp.gt.s32.totalorder %v984_v26, 0  ;;  %v1129_v30 = vand.u32 2147483647, %v5369_v27  ;;  %v1132_v31 = vand.u32 2139095040, %v5369_v27  ;;  %v1023_v46 = vand.u32 65535, %v5371_v29 }
  0x7a   : > { %v986_v28 = vsel %vm985_vm0, %v984_v26, 0  ;;  %v1024_v61 = vshrl.u32 %v5371_v29, 16 }
  0x7b   : > { %v987_v32 = vshrl.u32 %v986_v28, 5  ;;  %v988_v33 = vand.u32 31, %v986_v28  ;;  %v1133_v34 = vshrl.u32 %v1132_v31, 23  ;;  %v1136_v47 = vand.u32 8388607, %v1129_v30 }
  0x7d   : > { %v989_v35 = vsub.s32 32, %v988_v33  ;;  %v991_v37 = vshll.u32 %v7530_v36, %v988_v33  ;;  %v994_v39 = vshll.u32 %v7522_v38, %v988_v33  ;;  %v997_v41 = vshll.u32 %v7519_v40, %v988_v33 }
  0x7e   : > { %v1000_v43 = vshll.u32 %v7517_v42, %v988_v33  ;;  %v1003_v45 = vshll.u32 %v7515_v44, %v988_v33  ;;  %vm1006_vm1 = vcmp.lt.s32.totalorder %v987_v32, 1  ;;  %vm1009_vm2 = vcmp.lt.s32.totalorder %v987_v32, 4 }
  0x7f   : > { %v992_v48 = vshrl.u32 %v7522_v38, %v989_v35  ;;  %v995_v49 = vshrl.u32 %v7519_v40, %v989_v35  ;;  %v998_v50 = vshrl.u32 %v7517_v42, %v989_v35  ;;  %v990_v51 = vshrl.u32 %v7530_v36, %v989_v35 }
  0x80   : > { %v1001_v52 = vshrl.u32 %v7515_v44, %v989_v35  ;;  %v1004_v54 = vshrl.u32 %v7510_v53, %v989_v35  ;;  %v5102_v58 = vadd.s32 4294967169, %v1133_v34  ;;  %vm1008_vm3 = vcmp.lt.s32.totalorder %v987_v32, 3 }
  0x81   : > { %v993_v55 = vor.u32 %v992_v48, %v991_v37  ;;  %v996_v56 = vor.u32 %v995_v49, %v994_v39  ;;  %v999_v57 = vor.u32 %v998_v50, %v997_v41  ;;  %vm1007_vm4 = vcmp.lt.s32.totalorder %v987_v32, 2 }
  0x82   : > { %v1002_v59 = vor.u32 %v1001_v52, %v1000_v43  ;;  %v1005_v60 = vor.u32 %v1004_v54, %v1003_v45  ;;  %v1137_v4 = vor.u32 8388608, %v1136_v47  ;;  %v1139_v5 = vadd.s32 1, %v5102_v58 }
  0x83   : > { %v1011_v62 = vsel %vm1009_vm2, %v999_v57, 2102212464  ;;  %v1014_v63 = vsel %vm1006_vm1, %v993_v55, %v996_v56  ;;  %v1018_v0 = vsel %vm1006_vm1, %v996_v56, %v999_v57  ;;  %v1010_v6 = vsel %vm1006_vm1, %v990_v51, %v993_v55 }
  0x84   : > { %v1015_v1 = vsel %vm1009_vm2, %v1002_v59, 920167782  ;;  %v1019_v3 = vsel %vm1009_vm2, %v1005_v60, 1326507024  ;;  %v1012_v7 = vsel %vm1008_vm3, %v996_v56, %v1011_v62  ;;  %vm1140_vm5 = vcmp.gt.s32.totalorder %v1139_v5, 0 }
  0x85   : > { %v1016_v8 = vsel %vm1008_vm3, %v999_v57, %v1015_v1  ;;  %v1020_v10 = vsel %vm1008_vm3, %v1002_v59, %v1019_v3  ;;  %v5396_v20 = vsel %vm1007_vm4, %v1010_v6, %v1012_v7  ;;  %v5398_v24 = vshll.u32 %v1137_v4, 8 }
  0x86   : > { %v1017_v11 = vsel %vm1007_vm4, %v1014_v63, %v1016_v8  ;;  %v1021_v12 = vsel %vm1007_vm4, %v1018_v0, %v1020_v10  ;;  %v1141_v31 = vsel %vm1140_vm5, %v1139_v5, 0 }
  0x87   : > { %v1025_v13 = vand.u32 65535, %v1021_v12  ;;  %v1026_v14 = vshrl.u32 %v1021_v12, 16  ;;  %v1047_v15 = vand.u32 65535, %v1017_v11  ;;  %v1048_v17 = vshrl.u32 %v1017_v11, 16 }
  0x88   : > { %v1143_v48 = vand.u32 31, %v1141_v31  ;;  %v5405_v57 = vshrl.u32 %v1141_v31, 5  ;;  %v1178_v31 = vand.u32 65535, %v5398_v24 }
  0x89   : > { %v1027_v21 = vmul.u32 %v1025_v13, %v1023_v46  ;;  %v1028_v22 = vmul.u32 %v1026_v14, %v1023_v46  ;;  %v1029_v23 = vmul.u32 %v1025_v13, %v1024_v61  ;;  %v1049_v25 = vmul.u32 %v1047_v15, %v1023_v46 }
  0x8a   : > { %v1050_v26 = vmul.u32 %v1048_v17, %v1023_v46  ;;  %v1051_v28 = vmul.u32 %v1047_v15, %v1024_v61  ;;  %v1030_v33 = vmul.u32 %v1026_v14, %v1024_v61  ;;  %v1052_v37 = vmul.u32 %v1048_v17, %v1024_v61 }
  0x8b   : > { %v1031_v34 = vshll.u32 %v1028_v22, 16  ;;  %v1033_v35 = vshll.u32 %v1029_v23, 16  ;;  %v1032_v39 = vshrl.u32 %v1028_v22, 16  ;;  %v1034_v41 = vshrl.u32 %v1029_v23, 16 }
  0x8c   : > { %v1053_v43 = vshll.u32 %v1050_v26, 16  ;;  %v1055_v45 = vshll.u32 %v1051_v28, 16  ;;  %v1054_v47 = vshrl.u32 %v1050_v26, 16  ;;  %v1056_v50 = vshrl.u32 %v1051_v28, 16 }
  0x8d   : > { %vm1035_vm6 = vc.u32 %v1027_v21, %v1031_v34  ;;  %v1037_v32 = vadd.s32 %v1031_v34, %v1027_v21  ;;  %v5402_v54 = vsub.s32 32, %v1143_v48  ;;  %v1146_v61 = vshll.u32 %v7530_v36, %v1143_v48 }
  0x8e   : > { %v1036_v49 = vsel %vm1035_vm6, 1, %v7526_v2  ;;  %vm1057_vm7 = vc.u32 %v1049_v25, %v1053_v43  ;;  %v1059_v51 = vadd.s32 %v1053_v43, %v1049_v25  ;;  %v1149_v0 = vshll.u32 %v7522_v38, %v1143_v48 }
  0x8f   : > { %v1038_v46 = vadd.s32 %v1036_v49, %v1030_v33  ;;  %vm1039_vm8 = vc.u32 %v1037_v32, %v1033_v35  ;;  %v1058_v52 = vsel %vm1057_vm7, 1, %v7526_v2  ;;  %v1147_v63 = vshrl.u32 %v7522_v38, %v5402_v54  ;;  %v319_v49 = vpop.permute.xlu1 %318 }
  0x90   : > { %v1040_v55 = vsel %vm1039_vm8, 1, %v7526_v2  ;;  %v1060_v56 = vadd.s32 %v1058_v52, %v1052_v37  ;;  %vm1061_vm9 = vc.u32 %v1059_v51, %v1055_v45  ;;  %v5408_v60 = vadd.s32 %v1059_v51, %v1055_v45 }
  0x91   : > { %v1042_v58 = vadd.s32 %v1040_v55, %v1038_v46  ;;  %v1062_v59 = vsel %vm1061_vm9, 1, %v7526_v2  ;;  %v1150_v1 = vshrl.u32 %v7519_v40, %v5402_v54  ;;  %v1152_v4 = vshll.u32 %v7519_v40, %v1143_v48 }
  0x92   : > { %v1064_v62 = vadd.s32 %v1062_v59, %v1060_v56  ;;  %v1153_v5 = vshrl.u32 %v7517_v42, %v5402_v54  ;;  %v1155_v6 = vshll.u32 %v7517_v42, %v1143_v48  ;;  %v5420_v8 = vor.u32 %v1147_v63, %v1146_v61 }
  0x93   : > { %v1043_v3 = vadd.s32 %v1042_v58, %v1032_v39  ;;  %v5422_v10 = vor.u32 %v1150_v1, %v1149_v0  ;;  %v1156_v11 = vshrl.u32 %v7515_v44, %v5402_v54  ;;  %v1158_v14 = vshll.u32 %v7515_v44, %v1143_v48 }
  0x94   : > { %v1065_v7 = vadd.s32 %v1064_v62, %v1054_v47  ;;  %v5428_v13 = vor.u32 %v1153_v5, %v1152_v4  ;;  %v1159_v15 = vshrl.u32 %v7510_v53, %v5402_v54  ;;  %vm1161_vm10 = vcmp.lt.s32.totalorder %v5405_v57, 1 }
  0x95   : > { %v5426_v12 = vadd.s32 %v1043_v3, %v1034_v41  ;;  %v1157_v21 = vor.u32 %v1156_v11, %v1155_v6  ;;  %v1067_v22 = vmul.u32 %v5371_v29, %v5396_v20  ;;  %vm1163_vm12 = vcmp.lt.s32.totalorder %v5405_v57, 3 }
  0x96   : > { %v1066_v17 = vadd.s32 %v1065_v7, %v1056_v50  ;;  %v1160_v23 = vor.u32 %v1159_v15, %v1158_v14  ;;  %vm1162_vm13 = vcmp.lt.s32.totalorder %v5405_v57, 2  ;;  %vm1164_vm14 = vcmp.lt.s32.totalorder %v5405_v57, 4 }
  0x97   : > { %vm1069_vm11 = vc.u32 %v5426_v12, %v5408_v60  ;;  %v1169_v26 = vsel %vm1161_vm10, %v5420_v8, %v5422_v10  ;;  %v1170_v28 = vsel %vm1164_vm14, %v1157_v21, 920167782  ;;  %v1173_v29 = vsel %vm1161_vm10, %v5422_v10, %v5428_v13 }
  0x98   : > { %v1070_v25 = vadd.s32 1, %v1066_v17  ;;  %v1174_v20 = vsel %vm1164_vm14, %v1160_v23, 1326507024  ;;  %v1171_v34 = vsel %vm1163_vm12, %v5428_v13, %v1170_v28  ;;  %v1179_v37 = vshrl.u32 %v5398_v24, 16 }
  0x99   : > { %v1175_v35 = vsel %vm1163_vm12, %v1157_v21, %v1174_v20  ;;  %v1172_v41 = vsel %vm1162_vm13, %v1169_v26, %v1171_v34  ;;  %v5467_v59 = vmul.f32 %v5359_v16, %v319_v49  ;;  %vm5516_vm7 = vcmp.le.f32.partialorder %v974_v19, 0.7853982 }
  0x9a   : > { %v1071_v33 = vsel %vm1069_vm11, %v1070_v25, %v1066_v17  ;;  %v1176_v43 = vsel %vm1162_vm13, %v1173_v29, %v1175_v35  ;;  %v1202_v47 = vand.u32 65535, %v1172_v41  ;;  %v1203_v48 = vshrl.u32 %v1172_v41, 16 }
  0x9b   : > { %v1072_v39 = vadd.s32 %v1071_v33, %v1067_v22  ;;  %v1180_v45 = vand.u32 65535, %v1176_v43  ;;  %v1181_v32 = vshrl.u32 %v1176_v43, 16  ;;  %v667_v14 = vand.u32 2139095040, %v5467_v59 }
  0x9c   : > { %v1205_v58 = vmul.u32 %v1203_v48, %v1178_v31  ;;  %v1204_v63 = vmul.u32 %v1202_v47, %v1178_v31  ;;  %v1206_v0 = vmul.u32 %v1202_v47, %v1179_v37  ;;  %v1207_v5 = vmul.u32 %v1203_v48, %v1179_v37 }
  0x9d   : > { %v1073_v50 = vadd.s32 536870912, %v1072_v39  ;;  %v1182_v51 = vmul.u32 %v1180_v45, %v1178_v31  ;;  %v1183_v46 = vmul.u32 %v1181_v32, %v1178_v31  ;;  %v1184_v52 = vmul.u32 %v1180_v45, %v1179_v37 }
  0x9e   : > { %v1185_v56 = vmul.u32 %v1181_v32, %v1179_v37  ;;  %v1208_v3 = vshll.u32 %v1205_v58, 16  ;;  %v1210_v17 = vshll.u32 %v1206_v0, 16  ;;  %v1145_v25 = vshrl.u32 %v7530_v36, %v5402_v54 }
  0x9f   : > { %v5464_v55 = vshrl.u32 %v1073_v50, 30  ;;  %v1186_v61 = vshll.u32 %v1183_v46, 16  ;;  %v1188_v62 = vshll.u32 %v1184_v52, 16  ;;  %v1187_v7 = vshrl.u32 %v1183_v46, 16 }
  0xa0   : > { %vm1212_vm1 = vc.u32 %v1204_v63, %v1208_v3  ;;  %v1214_v28 = vadd.s32 %v1208_v3, %v1204_v63  ;;  %v1166_v31 = vsel %vm1164_vm14, %v5428_v13, 2102212464  ;;  %v1189_v33 = vshrl.u32 %v1184_v52, 16 }
  0xa1   : > { %v1075_v1 = vshll.u32 %v5464_v55, 30  ;;  %vm1190_vm15 = vc.u32 %v1182_v51, %v1186_v61  ;;  %v1192_v4 = vadd.s32 %v1186_v61, %v1182_v51  ;;  %v1213_v23 = vsel %vm1212_vm1, 1, %v7526_v2 }
  0xa2   : > { %v1191_v11 = vsel %vm1190_vm15, 1, %v7526_v2  ;;  %v1215_v29 = vadd.s32 %v1213_v23, %v1207_v5  ;;  %v668_v34 = vshrl.u32 %v667_v14, 23  ;;  %vm1216_vm3 = vc.u32 %v1214_v28, %v1210_v17 }
  0xa3   : > { %v1076_v6 = vsub.s32 %v1072_v39, %v1075_v1  ;;  %v1193_v15 = vadd.s32 %v1191_v11, %v1185_v56  ;;  %vm1194_vm0 = vc.u32 %v1192_v4, %v1188_v62  ;;  %v1209_v39 = vshrl.u32 %v1205_v58, 16 }
  0xa4   : > { %v1195_v22 = vsel %vm1194_vm0, 1, %v7526_v2  ;;  %v1217_v41 = vsel %vm1216_vm3, 1, %v7526_v2  ;;  %v5093_v43 = vadd.s32 4294967169, %v668_v34  ;;  %v1068_v54 = vadd.s32 %v5408_v60, %v5426_v12 }
  0xa5   : > { %vm1077_vm2 = vcmp.lt.s32.totalorder %v1076_v6, 0  ;;  %v1078_v21 = vsub.s32 0, %v1076_v6  ;;  %v1197_v26 = vadd.s32 %v1195_v22, %v1193_v15  ;;  %v1219_v32 = vadd.s32 %v1217_v41, %v1215_v29 }
  0xa6   : > { %v1165_v47 = vsel %vm1161_vm10, %v1145_v25, %v5420_v8  ;;  %v1167_v13 = vsel %vm1163_vm12, %v5422_v10, %v1166_v31  ;;  %v1211_v48 = vshrl.u32 %v1206_v0, 16  ;;  %v674_v49 = vadd.s32 1, %v5093_v43 }
  0xa7   : > { %v1079_v20 = vsel %vm1077_vm2, %v1078_v21, %v1076_v6  ;;  %v1198_v37 = vadd.s32 %v1197_v26, %v1187_v7  ;;  %v5490_v51 = vadd.s32 %v1214_v28, %v1210_v17  ;;  %v1220_v46 = vadd.s32 %v1219_v32, %v1209_v39 }
  0xa8   : > { %v1080_v35 = vclz %v1079_v20  ;;  %v664_v60 = vand.u32 2147483647, %v5467_v59  ;;  %vm675_vm5 = vcmp.gt.s32.totalorder %v674_v49, 0  ;;  %v1168_v8 = vsel %vm1162_vm13, %v1165_v47, %v1167_v13 }
  0xa9   : > { %v5488_v50 = vadd.s32 %v1198_v37, %v1189_v33  ;;  %v1221_v61 = vadd.s32 %v1220_v46, %v1211_v48  ;;  %v676_v10 = vsel %vm675_vm5, %v674_v49, 0  ;;  %v1222_v0 = vmul.u32 %v5398_v24, %v1168_v8 }
  0xaa   : > { %v5100_v45 = vadd.s32 4294967294, %v1080_v35  ;;  %v671_v3 = vand.u32 8388607, %v664_v60  ;;  %v678_v4 = vand.u32 31, %v676_v10  ;;  %v1098_v15 = vsub.s32 4, %v5464_v55 }
  0xab   : > { %vm1224_vm6 = vc.u32 %v5488_v50, %v5490_v51  ;;  %v1225_v1 = vadd.s32 1, %v1221_v61  ;;  %v5503_v22 = vshrl.u32 %v676_v10, 5  ;;  %vm976_vm8 = vcmp.lt.s32.totalorder %v5362_v18, 0 }
  0xac   : > { %vm5101_vm4 = vcmp.lt.s32.totalorder %v5100_v45, 0  ;;  %v5500_v11 = vsub.s32 32, %v678_v4  ;;  %v672_v21 = vor.u32 8388608, %v671_v3  ;;  %v684_v24 = vshll.u32 %v7522_v38, %v678_v4 }
  0xad   : > { %v1083_v52 = vsel %vm5101_vm4, 0, %v5100_v45  ;;  %v1226_v7 = vsel %vm1224_vm6, %v1225_v1, %v1221_v61  ;;  %v687_v26 = vshll.u32 %v7519_v40, %v678_v4  ;;  %v690_v20 = vshll.u32 %v7517_v42, %v678_v4 }
  0xae   : > { %v1084_v12 = vsub.s32 32, %v1083_v52  ;;  %v1085_v56 = vshll.u32 %v1076_v6, %v1083_v52  ;;  %v1088_v58 = vsub.s32 4294967266, %v1083_v52  ;;  %v1227_v17 = vadd.s32 %v1226_v7, %v1222_v0 }
  0xaf   : > { %v685_v25 = vshrl.u32 %v7519_v40, %v5500_v11  ;;  %v688_v29 = vshrl.u32 %v7517_v42, %v5500_v11  ;;  %v691_v31 = vshrl.u32 %v7515_v44, %v5500_v11  ;;  %v693_v35 = vshll.u32 %v7515_v44, %v678_v4 }
  0xb0   : > { %v1086_v62 = vshrl.u32 %v1068_v54, %v1084_v12  ;;  %v1089_v63 = vadd.s32 127, %v1088_v58  ;;  %v1228_v28 = vadd.s32 536870912, %v1227_v17  ;;  %v681_v39 = vshll.u32 %v7530_v36, %v678_v4 }
  0xb1   : > { %v682_v41 = vshrl.u32 %v7522_v38, %v5500_v11  ;;  %v694_v43 = vshrl.u32 %v7510_v53, %v5500_v11  ;;  %v1099_v19 = vsel %vm976_vm8, %v1098_v15, %v5464_v55  ;;  %v692_v45 = vor.u32 %v691_v31, %v690_v20 }
  0xb2   : > { %v1087_v5 = vor.u32 %v1086_v62, %v1085_v56  ;;  %v1090_v6 = vshll.u32 %v1089_v63, 23  ;;  %v5522_v37 = vshrl.u32 %v1228_v28, 30  ;;  %v5530_v32 = vshll.u32 %v672_v21, 8 }
  0xb3   : > { %v5533_v13 = vor.u32 %v685_v25, %v684_v24  ;;  %v5535_v48 = vor.u32 %v688_v29, %v687_v26  ;;  %vm699_vm9 = vcmp.lt.s32.totalorder %v5503_v22, 4  ;;  %v695_v46 = vor.u32 %v694_v43, %v693_v35 }
  0xb4   : > { %v1091_v57 = vor.u32 4788187, %v1090_v6  ;;  %v1094_v14 = vcvt.s32.f32 %v1087_v5  ;;  %v1230_v47 = vshll.u32 %v5522_v37, 30  ;;  %vm696_vm10 = vcmp.lt.s32.totalorder %v5503_v22, 1 }
  0xb5   : > { %v5544_v55 = vsel %vm5516_vm7, 0, %v1099_v19  ;;  %v5546_v56 = vor.u32 %v682_v41, %v681_v39  ;;  %vm698_vm11 = vcmp.lt.s32.totalorder %v5503_v22, 3  ;;  %v705_v8 = vsel %vm699_vm9, %v692_v45, 920167782 }
  0xb6   : > { %v1092_v23 = vand.u32 2147483647, %v1091_v57  ;;  %v1231_v12 = vsub.s32 %v1227_v17, %v1230_v47  ;;  %v5552_v61 = vand.u32 65535, %v5530_v32  ;;  %vm697_vm13 = vcmp.lt.s32.totalorder %v5503_v22, 2  ;;  %v309_v17 = vpop.permute.xlu0 %308 }
  0xb7   : > { %v708_v62 = vsel %vm696_vm10, %v5533_v13, %v5535_v48  ;;  %v709_v1 = vsel %vm699_vm9, %v695_v46, 1326507024  ;;  %v704_v4 = vsel %vm696_vm10, %v5546_v56, %v5533_v13  ;;  %v706_v5 = vsel %vm698_vm11, %v5535_v48, %v705_v8 }
  0xb8   : > { %v1095_v34 = vmul.f32 %v1094_v14, %v1092_v23  ;;  %vm1232_vm12 = vcmp.lt.s32.totalorder %v1231_v12, 0  ;;  %v1233_v10 = vsub.s32 0, %v1231_v12  ;;  %v710_v6 = vsel %vm698_vm11, %v692_v45, %v709_v1 }
  0xb9   : > { %v711_v15 = vsel %vm697_vm13, %v708_v62, %v710_v6  ;;  %v2802_v21 = vand.u32 3, %v5544_v55  ;;  %v707_v28 = vsel %vm697_vm13, %v704_v4, %v706_v5  ;;  %v714_v29 = vshrl.u32 %v5530_v32, 16 }
  0xba   : > { %v1096_v54 = vxor.u32 2147483648, %v1095_v34  ;;  %v1234_v3 = vsel %vm1232_vm12, %v1233_v10, %v1231_v12  ;;  %v716_v23 = vshrl.u32 %v711_v15, 16  ;;  %v715_v20 = vand.u32 65535, %v711_v15 }
  0xbb   : > { %v1235_v14 = vclz %v1234_v3  ;;  %v5580_v33 = vmul.f32 %v5359_v16, %v309_v17  ;;  %v1223_v39 = vadd.s32 %v5490_v51, %v5488_v50  ;;  %vm1117_vm15 = vweird.f32 %v5362_v18 }
  0xbc   : > { %v1097_v49 = vsel %vm976_vm8, %v1096_v54, %v1095_v34  ;;  %v5577_v31 = vmul.u32 %v716_v23, %v5552_v61  ;;  %vm2803_vm0 = vcmp.lt.s32.totalorder %v2802_v21, 2  ;;  %v738_v43 = vshrl.u32 %v707_v28, 16 }
  0xbd   : > { %v1100_v52 = vsel %vm5516_vm7, %v5362_v18, %v1097_v49  ;;  %v5103_v26 = vadd.s32 4294967294, %v1235_v14  ;;  %v717_v46 = vmul.u32 %v715_v20, %v5552_v61  ;;  %v5586_v8 = vmul.u32 %v715_v20, %v714_v29 }
  0xbe   : > { %v1102_v58 = vmul.f32 %v1100_v52, %v1100_v52  ;;  %v721_v10 = vshll.u32 %v5577_v31, 16  ;;  %vm2804_vm1 = vcmp.eq.s32.totalorder %v2802_v21, 0  ;;  %vm2807_vm2 = vcmp.eq.s32.totalorder %v2802_v21, 2 }
  0xbf   : > { %vm5104_vm14 = vcmp.lt.s32.totalorder %v5103_v26, 0  ;;  %v740_v1 = vmul.u32 %v738_v43, %v5552_v61  ;;  %vm1131_vm3 = vcmp.lt.s32.totalorder %v5369_v27, 0  ;;  %v720_v4 = vmul.u32 %v716_v23, %v714_v29 }
  0xc0   : > { %v1103_v63 = vmul.f32 -0.001358992, %v1102_v58  ;;  %v1110_v0 = vmul.f32 -0.00019511016, %v1102_v58  ;;  %v1238_v41 = vsel %vm5104_vm14, 0, %v5103_v26  ;;  %vm725_vm5 = vc.u32 %v717_v46, %v721_v10 }
  0xc1   : > { %v1239_v45 = vsub.s32 32, %v1238_v41  ;;  %v1240_v47 = vshll.u32 %v1231_v12, %v1238_v41  ;;  %v1243_v49 = vsub.s32 4294967266, %v1238_v41  ;;  %vm5598_vm4 = vcmp.le.f32.partialorder %v1129_v30, 0.7853982 }
  0xc2   : > { %v1104_v7 = vadd.f32 0.041655596, %v1103_v63  ;;  %v1111_v57 = vadd.f32 0.008332121, %v1110_v0  ;;  %v737_v63 = vand.u32 65535, %v707_v28  ;;  %v743_v20 = vshll.u32 %v740_v1, 16 }
  0xc3   : > { %v1241_v51 = vshrl.u32 %v1223_v39, %v1239_v45  ;;  %v1244_v0 = vadd.s32 127, %v1243_v49  ;;  %v701_v30 = vsel %vm699_vm9, %v5535_v48, 2102212464  ;;  %v722_v48 = vshrl.u32 %v5577_v31, 16 }
  0xc4   : > { %v1105_v24 = vmul.f32 %v1104_v7, %v1102_v58  ;;  %v1112_v25 = vmul.f32 %v1111_v57, %v1102_v58  ;;  %v680_v7 = vshrl.u32 %v7530_v36, %v5500_v11  ;;  %v723_v57 = vshll.u32 %v5586_v8, 16 }
  0xc5   : > { %v1242_v3 = vor.u32 %v1241_v51, %v1240_v47  ;;  %v1245_v6 = vshll.u32 %v1244_v0, 23  ;;  %v741_v15 = vmul.u32 %v737_v63, %v714_v29  ;;  %v739_v28 = vmul.u32 %v737_v63, %v5552_v61 }
  0xc6   : > { %v1106_v34 = vadd.f32 -0.4999988, %v1105_v24  ;;  %v1113_v35 = vadd.f32 -0.16666654, %v1112_v25  ;;  %v726_v24 = vsel %vm725_vm5, 1, %v7526_v2  ;;  %v727_v25 = vadd.s32 %v721_v10, %v717_v46 }
  0xc7   : > { %v1246_v17 = vor.u32 4788187, %v1245_v6  ;;  %v1249_v23 = vcvt.s32.f32 %v1242_v3  ;;  %v728_v26 = vadd.s32 %v726_v24, %v720_v4  ;;  %v1253_v41 = vsub.s32 4, %v5522_v37 }
  0xc8   : > { %v1107_v54 = vmul.f32 %v1106_v34, %v1102_v58  ;;  %v1114_v19 = vmul.f32 %v1113_v35, %v1102_v58  ;;  %vm729_vm6 = vc.u32 %v727_v25, %v723_v57  ;;  %v700_v61 = vsel %vm696_vm10, %v680_v7, %v5546_v56 }
  0xc9   : > { %v1247_v35 = vand.u32 2147483647, %v1246_v17  ;;  %v745_v47 = vshll.u32 %v741_v15, 16  ;;  %v702_v31 = vsel %vm698_vm11, %v5533_v13, %v701_v30  ;;  %vm747_vm7 = vc.u32 %v739_v28, %v743_v20 }
  0xca   : > { %v5589_v62 = vadd.f32 1.0, %v1107_v54  ;;  %v1115_v50 = vadd.f32 1.0, %v1114_v19  ;;  %v730_v54 = vsel %vm729_vm6, 1, %v7526_v2  ;;  %v742_v19 = vmul.u32 %v738_v43, %v714_v29 }
  0xcb   : > { %v1250_v45 = vmul.f32 %v1249_v23, %v1247_v35  ;;  %v732_v21 = vadd.s32 %v730_v54, %v728_v26  ;;  %v749_v49 = vadd.s32 %v743_v20, %v739_v28  ;;  %v357_v46 = vand.u32 2139095040, %v5580_v33 }
  0xcc   : > { %v5592_v58 = vmul.f32 %v1115_v50, %v1100_v52  ;;  %v7504_v12 = vxor.u32 2147483648, %v5589_v62  ;;  %v724_v50 = vshrl.u32 %v5586_v8, 16  ;;  %v748_v29 = vsel %vm747_vm7, 1, %v7526_v2 }
  0xcd   : > { %v1251_v10 = vxor.u32 2147483648, %v1250_v45  ;;  %v733_v51 = vadd.s32 %v732_v21, %v722_v48  ;;  %v744_v43 = vshrl.u32 %v740_v1, 16  ;;  %v750_v63 = vadd.s32 %v748_v29, %v742_v19 }
  0xce   : > { %v7505_v52 = vxor.u32 2147483648, %v5592_v58  ;;  %v2809_v14 = vsel %vm2807_vm2, %v7504_v12, %v5592_v58  ;;  %vm751_vm8 = vc.u32 %v749_v49, %v745_v47  ;;  %v358_v56 = vshrl.u32 %v357_v46, 23 }
  0xcf   : > { %v1252_v0 = vsel %vm1131_vm3, %v1251_v10, %v1250_v45  ;;  %v1254_v13 = vsel %vm1131_vm3, %v1253_v41, %v5522_v37  ;;  %v752_v3 = vsel %vm751_vm8, 1, %v7526_v2  ;;  %v746_v4 = vshrl.u32 %v741_v15, 16 }
  0xd0   : > { %v2806_v11 = vsel %vm2804_vm1, %v5589_v62, %v7505_v52  ;;  %v1255_v8 = vsel %vm5598_vm4, %v5369_v27, %v1252_v0  ;;  %v754_v6 = vadd.s32 %v752_v3, %v750_v63  ;;  %v5087_v7 = vadd.s32 4294967169, %v358_v56 }
  0xd1   : > { %v2810_v34 = vsel %vm2803_vm0, %v2806_v11, %v2809_v14  ;;  %v1257_v1 = vmul.f32 %v1255_v8, %v1255_v8  ;;  %v703_v57 = vsel %vm697_vm13, %v700_v61, %v702_v31  ;;  %v5646_v14 = vadd.s32 %v733_v51, %v724_v50 }
  0xd2   : > { %v5622_v39 = vsel %vm1117_vm15, nan, %v2810_v34  ;;  %v5648_v30 = vadd.s32 %v749_v49, %v745_v47  ;;  %v755_v17 = vadd.s32 %v754_v6, %v744_v43  ;;  %v364_v23 = vadd.s32 1, %v5087_v7 }
  0xd3   : > { %7583 = vst [vmem:[#allocation4_spill] sm:$0xff] %v5622_v39  ;;  %v1258_v37 = vmul.f32 -0.001358992, %v1257_v1  ;;  %v1265_v24 = vmul.f32 -0.00019511016, %v1257_v1  ;;  %v5653_v11 = vsel %vm5598_vm4, 0, %v1254_v13  ;;  %v757_v26 = vmul.u32 %v5530_v32, %v703_v57 }
  0xd4   : > { %v354_v25 = vand.u32 2147483647, %v5580_v33  ;;  %v756_v15 = vadd.s32 %v755_v17, %v746_v4  ;;  %vm365_vm9 = vcmp.gt.s32.totalorder %v364_v23, 0  ;;  %vm759_vm10 = vc.u32 %v5646_v14, %v5648_v30 }
  0xd5   : > { %v1259_v22 = vadd.f32 0.041655596, %v1258_v37  ;;  %v1266_v28 = vadd.f32 0.008332121, %v1265_v24  ;;  %v366_v20 = vsel %vm365_vm9, %v364_v23, 0  ;;  %v2956_v34 = vand.u32 3, %v5653_v11 }
  0xd6   : > { %v760_v35 = vadd.s32 1, %v756_v15  ;;  %v368_v48 = vand.u32 31, %v366_v20  ;;  %v361_v5 = vand.u32 8388607, %v354_v25  ;;  %vm1272_vm11 = vweird.f32 %v5369_v27 }
  0xd7   : > { %v1260_v41 = vmul.f32 %v1259_v22, %v1257_v1  ;;  %v1267_v54 = vmul.f32 %v1266_v28, %v1257_v1  ;;  %vm2958_vm12 = vcmp.eq.s32.totalorder %v2956_v34, 0  ;;  %vm2961_vm13 = vcmp.eq.s32.totalorder %v2956_v34, 2 }
  0xd8   : > { %v761_v19 = vsel %vm759_vm10, %v760_v35, %v756_v15  ;;  %v5661_v45 = vsub.s32 32, %v368_v48  ;;  %v362_v46 = vor.u32 8388608, %v361_v5  ;;  %v5664_v10 = vshrl.u32 %v366_v20, 5  ;;  %v324_v35 = vpop.permute.xlu1 %323 }
  0xd9   : > { %v1261_v32 = vadd.f32 -0.4999988, %v1260_v41  ;;  %v1268_v61 = vadd.f32 -0.16666654, %v1267_v54  ;;  %v762_v21 = vadd.s32 %v761_v19, %v757_v26  ;;  %v380_v0 = vshll.u32 %v7517_v42, %v368_v48 }
  0xda   : > { %v372_v50 = vshrl.u32 %v7522_v38, %v5661_v45  ;;  %v375_v51 = vshrl.u32 %v7519_v40, %v5661_v45  ;;  %v381_v29 = vshrl.u32 %v7515_v44, %v5661_v45  ;;  %v371_v13 = vshll.u32 %v7530_v36, %v368_v48 }
  0xdb   : > { %v1262_v47 = vmul.f32 %v1261_v32, %v1257_v1  ;;  %v1269_v31 = vmul.f32 %v1268_v61, %v1257_v1  ;;  %v763_v49 = vadd.s32 536870912, %v762_v21  ;;  %v374_v3 = vshll.u32 %v7522_v38, %v368_v48 }
  0xdc   : > { %v378_v4 = vshrl.u32 %v7517_v42, %v5661_v45  ;;  %v384_v6 = vshrl.u32 %v7510_v53, %v5661_v45  ;;  %v382_v17 = vor.u32 %v381_v29, %v380_v0  ;;  %v5687_v23 = vor.u32 %v372_v50, %v371_v13 }
  0xdd   : > { %v5672_v43 = vadd.f32 1.0, %v1262_v47  ;;  %v1270_v63 = vadd.f32 1.0, %v1269_v31  ;;  %v5674_v56 = vshrl.u32 %v763_v49, 30  ;;  %v5689_v37 = vor.u32 %v375_v51, %v374_v3 }
  0xde   : > { %v377_v24 = vshll.u32 %v7519_v40, %v368_v48  ;;  %v383_v15 = vshll.u32 %v7515_v44, %v368_v48  ;;  %vm2957_vm14 = vcmp.lt.s32.totalorder %v2956_v34, 2  ;;  %vm386_vm0 = vcmp.lt.s32.totalorder %v5664_v10, 1 }
  0xdf   : > { %7584 = vst [vmem:[#allocation5_spill] sm:$0xff] %v5672_v43  ;;  %v5683_v7 = vmul.f32 %v1270_v63, %v1255_v8  ;;  %v7502_v1 = vxor.u32 2147483648, %v5672_v43  ;;  %v765_v57 = vshll.u32 %v5674_v56, 30  ;;  %vm389_vm1 = vcmp.lt.s32.totalorder %v5664_v10, 4 }
  0xe0   : > { %v379_v28 = vor.u32 %v378_v4, %v377_v24  ;;  %v385_v20 = vor.u32 %v384_v6, %v383_v15  ;;  %v395_v54 = vsel %vm389_vm1, %v382_v17, 920167782  ;;  %v394_v19 = vsel %vm386_vm0, %v5687_v23, %v5689_v37 }
  0xe1   : > { %v7503_v26 = vxor.u32 2147483648, %v5683_v7  ;;  %v2963_v8 = vsel %vm2961_vm13, %v7502_v1, %v5683_v7  ;;  %v766_v22 = vsub.s32 %v762_v21, %v765_v57  ;;  %v5710_v32 = vshll.u32 %v362_v46, 8 }
  0xe2   : > { %vm388_vm3 = vcmp.lt.s32.totalorder %v5664_v10, 3  ;;  %v5718_v34 = vmul.f32 %v5359_v16, %v324_v35  ;;  %vm387_vm4 = vcmp.lt.s32.totalorder %v5664_v10, 2  ;;  %v398_v46 = vsel %vm386_vm0, %v5689_v37, %v379_v28 }
  0xe3   : > { %v2960_v48 = vsel %vm2958_vm12, %v5672_v43, %v7503_v26  ;;  %vm767_vm2 = vcmp.lt.s32.totalorder %v766_v22, 0  ;;  %v768_v41 = vsub.s32 0, %v766_v22  ;;  %v396_v31 = vsel %vm388_vm3, %v379_v28, %v395_v54 }
  0xe4   : > { %v2964_v5 = vsel %vm2957_vm14, %v2960_v48, %v2963_v8  ;;  %v397_v49 = vsel %vm387_vm4, %v394_v19, %v396_v31  ;;  %v399_v50 = vsel %vm389_vm1, %v385_v20, 1326507024  ;;  %v403_v63 = vand.u32 65535, %v5710_v32 }
  0xe5   : > { %v5714_v61 = vsel %vm1272_vm11, nan, %v2964_v5  ;;  %v769_v21 = vsel %vm767_vm2, %v768_v41, %v766_v22  ;;  %v400_v29 = vsel %vm388_vm3, %v382_v17, %v399_v50  ;;  %v822_v0 = vand.u32 2139095040, %v5718_v34 }
  0xe6   : > { %7585 = vst [vmem:[#allocation6_spill] sm:$0xff] %v5714_v61  ;;  %v770_v47 = vclz %v769_v21  ;;  %v401_v13 = vsel %vm387_vm4, %v398_v46, %v400_v29  ;;  %v427_v3 = vand.u32 65535, %v397_v49  ;;  %v428_v4 = vshrl.u32 %v397_v49, 16 }
  0xe7   : > { %v404_v57 = vshrl.u32 %v5710_v32, 16  ;;  %v405_v24 = vand.u32 65535, %v401_v13  ;;  %v406_v15 = vshrl.u32 %v401_v13, 16  ;;  %v758_v8 = vadd.s32 %v5648_v30, %v5646_v14 }
  0xe8   : > { %v5094_v51 = vadd.s32 4294967294, %v770_v47  ;;  %v823_v54 = vshrl.u32 %v822_v0, 23  ;;  %v430_v21 = vmul.u32 %v428_v4, %v403_v63  ;;  %v370_v31 = vshrl.u32 %v7530_v36, %v5661_v45 }
  0xe9   : > { %v408_v48 = vmul.u32 %v406_v15, %v403_v63  ;;  %v409_v41 = vmul.u32 %v405_v24, %v404_v57  ;;  %v431_v47 = vmul.u32 %v427_v3, %v404_v57  ;;  %v391_v49 = vsel %vm389_vm1, %v379_v28, 2102212464 }
  0xea   : > { %vm5095_vm5 = vcmp.lt.s32.totalorder %v5094_v51, 0  ;;  %v407_v46 = vmul.u32 %v405_v24, %v403_v63  ;;  %v429_v30 = vmul.u32 %v427_v3, %v403_v63  ;;  %v433_v29 = vshll.u32 %v430_v21, 16 }
  0xeb   : > { %v773_v6 = vsel %vm5095_vm5, 0, %v5094_v51  ;;  %v411_v50 = vshll.u32 %v408_v48, 16  ;;  %v413_v13 = vshll.u32 %v409_v41, 16  ;;  %v412_v3 = vshrl.u32 %v408_v48, 16 }
  0xec   : > { %v774_v20 = vsub.s32 32, %v773_v6  ;;  %v778_v17 = vsub.s32 4294967266, %v773_v6  ;;  %v775_v35 = vshll.u32 %v766_v22, %v773_v6  ;;  %v410_v22 = vmul.u32 %v406_v15, %v404_v57 }
  0xed   : > { %vm415_vm6 = vc.u32 %v407_v46, %v411_v50  ;;  %v417_v0 = vadd.s32 %v411_v50, %v407_v46  ;;  %vm437_vm8 = vc.u32 %v429_v30, %v433_v29  ;;  %v439_v45 = vadd.s32 %v433_v29, %v429_v30 }
  0xee   : > { %v776_v5 = vshrl.u32 %v758_v8, %v774_v20  ;;  %v779_v19 = vadd.s32 127, %v778_v17  ;;  %v416_v8 = vsel %vm415_vm6, 1, %v7526_v2  ;;  %v432_v20 = vmul.u32 %v428_v4, %v404_v57 }
  0xef   : > { %v435_v17 = vshll.u32 %v431_v47, 16  ;;  %v418_v1 = vadd.s32 %v416_v8, %v410_v22  ;;  %vm419_vm7 = vc.u32 %v417_v0, %v413_v13  ;;  %v438_v63 = vsel %vm437_vm8, 1, %v7526_v2 }
  0xf0   : > { %v777_v51 = vor.u32 %v776_v5, %v775_v35  ;;  %v780_v14 = vshll.u32 %v779_v19, 23  ;;  %v420_v35 = vsel %vm419_vm7, 1, %v7526_v2  ;;  %v440_v5 = vadd.s32 %v438_v63, %v432_v20 }
  0xf1   : > { %v422_v15 = vadd.s32 %v420_v35, %v418_v1  ;;  %vm441_vm9 = vc.u32 %v439_v45, %v435_v17  ;;  %v788_v46 = vsub.s32 4, %v5674_v56  ;;  %v5096_v57 = vadd.s32 4294967169, %v823_v54 }
  0xf2   : > { %v781_v6 = vor.u32 4788187, %v780_v14  ;;  %v784_v24 = vcvt.s32.f32 %v777_v51  ;;  %v442_v4 = vsel %vm441_vm9, 1, %v7526_v2  ;;  %v414_v50 = vshrl.u32 %v409_v41, 16 }
  0xf3   : > { %v423_v14 = vadd.s32 %v422_v15, %v412_v3  ;;  %v434_v22 = vshrl.u32 %v430_v21, 16  ;;  %v444_v30 = vadd.s32 %v442_v4, %v440_v5  ;;  %v390_v51 = vsel %vm386_vm0, %v370_v31, %v5687_v23 }
  0xf4   : > { %v782_v28 = vand.u32 2147483647, %v781_v6  ;;  %v392_v1 = vsel %vm388_vm3, %v5689_v37, %v391_v49  ;;  %v829_v48 = vadd.s32 1, %v5096_v57  ;;  %vm666_vm10 = vcmp.lt.s32.totalorder %v5467_v59, 0 }
  0xf5   : > { %v5755_v13 = vadd.s32 %v423_v14, %v414_v50  ;;  %v436_v0 = vshrl.u32 %v431_v47, 16  ;;  %v445_v54 = vadd.s32 %v444_v30, %v434_v22  ;;  %vm665_vm12 = vcmp.le.f32.partialorder %v664_v60, 0.7853982 }
  0xf6   : > { %v785_v19 = vmul.f32 %v784_v24, %v782_v28  ;;  %v5759_v21 = vadd.s32 %v439_v45, %v435_v17  ;;  %vm830_vm13 = vcmp.gt.s32.totalorder %v829_v48, 0  ;;  %v789_v23 = vsel %vm666_vm10, %v788_v46, %v5674_v56 }
  0xf7   : > { %v393_v37 = vsel %vm387_vm4, %v390_v51, %v392_v1  ;;  %v446_v49 = vadd.s32 %v445_v54, %v436_v0  ;;  %v831_v47 = vsel %vm830_vm13, %v829_v48, 0  ;;  %v7509_v60 = vand.u32 2147483647, %v5718_v34  ;;  %v314_v1 = vpop.permute.xlu0 %313 }
  0xf8   : > { %v786_v29 = vxor.u32 2147483648, %v785_v19  ;;  %vm449_vm14 = vc.u32 %v5755_v13, %v5759_v21  ;;  %v833_v20 = vand.u32 31, %v831_v47  ;;  %v5768_v17 = vsel %vm665_vm12, 0, %v789_v23 }
  0xf9   : > { %v450_v8 = vadd.s32 1, %v446_v49  ;;  %v447_v56 = vmul.u32 %v5710_v32, %v393_v37  ;;  %v2494_v15 = vand.u32 3, %v5768_v17  ;;  %v826_v4 = vand.u32 8388607, %v7509_v60 }
  0xfa   : > { %v787_v41 = vsel %vm666_vm10, %v786_v29, %v785_v19  ;;  %v834_v35 = vsub.s32 32, %v833_v20  ;;  %v836_v57 = vshll.u32 %v7530_v36, %v833_v20  ;;  %v845_v14 = vshll.u32 %v7517_v42, %v833_v20 }
  0xfb   : > { %v790_v31 = vsel %vm665_vm12, %v5467_v59, %v787_v41  ;;  %v451_v24 = vsel %vm449_vm14, %v450_v8, %v446_v49  ;;  %v5780_v51 = vshrl.u32 %v831_v47, 5  ;;  %v839_v48 = vshll.u32 %v7522_v38, %v833_v20 }
  0xfc   : > { %v792_v6 = vmul.f32 %v790_v31, %v790_v31  ;;  %v452_v3 = vadd.s32 %v451_v24, %v447_v56  ;;  %v837_v50 = vshrl.u32 %v7522_v38, %v834_v35  ;;  %v846_v32 = vshrl.u32 %v7515_v44, %v834_v35 }
  0xfd   : > { %v840_v0 = vshrl.u32 %v7519_v40, %v834_v35  ;;  %v842_v54 = vshll.u32 %v7519_v40, %v833_v20  ;;  %v843_v41 = vshrl.u32 %v7517_v42, %v834_v35  ;;  %vm2495_vm0 = vcmp.lt.s32.totalorder %v2494_v15, 2 }
  0xfe   : > { %v793_v45 = vmul.f32 -0.001358992, %v792_v6  ;;  %v800_v28 = vmul.f32 -0.00019511016, %v792_v6  ;;  %v453_v46 = vadd.s32 536870912, %v452_v3  ;;  %vm2499_vm1 = vcmp.eq.s32.totalorder %v2494_v15, 2 }
  0xff   : > { %vm807_vm2 = vweird.f32 %v5467_v59  ;;  %v827_v8 = vor.u32 8388608, %v826_v4  ;;  %v838_v47 = vor.u32 %v837_v50, %v836_v57  ;;  %vm854_vm3 = vcmp.lt.s32.totalorder %v5780_v51, 4 }
 0x100   : > { %v794_v10 = vadd.f32 0.041655596, %v793_v45  ;;  %v801_v63 = vadd.f32 0.008332121, %v800_v28  ;;  %v5778_v29 = vshrl.u32 %v453_v46, 30  ;;  %v847_v45 = vor.u32 %v846_v32, %v845_v14 }
 0x101   : > { %v5789_v28 = vmul.f32 %v5359_v16, %v314_v1  ;;  %vm851_vm5 = vcmp.lt.s32.totalorder %v5780_v51, 1  ;;  %vm853_vm6 = vcmp.lt.s32.totalorder %v5780_v51, 3  ;;  %v5809_v32 = vshll.u32 %v827_v8, 8 }
 0x102   : > { %v795_v5 = vmul.f32 %v794_v10, %v792_v6  ;;  %v802_v19 = vmul.f32 %v801_v63, %v792_v6  ;;  %v455_v49 = vshll.u32 %v5778_v29, 30  ;;  %v841_v63 = vor.u32 %v840_v0, %v839_v48 }
 0x103   : > { %v512_v50 = vand.u32 2139095040, %v5789_v28  ;;  %vm2496_vm7 = vcmp.eq.s32.totalorder %v2494_v15, 0  ;;  %vm852_vm8 = vcmp.lt.s32.totalorder %v5780_v51, 2  ;;  %v868_v8 = vand.u32 65535, %v5809_v32 }
 0x104   : > { %v796_v22 = vadd.f32 -0.4999988, %v795_v5  ;;  %v803_v30 = vadd.f32 -0.16666654, %v802_v19  ;;  %v456_v10 = vsub.s32 %v452_v3, %v455_v49  ;;  %v848_v5 = vshll.u32 %v7515_v44, %v833_v20 }
 0x105   : > { %v849_v19 = vshrl.u32 %v7510_v53, %v834_v35  ;;  %v860_v3 = vsel %vm854_vm3, %v847_v45, 920167782  ;;  %v859_v0 = vsel %vm851_vm5, %v838_v47, %v841_v63  ;;  %v478_v49 = vsub.s32 4, %v5778_v29 }
 0x106   : > { %v797_v23 = vmul.f32 %v796_v22, %v792_v6  ;;  %v804_v37 = vmul.f32 %v803_v30, %v792_v6  ;;  %v844_v6 = vor.u32 %v843_v41, %v842_v54  ;;  %vm457_vm4 = vcmp.lt.s32.totalorder %v456_v10, 0 }
 0x107   : > { %v458_v57 = vsub.s32 0, %v456_v10  ;;  %v448_v22 = vadd.s32 %v5759_v21, %v5755_v13  ;;  %v850_v1 = vor.u32 %v849_v19, %v848_v5  ;;  %v513_v13 = vshrl.u32 %v512_v50, 23 }
 0x108   : > { %v5791_v56 = vadd.f32 1.0, %v797_v23  ;;  %v805_v24 = vadd.f32 1.0, %v804_v37  ;;  %v861_v54 = vsel %vm853_vm6, %v844_v6, %v860_v3  ;;  %v835_v37 = vshrl.u32 %v7530_v36, %v834_v35 }
 0x109   : > { %v459_v20 = vsel %vm457_vm4, %v458_v57, %v456_v10  ;;  %v862_v5 = vsel %vm852_vm8, %v859_v0, %v861_v54  ;;  %v863_v15 = vsel %vm851_vm5, %v841_v63, %v844_v6  ;;  %v864_v35 = vsel %vm854_vm3, %v850_v1, 1326507024 }
 0x10a   : > { %v5796_v46 = vmul.f32 %v805_v24, %v790_v31  ;;  %v7506_v4 = vxor.u32 2147483648, %v5791_v56  ;;  %v460_v30 = vclz %v459_v20  ;;  %v869_v24 = vshrl.u32 %v5809_v32, 16 }
 0x10b   : > { %v865_v57 = vsel %vm853_vm6, %v847_v45, %v864_v35  ;;  %v892_v3 = vand.u32 65535, %v862_v5  ;;  %v893_v50 = vshrl.u32 %v862_v5, 16  ;;  %v856_v0 = vsel %vm854_vm3, %v844_v6, 2102212464 }
 0x10c   : > { %v7507_v14 = vxor.u32 2147483648, %v5796_v46  ;;  %v2501_v31 = vsel %vm2499_vm1, %v7506_v4, %v5796_v46  ;;  %v5088_v23 = vadd.s32 4294967294, %v460_v30  ;;  %v855_v30 = vsel %vm851_vm5, %v835_v37, %v838_v47 }
 0x10d   : > { %v895_v1 = vmul.u32 %v893_v50, %v868_v8  ;;  %v896_v45 = vmul.u32 %v892_v3, %v869_v24  ;;  %v894_v4 = vmul.u32 %v892_v3, %v868_v8  ;;  %v857_v47 = vsel %vm853_vm6, %v841_v63, %v856_v0 }
 0x10e   : > { %v2498_v48 = vsel %vm2496_vm7, %v5791_v56, %v7507_v14  ;;  %vm5089_vm9 = vcmp.lt.s32.totalorder %v5088_v23, 0  ;;  %v897_v60 = vmul.u32 %v893_v50, %v869_v24  ;;  %vm355_vm1 = vcmp.le.f32.partialorder %v354_v25, 0.7853982 }
 0x10f   : > { %v2502_v41 = vsel %vm2495_vm0, %v2498_v48, %v2501_v31  ;;  %v463_v19 = vsel %vm5089_vm9, 0, %v5088_v23  ;;  %v866_v48 = vsel %vm852_vm8, %v863_v15, %v865_v57  ;;  %v898_v37 = vshll.u32 %v895_v1, 16 }
 0x110   : > { %v5825_v21 = vsel %vm807_vm2, nan, %v2502_v41  ;;  %v464_v31 = vsub.s32 32, %v463_v19  ;;  %v468_v20 = vsub.s32 4294967266, %v463_v19  ;;  %v870_v54 = vand.u32 65535, %v866_v48 }
 0x111   : > { %7586 = vst [vmem:[#allocation7_spill] sm:$0xff] %v5825_v21  ;;  %v871_v41 = vshrl.u32 %v866_v48, 16  ;;  %v465_v23 = vshll.u32 %v456_v10, %v463_v19  ;;  %v899_v10 = vshrl.u32 %v895_v1, 16  ;;  %vm902_vm12 = vc.u32 %v894_v4, %v898_v37 }
 0x112   : > { %v466_v26 = vshrl.u32 %v448_v22, %v464_v31  ;;  %v469_v12 = vadd.s32 127, %v468_v20  ;;  %v872_v35 = vmul.u32 %v870_v54, %v868_v8  ;;  %v874_v52 = vmul.u32 %v870_v54, %v869_v24 }
 0x113   : > { %v873_v5 = vmul.u32 %v871_v41, %v868_v8  ;;  %v875_v15 = vmul.u32 %v871_v41, %v869_v24  ;;  %v900_v22 = vshll.u32 %v896_v45, 16  ;;  %v904_v31 = vadd.s32 %v898_v37, %v894_v4 }
 0x114   : > { %v467_v14 = vor.u32 %v466_v26, %v465_v23  ;;  %v470_v9 = vshll.u32 %v469_v12, 23  ;;  %v878_v6 = vshll.u32 %v874_v52, 16  ;;  %v903_v26 = vsel %vm902_vm12, 1, %v7526_v2 }
 0x115   : > { %v876_v57 = vshll.u32 %v873_v5, 16  ;;  %v877_v53 = vshrl.u32 %v873_v5, 16  ;;  %v905_v3 = vadd.s32 %v903_v26, %v897_v60  ;;  %vm906_vm14 = vc.u32 %v904_v31, %v900_v22 }
 0x116   : > { %v471_v48 = vor.u32 4788187, %v470_v9  ;;  %v474_v8 = vcvt.s32.f32 %v467_v14  ;;  %v879_v24 = vshrl.u32 %v874_v52, 16  ;;  %v907_v50 = vsel %vm906_vm14, 1, %v7526_v2 }
 0x117   : > { %vm880_vm10 = vc.u32 %v872_v35, %v876_v57  ;;  %v882_v19 = vadd.s32 %v876_v57, %v872_v35  ;;  %v901_v41 = vshrl.u32 %v896_v45, 16  ;;  %v909_v1 = vadd.s32 %v907_v50, %v905_v3 }
 0x118   : > { %v472_v20 = vand.u32 2147483647, %v471_v48  ;;  %v881_v12 = vsel %vm880_vm10, 1, %v7526_v2  ;;  %v5090_v4 = vadd.s32 4294967169, %v513_v13  ;;  %vm356_vm0 = vcmp.lt.s32.totalorder %v5580_v33, 0 }
 0x119   : > { %v883_v63 = vadd.s32 %v881_v12, %v875_v15  ;;  %vm884_vm13 = vc.u32 %v882_v19, %v878_v6  ;;  %v858_v23 = vsel %vm852_vm8, %v855_v30, %v857_v47  ;;  %v5853_v5 = vadd.s32 %v904_v31, %v900_v22 }
 0x11a   : > { %v475_v0 = vmul.f32 %v474_v8, %v472_v20  ;;  %v885_v9 = vsel %vm884_vm13, 1, %v7526_v2  ;;  %v910_v60 = vadd.s32 %v909_v1, %v899_v10  ;;  %v519_v37 = vadd.s32 1, %v5090_v4 }
 0x11b   : > { %v887_v54 = vadd.s32 %v885_v9, %v883_v63  ;;  %v479_v45 = vsel %vm356_vm0, %v478_v49, %v5778_v29  ;;  %v7514_v26 = vand.u32 2147483647, %v5789_v28  ;;  %vm497_vm13 = vweird.f32 %v5580_v33 }
 0x11c   : > { %v476_v14 = vxor.u32 2147483648, %v475_v0  ;;  %v911_v57 = vadd.s32 %v910_v60, %v901_v41  ;;  %vm520_vm3 = vcmp.gt.s32.totalorder %v519_v37, 0  ;;  %v5866_v25 = vsel %vm355_vm1, 0, %v479_v45 }
 0x11d   : > { %v888_v35 = vadd.s32 %v887_v54, %v877_v53  ;;  %v912_v53 = vmul.u32 %v5809_v32, %v858_v23  ;;  %v521_v30 = vsel %vm520_vm3, %v519_v37, 0  ;;  %v2186_v20 = vand.u32 3, %v5866_v25 }
 0x11e   : > { %v477_v52 = vsel %vm356_vm0, %v476_v14, %v475_v0  ;;  %v915_v47 = vadd.s32 1, %v911_v57  ;;  %v523_v10 = vand.u32 31, %v521_v30  ;;  %v5878_v50 = vshrl.u32 %v521_v30, 5 }
 0x11f   : > { %v480_v13 = vsel %vm355_vm1, %v5580_v33, %v477_v52  ;;  %v5861_v15 = vadd.s32 %v888_v35, %v879_v24  ;;  %vm2188_vm5 = vcmp.eq.s32.totalorder %v2186_v20, 0  ;;  %v516_v60 = vand.u32 8388607, %v7514_v26 }
 0x120   : > { %v482_v51 = vmul.f32 %v480_v13, %v480_v13  ;;  %v5868_v31 = vsub.s32 32, %v523_v10  ;;  %v535_v1 = vshll.u32 %v7517_v42, %v523_v10  ;;  %v526_v35 = vshll.u32 %v7530_v36, %v523_v10 }
 0x121   : > { %vm914_vm4 = vc.u32 %v5861_v15, %v5853_v5  ;;  %v529_v37 = vshll.u32 %v7522_v38, %v523_v10  ;;  %v532_v52 = vshll.u32 %v7519_v40, %v523_v10  ;;  %vm544_vm6 = vcmp.lt.s32.totalorder %v5878_v50, 4 }
 0x122   : > { %v483_v6 = vmul.f32 -0.001358992, %v482_v51  ;;  %v490_v48 = vmul.f32 -0.00019511016, %v482_v51  ;;  %v916_v29 = vsel %vm914_vm4, %v915_v47, %v911_v57  ;;  %v536_v63 = vshrl.u32 %v7515_v44, %v5868_v31 }
 0x123   : > { %v917_v19 = vadd.s32 %v916_v29, %v912_v53  ;;  %v527_v9 = vshrl.u32 %v7522_v38, %v5868_v31  ;;  %v530_v54 = vshrl.u32 %v7519_v40, %v5868_v31  ;;  %v533_v41 = vshrl.u32 %v7517_v42, %v5868_v31 }
 0x124   : > { %v484_v49 = vadd.f32 0.041655596, %v483_v6  ;;  %v491_v22 = vadd.f32 0.008332121, %v490_v48  ;;  %v537_v45 = vor.u32 %v536_v63, %v535_v1  ;;  %v7587_v48 = vmov 1326507024  }
 0x125   : > { %v918_v12 = vadd.s32 536870912, %v917_v19  ;;  %v5893_v47 = vor.u32 %v527_v9, %v526_v35  ;;  %v5895_v6 = vor.u32 %v530_v54, %v529_v37  ;;  %v539_v29 = vshrl.u32 %v7587_v48, %v5868_v31 }
 0x126   : > { %v485_v8 = vmul.f32 %v484_v49, %v482_v51  ;;  %v492_v32 = vmul.f32 %v491_v22, %v482_v51  ;;  %v344_v49 = vpop.permute.xlu1 %343  ;;  %vm2191_vm8 = vcmp.eq.s32.totalorder %v2186_v20, 2  ;;  %v550_v63 = vsel %vm544_vm6, %v537_v45, 920167782 }
 0x127   : > { %v5874_v24 = vshrl.u32 %v918_v12, 30  ;;  %v538_v12 = vshll.u32 %v7515_v44, %v523_v10  ;;  %vm541_vm9 = vcmp.lt.s32.totalorder %v5878_v50, 1  ;;  %vm543_vm10 = vcmp.lt.s32.totalorder %v5878_v50, 3 }
 0x128   : > { %v486_v3 = vadd.f32 -0.4999988, %v485_v8  ;;  %v493_v0 = vadd.f32 -0.16666654, %v492_v32  ;;  %vm2187_vm12 = vcmp.lt.s32.totalorder %v2186_v20, 2  ;;  %v549_v1 = vsel %vm541_vm9, %v5893_v47, %v5895_v6 }
 0x129   : > { %v920_v23 = vshll.u32 %v5874_v24, 30  ;;  %vm542_vm14 = vcmp.lt.s32.totalorder %v5878_v50, 2  ;;  %v525_v26 = vshrl.u32 %v7530_v36, %v5868_v31  ;;  %vm821_vm1 = vcmp.lt.s32.totalorder %v5718_v34, 0 }
 0x12a   : > { %v487_v4 = vmul.f32 %v486_v3, %v482_v51  ;;  %v494_v14 = vmul.f32 %v493_v0, %v482_v51  ;;  %v5897_v51 = vor.u32 %v533_v41, %v532_v52  ;;  %v540_v41 = vor.u32 %v539_v29, %v538_v12 }
 0x12b   : > { %v921_v30 = vsub.s32 %v917_v19, %v920_v23  ;;  %v517_v19 = vor.u32 8388608, %v516_v60  ;;  %v913_v29 = vadd.s32 %v5853_v5, %v5861_v15  ;;  %v7620_v18 = vxor.u32 2147483648, %v5683_v7 }
 0x12c   : > { %v5891_v57 = vadd.f32 1.0, %v487_v4  ;;  %v495_v53 = vadd.f32 1.0, %v494_v14  ;;  %v551_v4 = vsel %vm543_vm10, %v5897_v51, %v550_v63  ;;  %v553_v52 = vsel %vm541_vm9, %v5895_v6, %v5897_v51 }
 0x12d   : > { %vm922_vm7 = vcmp.lt.s32.totalorder %v921_v30, 0  ;;  %v923_v32 = vsub.s32 0, %v921_v30  ;;  %v5929_v35 = vshll.u32 %v517_v19, 8  ;;  %v552_v37 = vsel %vm542_vm14, %v549_v1, %v551_v4 }
 0x12e   : > { %v5902_v22 = vmul.f32 %v495_v53, %v480_v13  ;;  %v7512_v8 = vxor.u32 2147483648, %v5891_v57  ;;  %v5913_v13 = vmul.f32 %v5359_v16, %v344_v49  ;;  %v554_v53 = vsel %vm544_vm6, %v540_v41, 1326507024 }
 0x12f   : > { %v924_v9 = vsel %vm922_vm7, %v923_v32, %v921_v30  ;;  %v555_v32 = vsel %vm543_vm10, %v537_v45, %v554_v53  ;;  %v582_v19 = vand.u32 65535, %v552_v37  ;;  %v583_v41 = vshrl.u32 %v552_v37, 16 }
 0x130   : > { %v7513_v3 = vxor.u32 2147483648, %v5902_v22  ;;  %v2193_v0 = vsel %vm2191_vm8, %v7512_v8, %v5902_v22  ;;  %v925_v54 = vclz %v924_v9  ;;  %v1442_v20 = vand.u32 2139095040, %v5913_v13 }
 0x131   : > { %v558_v9 = vand.u32 65535, %v5929_v35 }
 0x132   : > { %v2190_v10 = vsel %vm2188_vm5, %v5891_v57, %v7513_v3  ;;  %v5097_v23 = vadd.s32 4294967294, %v925_v54  ;;  %v559_v54 = vshrl.u32 %v5929_v35, 16  ;;  %v1443_v45 = vshrl.u32 %v1442_v20, 23 }
 0x133   : > { %v2194_v14 = vsel %vm2187_vm12, %v2190_v10, %v2193_v0  ;;  %v556_v0 = vsel %vm542_vm14, %v553_v52, %v555_v32  ;;  %v585_v52 = vmul.u32 %v583_v41, %v558_v9 }
 0x134   : > { %v5933_v60 = vsel %vm497_vm13, nan, %v2194_v14  ;;  %vm5098_vm0 = vcmp.lt.s32.totalorder %v5097_v23, 0  ;;  %v560_v10 = vand.u32 65535, %v556_v0  ;;  %v561_v1 = vshrl.u32 %v556_v0, 16 }
 0x135   : > { %7588 = vst [vmem:[#allocation8_spill] sm:$0xff] %v5933_v60  ;;  %v928_v49 = vsel %vm5098_vm0, 0, %v5097_v23  ;;  %v586_v8 = vmul.u32 %v582_v19, %v559_v54  ;;  %v584_v0 = vmul.u32 %v582_v19, %v558_v9  ;;  %v546_v19 = vsel %vm544_vm6, %v5897_v51, 2102212464 }
 0x136   : > { %v929_v12 = vsub.s32 32, %v928_v49  ;;  %v933_v63 = vsub.s32 4294967266, %v928_v49  ;;  %v930_v4 = vshll.u32 %v921_v30, %v928_v49  ;;  %v563_v15 = vmul.u32 %v561_v1, %v558_v9 }
 0x137   : > { %v564_v23 = vmul.u32 %v560_v10, %v559_v54  ;;  %v562_v32 = vmul.u32 %v560_v10, %v558_v9  ;;  %v565_v44 = vmul.u32 %v561_v1, %v559_v54  ;;  %v7589_v30 = vand.u32 2147483647, %v5718_v34 }
 0x138   : > { %v931_v14 = vshrl.u32 %v913_v29, %v929_v12  ;;  %v934_v5 = vadd.s32 127, %v933_v63  ;;  %v566_v42 = vshll.u32 %v563_v15, 16  ;;  %v587_v49 = vmul.u32 %v583_v41, %v559_v54 }
 0x139   : > { %vm5958_vm3 = vcmp.le.f32.partialorder %v7589_v30, 0.7853982  ;;  %v568_v20 = vshll.u32 %v564_v23, 16  ;;  %v588_v12 = vshll.u32 %v585_v52, 16  ;;  %v5108_v40 = vadd.s32 4294967169, %v1443_v45 }
 0x13a   : > { %v932_v53 = vor.u32 %v931_v14, %v930_v4  ;;  %v935_v3 = vshll.u32 %v934_v5, 23  ;;  %vm570_vm4 = vc.u32 %v562_v32, %v566_v42  ;;  %v572_v31 = vadd.s32 %v566_v42, %v562_v32 }
 0x13b   : > { %v590_v4 = vshll.u32 %v586_v8, 16  ;;  %v571_v10 = vsel %vm570_vm4, 1, %v7526_v2  ;;  %vm592_vm5 = vc.u32 %v584_v0, %v588_v12  ;;  %v594_v1 = vadd.s32 %v588_v12, %v584_v0 }
 0x13c   : > { %v936_v29 = vor.u32 4788187, %v935_v3  ;;  %v939_v63 = vcvt.s32.f32 %v932_v53  ;;  %v573_v9 = vadd.s32 %v571_v10, %v565_v44  ;;  %vm574_vm7 = vc.u32 %v572_v31, %v568_v20 }
 0x13d   : > { %v593_v3 = vsel %vm592_vm5, 1, %v7526_v2  ;;  %v575_v54 = vsel %vm574_vm7, 1, %v7526_v2  ;;  %vm596_vm8 = vc.u32 %v594_v1, %v590_v4  ;;  %v943_v42 = vsub.s32 4, %v5874_v24 }
 0x13e   : > { %v937_v14 = vand.u32 2147483647, %v936_v29  ;;  %v595_v41 = vadd.s32 %v593_v3, %v587_v49  ;;  %v567_v53 = vshrl.u32 %v563_v15, 16  ;;  %v577_v32 = vadd.s32 %v575_v54, %v573_v9 }
 0x13f   : > { %v597_v30 = vsel %vm596_vm8, 1, %v7526_v2  ;;  %v589_v29 = vshrl.u32 %v585_v52, 16  ;;  %v545_v44 = vsel %vm541_vm9, %v525_v26, %v5893_v47  ;;  %v547_v51 = vsel %vm543_vm10, %v5895_v6, %v546_v19 }
 0x140   : > { %v940_v5 = vmul.f32 %v939_v63, %v937_v14  ;;  %v599_v12 = vadd.s32 %v597_v30, %v595_v41  ;;  %v569_v20 = vshrl.u32 %v564_v23, 16  ;;  %v578_v49 = vadd.s32 %v577_v32, %v567_v53 }
 0x141   : > { %v591_v63 = vshrl.u32 %v586_v8, 16  ;;  %v1449_v14 = vadd.s32 1, %v5108_v40  ;;  %v944_v45 = vsel %vm821_vm1, %v943_v42, %v5874_v24  ;;  %v5986_v52 = vadd.s32 %v594_v1, %v590_v4 }
 0x142   : > { %v941_v0 = vxor.u32 2147483648, %v940_v5  ;;  %v600_v31 = vadd.s32 %v599_v12, %v589_v29  ;;  %v5984_v47 = vadd.s32 %v578_v49, %v569_v20  ;;  %v548_v23 = vsel %vm542_vm14, %v545_v44, %v547_v51 }
 0x143   : > { %vm1450_vm6 = vcmp.gt.s32.totalorder %v1449_v14, 0  ;;  %v7521_v40 = vand.u32 2147483647, %v5913_v13  ;;  %v5995_v8 = vsel %vm5958_vm3, 0, %v944_v45  ;;  %v602_v1 = vmul.u32 %v5929_v35, %v548_v23 }
 0x144   : > { %v942_v15 = vsel %vm821_vm1, %v941_v0, %v940_v5  ;;  %v601_v10 = vadd.s32 %v600_v31, %v591_v63  ;;  %vm604_vm9 = vc.u32 %v5984_v47, %v5986_v52  ;;  %v1451_v24 = vsel %vm1450_vm6, %v1449_v14, 0 }
 0x145   : > { %v945_v26 = vsel %vm5958_vm3, %v5718_v34, %v942_v15  ;;  %v1453_v54 = vand.u32 31, %v1451_v24  ;;  %v2648_v41 = vand.u32 3, %v5995_v8  ;;  %v1446_v30 = vand.u32 8388607, %v7521_v40 }
 0x146   : > { %v947_v6 = vmul.f32 %v945_v26, %v945_v26  ;;  %v605_v4 = vadd.s32 1, %v601_v10  ;;  %v6005_v49 = vshrl.u32 %v1451_v24, 5  ;;  %v7592_v14 = vmov 2131351028  }
 0x147   : > { %v6001_v12 = vsub.s32 32, %v1453_v54  ;;  %vm2650_vm10 = vcmp.eq.s32.totalorder %v2648_v41, 0  ;;  %vm2649_vm12 = vcmp.lt.s32.totalorder %v2648_v41, 2  ;;  %v1447_v20 = vor.u32 8388608, %v1446_v30 }
 0x148   : > { %v948_v19 = vmul.f32 -0.001358992, %v947_v6  ;;  %v955_v9 = vmul.f32 -0.00019511016, %v947_v6  ;;  %v606_v5 = vsel %vm604_vm9, %v605_v4, %v601_v10  ;;  %v1456_v63 = vshll.u32 %v7530_v36, %v1453_v54 }
 0x149   : > { %v607_v42 = vadd.s32 %v606_v5, %v602_v1  ;;  %v1459_v31 = vshll.u32 %v7522_v38, %v1453_v54  ;;  %v1462_v45 = vshll.u32 %v7592_v14, %v1453_v54  ;;  %v1460_v24 = vshrl.u32 %v7592_v14, %v6001_v12 }
 0x14a   : > { %v949_v3 = vadd.f32 0.041655596, %v948_v19  ;;  %v956_v50 = vadd.f32 0.008332121, %v955_v9  ;;  %v1457_v19 = vshrl.u32 %v7522_v38, %v6001_v12  ;;  %v7593_v9 = vmov 2102212464   ;;  %v339_v38 = vpop.permute.xlu0 %338 }
 0x14b   : > { %v608_v37 = vadd.s32 536870912, %v607_v42  ;;  %v1463_v1 = vshrl.u32 %v7593_v9, %v6001_v12  ;;  %v1469_v30 = vshrl.u32 %v7587_v48, %v6001_v12  ;;  %vm2653_vm14 = vcmp.eq.s32.totalorder %v2648_v41, 2 }
 0x14c   : > { %v950_v53 = vmul.f32 %v949_v3, %v947_v6  ;;  %v957_v32 = vmul.f32 %v956_v50, %v947_v6  ;;  %v7594_v3 = vmov 920167782   ;;  %vm1471_vm1 = vcmp.lt.s32.totalorder %v6005_v49, 1 }
 0x14d   : > { %v6003_v44 = vshrl.u32 %v608_v37, 30  ;;  %v1466_v50 = vshrl.u32 %v7594_v3, %v6001_v12  ;;  %v6028_v37 = vshll.u32 %v1447_v20, 8  ;;  %vm1474_vm3 = vcmp.lt.s32.totalorder %v6005_v49, 4 }
 0x14e   : > { %v951_v0 = vadd.f32 -0.4999988, %v950_v53  ;;  %v958_v29 = vadd.f32 -0.16666654, %v957_v32  ;;  %v1468_v32 = vshll.u32 %v7594_v3, %v1453_v54  ;;  %vm962_vm4 = vweird.f32 %v5718_v34 }
 0x14f   : > { %v610_v15 = vshll.u32 %v6003_v44, 30  ;;  %vm1473_vm5 = vcmp.lt.s32.totalorder %v6005_v49, 3  ;;  %vm1472_vm7 = vcmp.lt.s32.totalorder %v6005_v49, 2  ;;  %vm511_vm6 = vcmp.lt.s32.totalorder %v5789_v28, 0 }
 0x150   : > { %v952_v35 = vmul.f32 %v951_v0, %v947_v6  ;;  %v959_v51 = vmul.f32 %v958_v29, %v947_v6  ;;  %v1465_v6 = vshll.u32 %v7593_v9, %v1453_v54  ;;  %v6037_v54 = vor.u32 %v1460_v24, %v1459_v31 }
 0x151   : > { %v611_v4 = vsub.s32 %v607_v42, %v610_v15  ;;  %v1470_v40 = vor.u32 %v1469_v30, %v1468_v32  ;;  %v6062_v24 = vmul.f32 %v5359_v16, %v339_v38  ;;  %v1488_v32 = vand.u32 65535, %v6028_v37 }
 0x152   : > { %v6011_v23 = vadd.f32 1.0, %v952_v35  ;;  %v960_v10 = vadd.f32 1.0, %v959_v51  ;;  %v1464_v51 = vor.u32 %v1463_v1, %v1462_v45  ;;  %v1467_v15 = vor.u32 %v1466_v50, %v1465_v6 }
 0x153   : > { %vm612_vm0 = vcmp.lt.s32.totalorder %v611_v4, 0  ;;  %v613_v42 = vsub.s32 0, %v611_v4  ;;  %v1484_v50 = vsel %vm1474_vm3, %v1470_v40, 1326507024  ;;  %v603_v16 = vadd.s32 %v5986_v52, %v5984_v47 }
 0x154   : > { %v6022_v5 = vmul.f32 %v960_v10, %v945_v26  ;;  %v7524_v53 = vxor.u32 2147483648, %v6011_v23  ;;  %v6034_v26 = vor.u32 %v1457_v19, %v1456_v63  ;;  %v1480_v6 = vsel %vm1474_vm3, %v1467_v15, 920167782 }
 0x155   : > { %v614_v35 = vsel %vm612_vm0, %v613_v42, %v611_v4  ;;  %v1483_v41 = vsel %vm1471_vm1, %v6037_v54, %v1464_v51  ;;  %v1481_v1 = vsel %vm1473_vm5, %v1464_v51, %v1480_v6  ;;  %v7618_v34 = vxor.u32 2147483648, %v5592_v58 }
 0x156   : > { %v7525_v0 = vxor.u32 2147483648, %v6022_v5  ;;  %v2655_v29 = vsel %vm2653_vm14, %v7524_v53, %v6022_v5  ;;  %v615_v10 = vclz %v614_v35  ;;  %v1479_v19 = vsel %vm1471_vm1, %v6034_v26, %v6037_v54 }
 0x157   : > { %v1482_v42 = vsel %vm1472_vm7, %v1479_v19, %v1481_v1  ;;  %v1489_v35 = vshrl.u32 %v6028_v37, 16  ;;  %v1476_v1 = vsel %vm1474_vm3, %v1464_v51, 2102212464 }
 0x158   : > { %v2652_v20 = vsel %vm2650_vm10, %v6011_v23, %v7525_v0  ;;  %v5091_v45 = vadd.s32 4294967294, %v615_v10  ;;  %v1512_v6 = vand.u32 65535, %v1482_v42 }
 0x159   : > { %v2656_v63 = vsel %vm2649_vm12, %v2652_v20, %v2655_v29  ;;  %v1485_v29 = vsel %vm1473_vm5, %v1467_v15, %v1484_v50  ;;  %v1455_v15 = vshrl.u32 %v7530_v36, %v6001_v12 }
 0x15a   : > { %v6049_v31 = vsel %vm962_vm4, nan, %v2656_v63  ;;  %vm5092_vm8 = vcmp.lt.s32.totalorder %v5091_v45, 0  ;;  %v1486_v10 = vsel %vm1472_vm7, %v1483_v41, %v1485_v29  ;;  %v1287_v41 = vand.u32 2139095040, %v6062_v24 }
 0x15b   : > { %7595 = vst [vmem:[#allocation9_spill] sm:$0xff] %v6049_v31  ;;  %v618_v30 = vsel %vm5092_vm8, 0, %v5091_v45  ;;  %v1490_v40 = vand.u32 65535, %v1486_v10  ;;  %v1491_v63 = vshrl.u32 %v1486_v10, 16  ;;  %v1513_v45 = vshrl.u32 %v1482_v42, 16 }
 0x15c   : > { %v619_v38 = vsub.s32 32, %v618_v30  ;;  %v623_v20 = vsub.s32 4294967266, %v618_v30  ;;  %v620_v53 = vshll.u32 %v611_v4, %v618_v30  ;;  %v1514_v29 = vmul.u32 %v1512_v6, %v1488_v32 }
 0x15d   : > { %v1492_v50 = vmul.u32 %v1490_v40, %v1488_v32  ;;  %v1493_v47 = vmul.u32 %v1491_v63, %v1488_v32  ;;  %v1494_v52 = vmul.u32 %v1490_v40, %v1489_v35  ;;  %v1515_v39 = vmul.u32 %v1513_v45, %v1488_v32 }
 0x15e   : > { %v621_v0 = vshrl.u32 %v603_v16, %v619_v38  ;;  %v624_v19 = vadd.s32 127, %v623_v20  ;;  %v1495_v42 = vmul.u32 %v1491_v63, %v1489_v35  ;;  %v7596_v16 = vand.u32 2147483647, %v5789_v28 }
 0x15f   : > { %v1496_v4 = vshll.u32 %v1493_v47, 16  ;;  %v1498_v30 = vshll.u32 %v1494_v52, 16  ;;  %v1497_v38 = vshrl.u32 %v1493_v47, 16  ;;  %v1499_v20 = vshrl.u32 %v1494_v52, 16 }
 0x160   : > { %v622_v2 = vor.u32 %v621_v0, %v620_v53  ;;  %v625_v61 = vshll.u32 %v624_v19, 23  ;;  %vm6086_vm9 = vcmp.le.f32.partialorder %v7596_v16, 0.7853982  ;;  %v1516_v53 = vmul.u32 %v1512_v6, %v1489_v35 }
 0x161   : > { %vm1500_vm10 = vc.u32 %v1492_v50, %v1496_v4  ;;  %v1502_v0 = vadd.s32 %v1496_v4, %v1492_v50  ;;  %v1517_v10 = vmul.u32 %v1513_v45, %v1489_v35  ;;  %v1518_v40 = vshll.u32 %v1515_v39, 16 }
 0x162   : > { %v626_v51 = vor.u32 4788187, %v625_v61  ;;  %v629_v36 = vcvt.s32.f32 %v622_v2  ;;  %v7599_v63 = vmov 0   ;;  %v1520_v21 = vshll.u32 %v1516_v53, 16 }
 0x163   : > { %v1501_v31 = vsel %vm1500_vm10, 1, %v7599_v63  ;;  %vm1504_vm12 = vc.u32 %v1502_v0, %v1498_v30  ;;  %vm1522_vm14 = vc.u32 %v1514_v29, %v1518_v40  ;;  %v1524_v16 = vadd.s32 %v1518_v40, %v1514_v29 }
 0x164   : > { %v627_v19 = vand.u32 2147483647, %v626_v51  ;;  %v1503_v32 = vadd.s32 %v1501_v31, %v1495_v42  ;;  %v1505_v27 = vsel %vm1504_vm12, 1, %v7599_v63  ;;  %v1523_v61 = vsel %vm1522_vm14, 1, %v7599_v63 }
 0x165   : > { %v1288_v47 = vshrl.u32 %v1287_v41, 23  ;;  %v1519_v52 = vshrl.u32 %v1515_v39, 16  ;;  %v1525_v50 = vadd.s32 %v1523_v61, %v1517_v10  ;;  %vm1526_vm0 = vc.u32 %v1524_v16, %v1520_v21 }
 0x166   : > { %v630_v60 = vmul.f32 %v629_v36, %v627_v19  ;;  %v1507_v6 = vadd.s32 %v1505_v27, %v1503_v32  ;;  %v633_v2 = vsub.s32 4, %v6003_v44  ;;  %v1527_v45 = vsel %vm1526_vm0, 1, %v7599_v63 }
 0x167   : > { %v5105_v4 = vadd.s32 4294967169, %v1288_v47  ;;  %v1475_v31 = vsel %vm1471_vm1, %v1455_v15, %v6034_v26  ;;  %v1521_v42 = vshrl.u32 %v1516_v53, 16  ;;  %v1529_v30 = vadd.s32 %v1527_v45, %v1525_v50 }
 0x168   : > { %v631_v35 = vxor.u32 2147483648, %v630_v60  ;;  %v1508_v36 = vadd.s32 %v1507_v6, %v1497_v38  ;;  %v1477_v27 = vsel %vm1473_vm5, %v6037_v54, %v1476_v1  ;;  %v6103_v39 = vadd.s32 %v1524_v16, %v1520_v21 }
 0x169   : > { %v1294_v29 = vadd.s32 1, %v5105_v4  ;;  %v1530_v26 = vadd.s32 %v1529_v30, %v1519_v52  ;;  %v634_v15 = vsel %vm511_vm6, %v633_v2, %v6003_v44  ;;  %v7536_v61 = vand.u32 2147483647, %v6062_v24 }
 0x16a   : > { %v632_v41 = vsel %vm511_vm6, %v631_v35, %v630_v60  ;;  %v6108_v0 = vadd.s32 %v1508_v36, %v1499_v20  ;;  %v1478_v60 = vsel %vm1472_vm7, %v1475_v31, %v1477_v27  ;;  %v6119_v20 = vsel %vm6086_vm9, 0, %v634_v15 }
 0x16b   : > { %v635_v51 = vsel %vm6086_vm9, %v5789_v28, %v632_v41  ;;  %vm1295_vm1 = vcmp.gt.s32.totalorder %v1294_v29, 0  ;;  %v1531_v54 = vadd.s32 %v1530_v26, %v1521_v42  ;;  %v1532_v32 = vmul.u32 %v6028_v37, %v1478_v60 }
 0x16c   : > { %v637_v38 = vmul.f32 %v635_v51, %v635_v51  ;;  %v1296_v21 = vsel %vm1295_vm1, %v1294_v29, 0  ;;  %vm1534_vm3 = vc.u32 %v6108_v0, %v6103_v39  ;;  %v2340_v50 = vand.u32 3, %v6119_v20 }
 0x16d   : > { %v1298_v10 = vand.u32 31, %v1296_v21  ;;  %v1535_v40 = vadd.s32 1, %v1531_v54  ;;  %v1291_v4 = vand.u32 8388607, %v7536_v61  ;;  %v6130_v37 = vshrl.u32 %v1296_v21, 5 }
 0x16e   : > { %v638_v1 = vmul.f32 -0.001358992, %v637_v38  ;;  %v645_v53 = vmul.f32 -0.00019511016, %v637_v38  ;;  %v7600_v31 = vmov 2475754826   ;;  %vm652_vm5 = vweird.f32 %v5789_v28 }
 0x16f   : > { %v6122_v16 = vsub.s32 32, %v1298_v10  ;;  %v1536_v49 = vsel %vm1534_vm3, %v1535_v40, %v1531_v54  ;;  %v1310_v42 = vshll.u32 %v7593_v9, %v1298_v10  ;;  %v7601_v26 = vmov 683565275  }
 0x170   : > { %v639_v19 = vadd.f32 0.041655596, %v638_v1  ;;  %v646_v44 = vadd.f32 0.008332121, %v645_v53  ;;  %v1537_v52 = vadd.s32 %v1536_v49, %v1532_v32  ;;  %v1301_v15 = vshll.u32 %v7601_v26, %v1298_v10 }
 0x171   : > { %v1311_v45 = vshrl.u32 %v7594_v3, %v6122_v16  ;;  %v1302_v36 = vshrl.u32 %v7600_v31, %v6122_v16  ;;  %v1305_v29 = vshrl.u32 %v7592_v14, %v6122_v16  ;;  %v1304_v60 = vshll.u32 %v7600_v31, %v1298_v10 }
 0x172   : > { %v640_v47 = vmul.f32 %v639_v19, %v637_v38  ;;  %v647_v6 = vmul.f32 %v646_v44, %v637_v38  ;;  %v1538_v12 = vadd.s32 536870912, %v1537_v52  ;;  %v1308_v54 = vshrl.u32 %v7593_v9, %v6122_v16 }
 0x173   : > { %v1314_v21 = vshrl.u32 %v7587_v48, %v6122_v16  ;;  %v1312_v40 = vor.u32 %v1311_v45, %v1310_v42  ;;  %v1292_v19 = vor.u32 8388608, %v1291_v4  ;;  %v6149_v44 = vor.u32 %v1302_v36, %v1301_v15 }
 0x174   : > { %v641_v35 = vadd.f32 -0.4999988, %v640_v47  ;;  %v648_v2 = vadd.f32 -0.16666654, %v647_v6  ;;  %v6135_v27 = vshrl.u32 %v1538_v12, 30  ;;  %v1307_v32 = vshll.u32 %v7592_v14, %v1298_v10 }
 0x175   : > { %v1313_v49 = vshll.u32 %v7594_v3, %v1298_v10  ;;  %vm2345_vm7 = vcmp.eq.s32.totalorder %v2340_v50, 2  ;;  %vm1319_vm8 = vcmp.lt.s32.totalorder %v6130_v37, 4  ;;  %vm2341_vm9 = vcmp.lt.s32.totalorder %v2340_v50, 2 }
 0x176   : > { %v642_v30 = vmul.f32 %v641_v35, %v637_v38  ;;  %v649_v41 = vmul.f32 %v648_v2, %v637_v38  ;;  %v1540_v53 = vshll.u32 %v6135_v27, 30  ;;  %v6156_v35 = vor.u32 %v1305_v29, %v1304_v60 }
 0x177   : > { %v1309_v48 = vor.u32 %v1308_v54, %v1307_v32  ;;  %v1315_v2 = vor.u32 %v1314_v21, %v1313_v49  ;;  %v1325_v3 = vsel %vm1319_vm8, %v1312_v40, 920167782  ;;  %vm2342_vm10 = vcmp.eq.s32.totalorder %v2340_v50, 0 }
 0x178   : > { %v6146_v1 = vadd.f32 1.0, %v642_v30  ;;  %v650_v38 = vadd.f32 1.0, %v649_v41  ;;  %v1541_v6 = vsub.s32 %v1537_v52, %v1540_v53  ;;  %vm1316_vm12 = vcmp.lt.s32.totalorder %v6130_v37, 1 }
 0x179   : > { %vm1318_vm14 = vcmp.lt.s32.totalorder %v6130_v37, 3  ;;  %v1324_v52 = vsel %vm1316_vm12, %v6149_v44, %v6156_v35  ;;  %v6174_v45 = vshll.u32 %v1292_v19, 8  ;;  %v1329_v36 = vsel %vm1319_vm8, %v1315_v2, 1326507024 }
 0x17a   : > { %v6153_v47 = vmul.f32 %v650_v38, %v635_v51  ;;  %v7537_v9 = vxor.u32 2147483648, %v6146_v1  ;;  %vm1542_vm6 = vcmp.lt.s32.totalorder %v1541_v6, 0  ;;  %v1543_v51 = vsub.s32 0, %v1541_v6 }
 0x17b   : > { %v1326_v50 = vsel %vm1318_vm14, %v1309_v48, %v1325_v3  ;;  %v1328_v41 = vsel %vm1316_vm12, %v6156_v35, %v1309_v48  ;;  %vm1317_vm0 = vcmp.lt.s32.totalorder %v6130_v37, 2  ;;  %v1330_v60 = vsel %vm1318_vm14, %v1312_v40, %v1329_v36 }
 0x17c   : > { %v7538_v12 = vxor.u32 2147483648, %v6153_v47  ;;  %v2347_v14 = vsel %vm2345_vm7, %v7537_v9, %v6153_v47  ;;  %v1544_v31 = vsel %vm1542_vm6, %v1543_v51, %v1541_v6  ;;  %v1327_v15 = vsel %vm1317_vm0, %v1324_v52, %v1326_v50 }
 0x17d   : > { %v1545_v30 = vclz %v1544_v31  ;;  %v1331_v54 = vsel %vm1317_vm0, %v1328_v41, %v1330_v60  ;;  %v1333_v21 = vand.u32 65535, %v6174_v45  ;;  %v1357_v38 = vand.u32 65535, %v1327_v15 }
 0x17e   : > { %v2344_v10 = vsel %vm2342_vm10, %v6146_v1, %v7538_v12  ;;  %v1358_v53 = vshrl.u32 %v1327_v15, 16  ;;  %v1334_v19 = vshrl.u32 %v6174_v45, 16  ;;  %v1335_v32 = vand.u32 65535, %v1331_v54 }
 0x17f   : > { %v2348_v4 = vsel %vm2341_vm9, %v2344_v10, %v2347_v14  ;;  %v5109_v29 = vadd.s32 4294967294, %v1545_v30  ;;  %v1336_v49 = vshrl.u32 %v1331_v54, 16  ;;  %v1533_v3 = vadd.s32 %v6103_v39, %v6108_v0 }
 0x180   : > { %v6182_v42 = vsel %vm652_vm5, nan, %v2348_v4  ;;  %v1360_v14 = vmul.u32 %v1358_v53, %v1333_v21  ;;  %v1361_v40 = vmul.u32 %v1357_v38, %v1334_v19  ;;  %v1300_v52 = vshrl.u32 %v7601_v26, %v6122_v16 }
 0x181   : > { %7602 = vst [vmem:[#allocation10_spill] sm:$0xff] %v6182_v42  ;;  %vm5110_vm1 = vcmp.lt.s32.totalorder %v5109_v29, 0  ;;  %v1338_v4 = vmul.u32 %v1336_v49, %v1333_v21  ;;  %v1339_v31 = vmul.u32 %v1335_v32, %v1334_v19  ;;  %v1359_v50 = vmul.u32 %v1357_v38, %v1333_v21 }
 0x182   : > { %v1548_v2 = vsel %vm5110_vm1, 0, %v5109_v29  ;;  %v1363_v15 = vshll.u32 %v1360_v14, 16  ;;  %v1337_v60 = vmul.u32 %v1335_v32, %v1333_v21  ;;  %v1340_v54 = vmul.u32 %v1336_v49, %v1334_v19 }
 0x183   : > { %v1549_v51 = vsub.s32 32, %v1548_v2  ;;  %v1553_v10 = vsub.s32 4294967266, %v1548_v2  ;;  %v1550_v36 = vshll.u32 %v1541_v6, %v1548_v2  ;;  %v1341_v29 = vshll.u32 %v1338_v4, 16 }
 0x184   : > { %v1362_v61 = vmul.u32 %v1358_v53, %v1334_v19  ;;  %v1343_v39 = vshll.u32 %v1339_v31, 16  ;;  %v1365_v0 = vshll.u32 %v1361_v40, 16  ;;  %vm1367_vm7 = vc.u32 %v1359_v50, %v1363_v15 }
 0x185   : > { %v1551_v30 = vshrl.u32 %v1533_v3, %v1549_v51  ;;  %v1554_v41 = vadd.s32 127, %v1553_v10  ;;  %vm1345_vm3 = vc.u32 %v1337_v60, %v1341_v29  ;;  %v1347_v42 = vadd.s32 %v1341_v29, %v1337_v60 }
 0x186   : > { %v1369_v43 = vadd.s32 %v1363_v15, %v1359_v50  ;;  %v1321_v26 = vsel %vm1319_vm8, %v1309_v48, 2102212464  ;;  %v1346_v6 = vsel %vm1345_vm3, 1, %v7599_v63  ;;  %v1368_v38 = vsel %vm1367_vm7, 1, %v7599_v63 }
 0x187   : > { %v1552_v9 = vor.u32 %v1551_v30, %v1550_v36  ;;  %v1555_v12 = vshll.u32 %v1554_v41, 23  ;;  %v1348_v21 = vadd.s32 %v1346_v6, %v1340_v54  ;;  %vm1349_vm6 = vc.u32 %v1347_v42, %v1343_v39 }
 0x188   : > { %v1370_v32 = vadd.s32 %v1368_v38, %v1362_v61  ;;  %vm1371_vm9 = vc.u32 %v1369_v43, %v1365_v0  ;;  %v1350_v49 = vsel %vm1349_vm6, 1, %v7599_v63  ;;  %v1342_v3 = vshrl.u32 %v1338_v4, 16 }
 0x189   : > { %v1556_v16 = vor.u32 4788187, %v1555_v12  ;;  %v1559_v19 = vcvt.s32.f32 %v1552_v9  ;;  %v1372_v2 = vsel %vm1371_vm9, 1, %v7599_v63  ;;  %v1352_v51 = vadd.s32 %v1350_v49, %v1348_v21 }
 0x18a   : > { %v1364_v12 = vshrl.u32 %v1360_v14, 16  ;;  %v1374_v10 = vadd.s32 %v1372_v2, %v1370_v32  ;;  %v498_v48 = vadd.s32 3, %v5866_v25  ;;  %v1320_v36 = vsel %vm1316_vm12, %v1300_v52, %v6149_v44 }
 0x18b   : > { %v1557_v53 = vand.u32 2147483647, %v1556_v16  ;;  %v1322_v61 = vsel %vm1318_vm14, %v6156_v35, %v1321_v26  ;;  %v1344_v9 = vshrl.u32 %v1339_v31, 16  ;;  %v1353_v42 = vadd.s32 %v1352_v51, %v1342_v3 }
 0x18c   : > { %v1366_v30 = vshrl.u32 %v1361_v40, 16  ;;  %v1375_v41 = vadd.s32 %v1374_v10, %v1364_v12  ;;  %vm1441_vm8 = vcmp.lt.s32.totalorder %v5913_v13, 0  ;;  %v1323_v14 = vsel %vm1317_vm0, %v1320_v36, %v1322_v61 }
 0x18d   : > { %v1560_v50 = vmul.f32 %v1559_v19, %v1557_v53  ;;  %v6216_v25 = vadd.s32 %v1353_v42, %v1344_v9  ;;  %v6218_v4 = vadd.s32 %v1369_v43, %v1365_v0  ;;  %v499_v44 = vand.u32 3, %v498_v48 }
 0x18e   : > { %v1376_v15 = vadd.s32 %v1375_v41, %v1366_v30  ;;  %v7603_v52 = vand.u32 2147483647, %v5913_v13  ;;  %v1377_v60 = vmul.u32 %v6174_v45, %v1323_v14  ;;  %v1563_v54 = vsub.s32 4, %v6135_v27 }
 0x18f   : > { %v1561_v63 = vxor.u32 2147483648, %v1560_v50  ;;  %vm1379_vm12 = vc.u32 %v6216_v25, %v6218_v4  ;;  %vm501_vm14 = vcmp.eq.s32.totalorder %v499_v44, 0  ;;  %v7606_v26 = vxor.u32 2147483648, %v5902_v22 }
 0x190   : > { %vm6222_vm10 = vcmp.le.f32.partialorder %v7603_v52, 0.7853982  ;;  %v1380_v43 = vadd.s32 1, %v1376_v15  ;;  %v7607_v53 = vlaneseq  ;;  %vm500_vm0 = vcmp.lt.s32.totalorder %v499_v44, 2 }
 0x191   : > { %v1562_v40 = vsel %vm1441_vm8, %v1561_v63, %v1560_v50  ;;  %v503_v6 = vsel %vm501_vm14, %v5891_v57, %v7606_v26  ;;  %vm504_vm1 = vcmp.eq.s32.totalorder %v499_v44, 2  ;;  %v1564_v45 = vsel %vm1441_vm8, %v1563_v54, %v6135_v27 }
 0x192   : > { %v1565_v37 = vsel %vm6222_vm10, %v5913_v13, %v1562_v40  ;;  %v1381_v29 = vsel %vm1379_vm12, %v1380_v43, %v1376_v15  ;;  %v1596_v19 = vshrl.u32 %v7607_v53, 7  ;;  %v7608_v49 = vxor.u32 2147483648, %v5891_v57 }
 0x193   : > { %v1567_v31 = vmul.f32 %v1565_v37, %v1565_v37  ;;  %v1382_v16 = vadd.s32 %v1381_v29, %v1377_v60  ;;  %v6249_v48 = vsel %vm6222_vm10, 0, %v1564_v45  ;;  %v653_v42 = vadd.s32 3, %v6119_v20 }
 0x194   : > { %v506_v2 = vsel %vm504_vm1, %v7608_v49, %v5902_v22  ;;  %5239 = vset.pattern.permute.xlu1 %v1596_v19  ;;  %5238 = vset.pattern.permute.xlu0 %v1596_v19  ;;  %v3264_v30 = vand.u32 3, %v6249_v48  ;;  %vm1582_vm6 = vweird.f32 %v5913_v13  ;;  %v1378_v26 = vadd.s32 %v6218_v4, %v6216_v25 }
 0x195   : > { %v1568_v39 = vmul.f32 -0.001358992, %v1567_v31  ;;  %v1575_v0 = vmul.f32 -0.00019511016, %v1567_v31  ;;  %v1383_v32 = vadd.s32 536870912, %v1382_v16  ;;  %v507_v10 = vsel %vm500_vm0, %v503_v6, %v506_v2  ;;  %5237 = vset.pattern.permute.xlu2 %v1596_v19 }
 0x196   : > { %v6254_v57 = vsel %vm497_vm13, nan, %v507_v10  ;;  %v654_v43 = vand.u32 3, %v653_v42  ;;  %vm3269_vm13 = vcmp.eq.s32.totalorder %v3264_v30, 2  ;;  %vm3266_vm7 = vcmp.eq.s32.totalorder %v3264_v30, 0 }
 0x197   : > { %v1569_v38 = vadd.f32 0.041655596, %v1568_v39  ;;  %v1576_v21 = vadd.f32 0.008332121, %v1575_v0  ;;  %v6245_v12 = vshrl.u32 %v1383_v32, 30  ;;  %v1608_v15 = vperm.slane %v6254_v57, 2 }
 0x198   : > { %v1601_v44 = vperm.slane %v6254_v57, 1  ;;  %v1594_v40 = vperm.slane %v6254_v57, 0  ;;  %vm3265_vm9 = vcmp.lt.s32.totalorder %v3264_v30, 2  ;;  %vm656_vm8 = vcmp.eq.s32.totalorder %v654_v43, 0 }
 0x199   : > { %v1570_v3 = vmul.f32 %v1569_v38, %v1567_v31  ;;  %v1577_v51 = vmul.f32 %v1576_v21, %v1567_v31  ;;  %v1385_v27 = vshll.u32 %v6245_v12, 30  ;;  %vm659_vm10 = vcmp.eq.s32.totalorder %v654_v43, 2 }
 0x19a   : > { %v7609_v39 = vxor.u32 2147483648, %v6153_v47  ;;  %v1622_v32 = vperm.slane %v6254_v57, 4  ;;  %v1636_v53 = vperm.slane %v6254_v57, 6  ;;  %vm655_vm14 = vcmp.lt.s32.totalorder %v654_v43, 2 }
 0x19b   : > { %v1571_v50 = vadd.f32 -0.4999988, %v1570_v3  ;;  %v1578_v36 = vadd.f32 -0.16666654, %v1577_v51  ;;  %v1386_v9 = vsub.s32 %v1382_v16, %v1385_v27  ;;  %v7610_v19 = vxor.u32 2147483648, %v6146_v1 }
 0x19c   : > { %1613 = vperm.xlu1 %5239, %v1608_v15   ;;  %1606 = vperm.xlu0 %5238, %v1601_v44   ;;  %v658_v0 = vsel %vm656_vm8, %v6146_v1, %v7609_v39  ;;  %v1615_v49 = vperm.slane %v6254_v57, 3  ;;  %v1643_v1 = vperm.slane %v6254_v57, 7  ;;  %vm1286_vm0 = vcmp.lt.s32.totalorder %v6062_v24, 0 }
 0x19d   : > { %v1572_v22 = vmul.f32 %v1571_v50, %v1567_v31  ;;  %v1579_v61 = vmul.f32 %v1578_v36, %v1567_v31  ;;  %vm1387_vm3 = vcmp.lt.s32.totalorder %v1386_v9, 0  ;;  %v1388_v14 = vsub.s32 0, %v1386_v9  ;;  %1599 = vperm.xlu2 %5237, %v1594_v40  }
 0x19e   : > { %v661_v45 = vsel %vm659_vm10, %v7610_v19, %v6153_v47  ;;  %v808_v28 = vadd.s32 3, %v5768_v17  ;;  %v7611_v30 = vand.u32 2147483647, %v6062_v24  ;;  %v1408_v15 = vsub.s32 4, %v6245_v12 }
 0x19f   : > { %v6258_v41 = vadd.f32 1.0, %v1572_v22  ;;  %v1580_v63 = vadd.f32 1.0, %v1579_v61  ;;  %v1389_v35 = vsel %vm1387_vm3, %v1388_v14, %v1386_v9  ;;  %v662_v2 = vsel %vm655_vm14, %v658_v0, %v661_v45 }
 0x1a0   : > { %v1390_v20 = vclz %v1389_v35  ;;  %v6291_v50 = vsel %vm652_vm5, nan, %v662_v2  ;;  %v1629_v61 = vperm.slane %v6254_v57, 5  ;;  %vm6300_vm5 = vcmp.le.f32.partialorder %v7611_v30, 0.7853982 }
 0x1a1   : > { %v6262_v52 = vmul.f32 %v1580_v63, %v1565_v37  ;;  %v1590_v33 = vxor.u32 2147483648, %v6258_v41  ;;  %v1657_v47 = vperm.slane %v6291_v50, 1  ;;  %v1664_v35 = vperm.slane %v6291_v50, 2 }
 0x1a2   : > { %v5106_v37 = vadd.s32 4294967294, %v1390_v20  ;;  %v1678_v17 = vperm.slane %v6291_v50, 4  ;;  %v1650_v40 = vperm.slane %v6291_v50, 0  ;;  %v809_v43 = vand.u32 3, %v808_v28 }
 0x1a3   : > { %v1587_v31 = vxor.u32 2147483648, %v6262_v52  ;;  %v3271_v60 = vsel %vm3269_vm13, %v1590_v33, %v6262_v52  ;;  %v7615_v19 = vxor.u32 2147483648, %v5791_v56  ;;  %vm1427_vm8 = vweird.f32 %v6062_v24 }
 0x1a4   : > { %vm5107_vm12 = vcmp.lt.s32.totalorder %v5106_v37, 0  ;;  %1627 = vperm.xlu1 %5239, %v1622_v32   ;;  %1641 = vperm.xlu0 %5238, %v1636_v53   ;;  %vm811_vm1 = vcmp.eq.s32.totalorder %v809_v43, 0  ;;  %vm814_vm3 = vcmp.eq.s32.totalorder %v809_v43, 2  ;;  %v1685_v53 = vperm.slane %v6291_v50, 5 }
 0x1a5   : > { %v3268_v54 = vsel %vm3266_vm7, %v6258_v41, %v1587_v31  ;;  %v1393_v6 = vsel %vm5107_vm12, 0, %v5106_v37  ;;  %1620 = vperm.xlu2 %5237, %v1615_v49   ;;  %v1409_v37 = vsel %vm1286_vm0, %v1408_v15, %v6245_v12  ;;  %v1699_v12 = vperm.slane %v6291_v50, 7 }
 0x1a6   : > { %v3272_v29 = vsel %vm3265_vm9, %v3268_v54, %v3271_v60  ;;  %v1394_v38 = vsub.s32 32, %v1393_v6  ;;  %v1398_v21 = vsub.s32 4294967266, %v1393_v6  ;;  %v1395_v3 = vshll.u32 %v1386_v9, %v1393_v6 }
 0x1a7   : > { %v6279_v16 = vsel %vm1582_vm6, nan, %v3272_v29  ;;  %vm810_vm13 = vcmp.lt.s32.totalorder %v809_v43, 2  ;;  %v816_v45 = vsel %vm814_vm3, %v7615_v19, %v5796_v46  ;;  %v1671_v49 = vperm.slane %v6291_v50, 3 }
 0x1a8   : > { %v1396_v51 = vshrl.u32 %v1378_v26, %v1394_v38  ;;  %v1399_v10 = vadd.s32 127, %v1398_v21  ;;  %v7614_v26 = vxor.u32 2147483648, %v5796_v46  ;;  %v6321_v38 = vsel %vm6300_vm5, 0, %v1409_v37 }
 0x1a9   : > { %v7616_v30 = vxor.u32 2147483648, %v6022_v5 }
 0x1aa   : > { %v1397_v25 = vor.u32 %v1396_v51, %v1395_v3  ;;  %v1400_v4 = vshll.u32 %v1399_v10, 23  ;;  %v813_v6 = vsel %vm811_vm1, %v5791_v56, %v7614_v26  ;;  %v3110_v10 = vand.u32 3, %v6321_v38 }
 0x1ab   : > { %v817_v2 = vsel %vm810_vm13, %v813_v6, %v816_v45  ;;  %v1273_v45 = vadd.s32 3, %v5653_v11 }
 0x1ac   : > { %v1401_v36 = vor.u32 4788187, %v1400_v4  ;;  %v1404_v22 = vcvt.s32.f32 %v1397_v25  ;;  %1648 = vperm.xlu1 %5239, %v1643_v1   ;;  %1662 = vperm.xlu0 %5238, %v1657_v47   ;;  %vm3115_vm7 = vcmp.eq.s32.totalorder %v3110_v10, 2  ;;  %vm3112_vm9 = vcmp.eq.s32.totalorder %v3110_v10, 0 }
 0x1ad   : > { %1634 = vperm.xlu2 %5237, %v1629_v61  }
 0x1ae   : > { %v1402_v27 = vand.u32 2147483647, %v1401_v36  ;;  %v818_v36 = vsel %vm807_vm2, nan, %v817_v2  ;;  %vm3111_vm2 = vcmp.lt.s32.totalorder %v3110_v10, 2 }
 0x1af   : > { %v1706_v47 = vperm.slane %v818_v36, 0  ;;  %v1720_v61 = vperm.slane %v818_v36, 2  ;;  %v1727_v63 = vperm.slane %v818_v36, 3 }
 0x1b0   : > { %v1405_v9 = vmul.f32 %v1404_v22, %v1402_v27  ;;  %v963_v27 = vadd.s32 3, %v5995_v8 }
 0x1b2   : > { %v1406_v42 = vxor.u32 2147483648, %v1405_v9  ;;  %v964_v59 = vand.u32 3, %v963_v27 }
 0x1b4   : > { %v1407_v14 = vsel %vm1286_vm0, %v1406_v42, %v1405_v9  ;;  %1669 = vperm.xlu1 %5239, %v1664_v35   ;;  %1683 = vperm.xlu0 %5238, %v1678_v17   ;;  %v1692_v9 = vperm.slane %v6291_v50, 6  ;;  %vm966_vm10 = vcmp.eq.s32.totalorder %v964_v59, 0  ;;  %vm969_vm12 = vcmp.eq.s32.totalorder %v964_v59, 2 }
 0x1b5   : > { %v1410_v57 = vsel %vm6300_vm5, %v6062_v24, %v1407_v14  ;;  %1655 = vperm.xlu2 %5237, %v1650_v40   ;;  %v968_v50 = vsel %vm966_vm10, %v6011_v23, %v7616_v30  ;;  %v1741_v14 = vperm.slane %v818_v36, 5  ;;  %vm965_vm14 = vcmp.lt.s32.totalorder %v964_v59, 2 }
 0x1b6   : > { %v1412_v44 = vmul.f32 %v1410_v57, %v1410_v57  ;;  %v1748_v40 = vperm.slane %v818_v36, 6 }
 0x1b8   : > { %v1413_v20 = vmul.f32 -0.001358992, %v1412_v44  ;;  %v1420_v60 = vmul.f32 -0.00019511016, %v1412_v44 }
 0x1ba   : > { %v1414_v54 = vadd.f32 0.041655596, %v1413_v20  ;;  %v1421_v29 = vadd.f32 0.008332121, %v1420_v60  ;;  %v1734_v20 = vperm.slane %v818_v36, 4  ;;  %v1118_v60 = vadd.s32 3, %v5544_v55 }
 0x1bc   : > { %v1415_v39 = vmul.f32 %v1414_v54, %v1412_v44  ;;  %v1422_v0 = vmul.f32 %v1421_v29, %v1412_v44  ;;  %1690 = vperm.xlu1 %5239, %v1685_v53   ;;  %1704 = vperm.xlu0 %5238, %v1699_v12   ;;  %v1119_v37 = vand.u32 3, %v1118_v60 }
 0x1bd   : > { %1676 = vperm.xlu2 %5237, %v1671_v49  }
 0x1be   : > { %v1416_v21 = vadd.f32 -0.4999988, %v1415_v39  ;;  %v1423_v32 = vadd.f32 -0.16666654, %v1422_v0  ;;  %vm1121_vm0 = vcmp.eq.s32.totalorder %v1119_v37, 0  ;;  %vm1124_vm5 = vcmp.eq.s32.totalorder %v1119_v37, 2 }
 0x1bf   : > { %vm1120_vm1 = vcmp.lt.s32.totalorder %v1119_v37, 2  ;;  %v1123_v29 = vsel %vm1121_vm0, %v5589_v62, %v7618_v34  ;;  %v7619_v39 = vxor.u32 2147483648, %v5589_v62  ;;  %v1274_v62 = vand.u32 3, %v1273_v45 }
 0x1c0   : > { %v1417_v3 = vmul.f32 %v1416_v21, %v1412_v44  ;;  %v1424_v51 = vmul.f32 %v1423_v32, %v1412_v44  ;;  %v1713_v44 = vperm.slane %v818_v36, 1 }
 0x1c1   : > { %v1126_v0 = vsel %vm1124_vm5, %v7619_v39, %v5592_v58  ;;  %vm1279_vm3 = vcmp.eq.s32.totalorder %v1274_v62, 2 }
 0x1c2   : > { %v6330_v25 = vadd.f32 1.0, %v1417_v3  ;;  %v1425_v4 = vadd.f32 1.0, %v1424_v51  ;;  %v1127_v21 = vsel %vm1120_vm1, %v1123_v29, %v1126_v0  ;;  %v7621_v51 = vld [vmem:[#allocation5_spill] sm:$0xff] }
 0x1c3   : > { %v1128_v32 = vsel %vm1117_vm15, nan, %v1127_v21  ;;  %vm1275_vm15 = vcmp.lt.s32.totalorder %v1274_v62, 2 }
 0x1c4   : > { %v6335_v56 = vmul.f32 %v1425_v4, %v1410_v57  ;;  %v1435_v46 = vxor.u32 2147483648, %v6330_v25  ;;  %1711 = vperm.xlu1 %5239, %v1706_v47   ;;  %1725 = vperm.xlu0 %5238, %v1720_v61   ;;  %v7617_v57 = vxor.u32 2147483648, %v6011_v23  ;;  %v1825_v12 = vperm.slane %v1128_v32, 1  ;;  %v7624_v61 = vld [vmem:[#allocation8_spill] sm:$0xff] }
 0x1c5   : > { %1697 = vperm.xlu2 %5237, %v1692_v9   ;;  %v1832_v58 = vperm.slane %v1128_v32, 2  ;;  %v1846_v49 = vperm.slane %v1128_v32, 4  ;;  %v1818_v2 = vperm.slane %v1128_v32, 0  ;;  %v7622_v4 = vxor.u32 2147483648, %v7621_v51 }
 0x1c6   : > { %v1432_v22 = vxor.u32 2147483648, %v6335_v56  ;;  %v3117_v1 = vsel %vm3115_vm7, %v1435_v46, %v6335_v56  ;;  %v971_v15 = vsel %vm969_vm12, %v7617_v57, %v6022_v5  ;;  %v1755_v5 = vperm.slane %v818_v36, 7 }
 0x1c7   : > { %v972_v35 = vsel %vm965_vm14, %v968_v50, %v971_v15  ;;  %v1281_v11 = vsel %vm1279_vm3, %v7622_v4, %v5683_v7  ;;  %v1853_v36 = vperm.slane %v1128_v32, 5  ;;  %v1867_v27 = vperm.slane %v1128_v32, 7 }
 0x1c8   : > { %v3114_v8 = vsel %vm3112_vm9, %v6330_v25, %v1432_v22  ;;  %v973_v17 = vsel %vm962_vm4, nan, %v972_v35  ;;  %vm1276_vm4 = vcmp.eq.s32.totalorder %v1274_v62, 0  ;;  %v1860_v50 = vperm.slane %v1128_v32, 6 }
 0x1c9   : > { %v3118_v42 = vsel %vm3111_vm2, %v3114_v8, %v3117_v1  ;;  %v1762_v43 = vperm.slane %v973_v17, 0  ;;  %v1769_v54 = vperm.slane %v973_v17, 1  ;;  %v1783_v23 = vperm.slane %v973_v17, 3 }
 0x1ca   : > { %v6349_v28 = vsel %vm1427_vm8, nan, %v3118_v42  ;;  %v1790_v26 = vperm.slane %v973_v17, 4  ;;  %v1804_v55 = vperm.slane %v973_v17, 6  ;;  %v1776_v6 = vperm.slane %v973_v17, 2 }
 0x1cb   : > { %v1811_v53 = vperm.slane %v973_v17, 7  ;;  %v1797_v19 = vperm.slane %v973_v17, 5  ;;  %v1278_v10 = vsel %vm1276_vm4, %v7621_v51, %v7620_v18  ;;  %v1839_v1 = vperm.slane %v1128_v32, 3 }
 0x1cc   : > { %1732 = vperm.xlu1 %5239, %v1727_v63   ;;  %1746 = vperm.xlu0 %5238, %v1741_v14   ;;  %v1282_v47 = vsel %vm1275_vm15, %v1278_v10, %v1281_v11  ;;  %v1428_v8 = vadd.s32 3, %v6321_v38 }
 0x1cd   : > { %1718 = vperm.xlu2 %5237, %v1713_v44   ;;  %v1283_v9 = vsel %vm1272_vm11, nan, %v1282_v47 }
 0x1ce   : > { %v1874_v42 = vperm.slane %v1283_v9, 0  ;;  %v1888_v30 = vperm.slane %v1283_v9, 2  ;;  %v1429_v63 = vand.u32 3, %v1428_v8  ;;  %v1895_v57 = vperm.slane %v1283_v9, 3 }
 0x1cf   : > { %v1909_v15 = vperm.slane %v1283_v9, 5  ;;  %v1881_v44 = vperm.slane %v1283_v9, 1  ;;  %v1902_v37 = vperm.slane %v1283_v9, 4  ;;  %v1923_v24 = vperm.slane %v1283_v9, 7 }
 0x1d0   : > { %vm1431_vm13 = vcmp.eq.s32.totalorder %v1429_v63, 0  ;;  %vm1434_vm7 = vcmp.eq.s32.totalorder %v1429_v63, 2  ;;  %vm1430_vm11 = vcmp.lt.s32.totalorder %v1429_v63, 2  ;;  %v3288_v8 = vperm.slane %v7624_v61, 2 }
 0x1d1   : > { %v1433_v14 = vsel %vm1431_vm13, %v6330_v25, %v1432_v22  ;;  %v1436_v38 = vsel %vm1434_vm7, %v1435_v46, %v6335_v56 }
 0x1d2   : > { %v1437_v35 = vsel %vm1430_vm11, %v1433_v14, %v1436_v38  ;;  %v3295_v14 = vperm.slane %v7624_v61, 3 }
 0x1d3   : > { %v1438_v22 = vsel %vm1427_vm8, nan, %v1437_v35 }
 0x1d4   : > { %1753 = vperm.xlu1 %5239, %v1748_v40   ;;  %1767 = vperm.xlu0 %5238, %v1762_v43   ;;  %v1930_v60 = vperm.slane %v1438_v22, 0  ;;  %v1944_v21 = vperm.slane %v1438_v22, 2  ;;  %v1979_v45 = vperm.slane %v1438_v22, 7 }
 0x1d5   : > { %1739 = vperm.xlu2 %5237, %v1734_v20   ;;  %v1916_v20 = vperm.slane %v1283_v9, 6  ;;  %v3274_v9 = vperm.slane %v7624_v61, 0 }
 0x1dc   : > { %1774 = vperm.xlu1 %5239, %v1769_v54   ;;  %1788 = vperm.xlu0 %5238, %v1783_v23   ;;  %v1583_v54 = vadd.s32 3, %v6249_v48  ;;  %v1937_v23 = vperm.slane %v1438_v22, 1  ;;  %v1958_v48 = vperm.slane %v1438_v22, 4 }
 0x1dd   : > { %1760 = vperm.xlu2 %5237, %v1755_v5   ;;  %v1951_v5 = vperm.slane %v1438_v22, 3 }
 0x1de   : > { %v1584_v34 = vand.u32 3, %v1583_v54 }
 0x1e0   : > { %vm1586_vm9 = vcmp.eq.s32.totalorder %v1584_v34, 0  ;;  %vm1589_vm2 = vcmp.eq.s32.totalorder %v1584_v34, 2  ;;  %vm1585_vm8 = vcmp.lt.s32.totalorder %v1584_v34, 2 }
 0x1e4   : > { %1795 = vperm.xlu1 %5239, %v1790_v26   ;;  %1809 = vperm.xlu0 %5238, %v1804_v55   ;;  %v1588_v26 = vsel %vm1586_vm9, %v6258_v41, %v1587_v31  ;;  %v1972_v55 = vperm.slane %v1438_v22, 6 }
 0x1e5   : > { %1781 = vperm.xlu2 %5237, %v1776_v6   ;;  %v1591_v6 = vsel %vm1589_vm2, %v1590_v33, %v6262_v52 }
 0x1e6   : > { %v1592_v32 = vsel %vm1585_vm8, %v1588_v26, %v1591_v6  ;;  %v3323_v26 = vperm.slane %v7624_v61, 7 }
 0x1e7   : > { %v1593_v31 = vsel %vm1582_vm6, nan, %v1592_v32  ;;  %vm4170_vm6 = vcmask 130048  }
 0x1e8   : > { %v1993_v62 = vperm.slane %v1593_v31, 1  ;;  %v1986_v18 = vperm.slane %v1593_v31, 0  ;;  %v2021_v4 = vperm.slane %v1593_v31, 5  ;;  %v2035_v11 = vperm.slane %v1593_v31, 7 }
 0x1ec   : > { %1816 = vperm.xlu1 %5239, %v1811_v53   ;;  %1830 = vperm.xlu0 %5238, %v1825_v12  }
 0x1ed   : > { %1802 = vperm.xlu2 %5237, %v1797_v19  }
 0x1f4   : > { %1837 = vperm.xlu1 %5239, %v1832_v58   ;;  %1851 = vperm.xlu0 %5238, %v1846_v49   ;;  %v1965_v58 = vperm.slane %v1438_v22, 5  ;;  %v2000_v49 = vperm.slane %v1593_v31, 2  ;;  %v3316_v22 = vperm.slane %v7624_v61, 6 }
 0x1f5   : > { %1823 = vperm.xlu2 %5237, %v1818_v2   ;;  %v2014_v2 = vperm.slane %v1593_v31, 4 }
 0x1f7   : > { %v6369_v3 = vpop.permute.xlu2 %1599 }
 0x1fc   : > { %1858 = vperm.xlu1 %5239, %v1853_v36   ;;  %1872 = vperm.xlu0 %5238, %v1867_v27   ;;  %v2007_v36 = vperm.slane %v1593_v31, 3 }
 0x1fd   : > { %1844 = vperm.xlu2 %5237, %v1839_v1  }
 0x1ff   : > { %v6379_v59 = vpop.permute.xlu2 %1620 }
 0x204   : > { %1879 = vperm.xlu1 %5239, %v1874_v42   ;;  %1893 = vperm.xlu0 %5238, %v1888_v30   ;;  %v2028_v42 = vperm.slane %v1593_v31, 6 }
 0x205   : > { %1865 = vperm.xlu2 %5237, %v1860_v50  }
 0x207   : > { %v6382_v7 = vpop.permute.xlu2 %1634 }
 0x20c   : > { %1900 = vperm.xlu1 %5239, %v1895_v57   ;;  %1914 = vperm.xlu0 %5238, %v1909_v15   ;;  %v3309_v57 = vperm.slane %v7624_v61, 5  ;;  %v3281_v15 = vperm.slane %v7624_v61, 1 }
 0x20d   : > { %1886 = vperm.xlu2 %5237, %v1881_v44  }
 0x20e   : > { %v6390_v17 = vpop.permute.xlu1 %1613  ;;  %v6392_v40 = vpop.permute.xlu0 %1606 }
 0x20f   : > { %v6396_v43 = vpop.permute.xlu2 %1655 }
 0x214   : > { %1921 = vperm.xlu1 %5239, %v1916_v20   ;;  %1935 = vperm.xlu0 %5238, %v1930_v60   ;;  %v7628_v20 = vld [vmem:[#allocation10_spill] sm:$0xff] }
 0x215   : > { %1907 = vperm.xlu2 %5237, %v1902_v37   ;;  %v3330_v60 = vperm.slane %v7628_v20, 0  ;;  %v3302_v37 = vperm.slane %v7624_v61, 4  ;;  %v3351_v34 = vperm.slane %v7628_v20, 3  ;;  %v3372_v32 = vperm.slane %v7628_v20, 6 }
 0x216   : > { %v6398_v25 = vpop.permute.xlu1 %1627  ;;  %v6400_v56 = vpop.permute.xlu0 %1641  ;;  %v3344_v31 = vperm.slane %v7628_v20, 2 }
 0x217   : > { %v6402_v46 = vpop.permute.xlu2 %1676 }
 0x21c   : > { %1942 = vperm.xlu1 %5239, %v1937_v23   ;;  %1956 = vperm.xlu0 %5238, %v1951_v5  }
 0x21d   : > { %1928 = vperm.xlu2 %5237, %v1923_v24   ;;  %v3337_v24 = vperm.slane %v7628_v20, 1 }
 0x21e   : > { %v6405_v29 = vpop.permute.xlu1 %1648  ;;  %v6407_v39 = vpop.permute.xlu0 %1662 }
 0x21f   : > { %v6409_v0 = vpop.permute.xlu2 %1697 }
 0x224   : > { %1963 = vperm.xlu1 %5239, %v1958_v48   ;;  %1977 = vperm.xlu0 %5238, %v1972_v55  }
 0x225   : > { %1949 = vperm.xlu2 %5237, %v1944_v21   ;;  %v3358_v21 = vperm.slane %v7628_v20, 4 }
 0x226   : > { %v6417_v53 = vpop.permute.xlu1 %1669  ;;  %v6419_v12 = vpop.permute.xlu0 %1683 }
 0x227   : > { %v6423_v19 = vpop.permute.xlu2 %1718 }
 0x22c   : > { %1984 = vperm.xlu1 %5239, %v1979_v45   ;;  %1998 = vperm.xlu0 %5238, %v1993_v62  }
 0x22d   : > { %1970 = vperm.xlu2 %5237, %v1965_v58  }
 0x22e   : > { %v6425_v41 = vpop.permute.xlu1 %1690  ;;  %v6427_v52 = vpop.permute.xlu0 %1704 }
 0x22f   : > { %v6429_v33 = vpop.permute.xlu2 %1739 }
 0x234   : > { %2005 = vperm.xlu1 %5239, %v2000_v49   ;;  %2019 = vperm.xlu0 %5238, %v2014_v2   ;;  %v3379_v49 = vperm.slane %v7628_v20, 7  ;;  %v7636_v2 = vld [vmem:[#allocation7_spill] sm:$0xff] }
 0x235   : > { %1991 = vperm.xlu2 %5237, %v1986_v18   ;;  %v3393_v18 = vperm.slane %v7636_v2, 1 }
 0x236   : > { %v6431_v13 = vpop.permute.xlu1 %1711  ;;  %v6433_v51 = vpop.permute.xlu0 %1725 }
 0x237   : > { %v6435_v10 = vpop.permute.xlu2 %1760 }
 0x23c   : > { %2026 = vperm.xlu1 %5239, %v2021_v4   ;;  %2040 = vperm.xlu0 %5238, %v2035_v11   ;;  %v3365_v4 = vperm.slane %v7628_v20, 5  ;;  %v3435_v20 = vperm.slane %v7636_v2, 7 }
 0x23d   : > { %2012 = vperm.xlu2 %5237, %v2007_v36  }
 0x23e   : > { %v6437_v27 = vpop.permute.xlu1 %1732  ;;  %v6439_v1 = vpop.permute.xlu0 %1746 }
 0x23f   : > { %v6441_v47 = vpop.permute.xlu2 %1781 }
 0x244   : > { %3279 = vperm.xlu1 %5239, %v3274_v9   ;;  %3293 = vperm.xlu0 %5238, %v3288_v8   ;;  %v3400_v9 = vperm.slane %v7636_v2, 2  ;;  %v3414_v8 = vperm.slane %v7636_v2, 4 }
 0x245   : > { %2033 = vperm.xlu2 %5237, %v2028_v42   ;;  %v3386_v42 = vperm.slane %v7636_v2, 0 }
 0x246   : > { %v6445_v30 = vpop.permute.xlu1 %1753  ;;  %v6447_v50 = vpop.permute.xlu0 %1767 }
 0x247   : > { %v6449_v63 = vpop.permute.xlu2 %1802 }
 0x248   : > { %7625 = vst [vmem:[#allocation5_spill] sm:$0xff] %v6449_v63  ;;  %v3673_v63 = vperm.slane %v6279_v16, 1 }
 0x24c   : > { %3300 = vperm.xlu1 %5239, %v3295_v14   ;;  %3314 = vperm.xlu0 %5238, %v3309_v57  }
 0x24d   : > { %3286 = vperm.xlu2 %5237, %v3281_v15  }
 0x24e   : > { %v6454_v38 = vpop.permute.xlu1 %1774  ;;  %v6456_v44 = vpop.permute.xlu0 %1788 }
 0x24f   : > { %7626 = vst [vmem:[#allocation3_spill] sm:$0xff] %v6456_v44  ;;  %v6458_v35 = vpop.permute.xlu2 %1823  ;;  %v3666_v44 = vperm.slane %v6279_v16, 0 }
 0x250   : > { %7627 = vst [vmem:[#allocation8_spill] sm:$0xff] %v6458_v35 }
 0x254   : > { %3321 = vperm.xlu1 %5239, %v3316_v22   ;;  %3335 = vperm.xlu0 %5238, %v3330_v60   ;;  %v3421_v22 = vperm.slane %v7636_v2, 5  ;;  %v3407_v60 = vperm.slane %v7636_v2, 3 }
 0x255   : > { %3307 = vperm.xlu2 %5237, %v3302_v37  }
 0x256   : > { %v6463_v54 = vpop.permute.xlu1 %1795  ;;  %v6465_v23 = vpop.permute.xlu0 %1809 }
 0x257   : > { %7629 = vst [vmem:[#allocation10_spill] sm:$0xff] %v6465_v23  ;;  %v6467_v5 = vpop.permute.xlu2 %1844 }
 0x258   : > { %7630 = vst [vmem:[#allocation11_spill] sm:$0xff] %v6467_v5 }
 0x25c   : > { %3342 = vperm.xlu1 %5239, %v3337_v24   ;;  %3356 = vperm.xlu0 %5238, %v3351_v34  }
 0x25d   : > { %3328 = vperm.xlu2 %5237, %v3323_v26   ;;  %v7646_v26 = vld [vmem:[#allocation9_spill] sm:$0xff] }
 0x25e   : > { %v6472_v48 = vpop.permute.xlu1 %1816  ;;  %v6474_v55 = vpop.permute.xlu0 %1830 }
 0x25f   : > { %7631 = vst [vmem:[#allocation12_spill] sm:$0xff] %v6474_v55  ;;  %v6476_v6 = vpop.permute.xlu2 %1865 }
 0x260   : > { %7632 = vst [vmem:[#allocation13_spill] sm:$0xff] %v6476_v6 }
 0x264   : > { %3363 = vperm.xlu1 %5239, %v3358_v21   ;;  %3377 = vperm.xlu0 %5238, %v3372_v32   ;;  %v3442_v21 = vperm.slane %v7646_v26, 0  ;;  %v3456_v32 = vperm.slane %v7646_v26, 2 }
 0x265   : > { %3349 = vperm.xlu2 %5237, %v3344_v31   ;;  %v3428_v31 = vperm.slane %v7636_v2, 6 }
 0x266   : > { %v6481_v45 = vpop.permute.xlu1 %1837  ;;  %v6483_v62 = vpop.permute.xlu0 %1851 }
 0x267   : > { %7633 = vst [vmem:[#allocation14_spill] sm:$0xff] %v6481_v45  ;;  %v6485_v58 = vpop.permute.xlu2 %1886 }
 0x268   : > { %7634 = vst [vmem:[#allocation15_spill] sm:$0xff] %v6483_v62 }
 0x269   : > { %7635 = vst [vmem:[#allocation16_spill] sm:$0xff] %v6485_v58 }
 0x26c   : > { %3384 = vperm.xlu1 %5239, %v3379_v49   ;;  %3398 = vperm.xlu0 %5238, %v3393_v18  }
 0x26d   : > { %3370 = vperm.xlu2 %5237, %v3365_v4  }
 0x26e   : > { %v6490_v11 = vpop.permute.xlu1 %1858  ;;  %v6492_v36 = vpop.permute.xlu0 %1872 }
 0x26f   : > { %7637 = vst [vmem:[#allocation7_spill] sm:$0xff] %v6490_v11  ;;  %v6494_v61 = vpop.permute.xlu2 %1907 }
 0x270   : > { %7638 = vst [vmem:[#allocation17_spill] sm:$0xff] %v6492_v36 }
 0x271   : > { %7639 = vst [vmem:[#allocation18_spill] sm:$0xff] %v6494_v61 }
 0x274   : > { %3405 = vperm.xlu1 %5239, %v3400_v9   ;;  %3419 = vperm.xlu0 %5238, %v3414_v8   ;;  %v3463_v9 = vperm.slane %v7646_v26, 3  ;;  %v3477_v8 = vperm.slane %v7646_v26, 5 }
 0x275   : > { %3391 = vperm.xlu2 %5237, %v3386_v42   ;;  %v3449_v42 = vperm.slane %v7646_v26, 1 }
 0x276   : > { %v6499_v14 = vpop.permute.xlu1 %1879  ;;  %v6501_v57 = vpop.permute.xlu0 %1893 }
 0x277   : > { %7640 = vst [vmem:[#allocation19_spill] sm:$0xff] %v6499_v14  ;;  %v6503_v15 = vpop.permute.xlu2 %1928 }
 0x278   : > { %7641 = vst [vmem:[#allocation20_spill] sm:$0xff] %v6501_v57 }
 0x279   : > { %7642 = vst [vmem:[#allocation21_spill] sm:$0xff] %v6503_v15 }
 0x27c   : > { %3426 = vperm.xlu1 %5239, %v3421_v22   ;;  %3440 = vperm.xlu0 %5238, %v3435_v20  }
 0x27d   : > { %3412 = vperm.xlu2 %5237, %v3407_v60   ;;  %v3484_v60 = vperm.slane %v7646_v26, 6 }
 0x27e   : > { %v6508_v37 = vpop.permute.xlu1 %1900  ;;  %v6510_v24 = vpop.permute.xlu0 %1914 }
 0x27f   : > { %7643 = vst [vmem:[#allocation22_spill] sm:$0xff] %v6508_v37  ;;  %v6512_v34 = vpop.permute.xlu2 %1949 }
 0x280   : > { %7644 = vst [vmem:[#allocation23_spill] sm:$0xff] %v6510_v24 }
 0x281   : > { %7645 = vst [vmem:[#allocation24_spill] sm:$0xff] %v6512_v34 }
 0x284   : > { %3447 = vperm.xlu1 %5239, %v3442_v21   ;;  %3461 = vperm.xlu0 %5238, %v3456_v32   ;;  %v7653_v21 = vld [vmem:[#allocation4_spill] sm:$0xff] }
 0x285   : > { %3433 = vperm.xlu2 %5237, %v3428_v31   ;;  %v3498_v32 = vperm.slane %v7653_v21, 0  ;;  %v3470_v31 = vperm.slane %v7646_v26, 4 }
 0x286   : > { %v6517_v49 = vpop.permute.xlu1 %1921  ;;  %v6519_v18 = vpop.permute.xlu0 %1935 }
 0x287   : > { %7647 = vst [vmem:[#allocation9_spill] sm:$0xff] %v6517_v49  ;;  %v6521_v4 = vpop.permute.xlu2 %1970 }
 0x288   : > { %7648 = vst [vmem:[#allocation25_spill] sm:$0xff] %v6519_v18 }
 0x289   : > { %7649 = vst [vmem:[#allocation26_spill] sm:$0xff] %v6521_v4 }
 0x28c   : > { %3468 = vperm.xlu1 %5239, %v3463_v9   ;;  %3482 = vperm.xlu0 %5238, %v3477_v8  }
 0x28d   : > { %3454 = vperm.xlu2 %5237, %v3449_v42   ;;  %v3505_v42 = vperm.slane %v7653_v21, 1 }
 0x28e   : > { %v6526_v22 = vpop.permute.xlu1 %1942  ;;  %v6528_v2 = vpop.permute.xlu0 %1956 }
 0x28f   : > { %7650 = vst [vmem:[#allocation27_spill] sm:$0xff] %v6526_v22  ;;  %v6530_v20 = vpop.permute.xlu2 %1991 }
 0x290   : > { %7651 = vst [vmem:[#allocation28_spill] sm:$0xff] %v6528_v2  ;;  %v3491_v2 = vperm.slane %v7646_v26, 7 }
 0x291   : > { %7652 = vst [vmem:[#allocation29_spill] sm:$0xff] %v6530_v20  ;;  %v3519_v20 = vperm.slane %v7653_v21, 3 }
 0x294   : > { %3489 = vperm.xlu1 %5239, %v3484_v60   ;;  %3503 = vperm.xlu0 %5238, %v3498_v32   ;;  %v6551_v32 = vld [vmem:[%s7498_s0] sm:$0xff] }
 0x295   : > { %3475 = vperm.xlu2 %5237, %v3470_v31   ;;  %v6556_v31 = vld [vmem:[%s7499_s1] sm:$0xff]  ;;  %v162_v26 = vrot.slane %v6551_v32, 1 }
 0x296   : > { %v6535_v4 = vpop.permute.xlu1 %1963  ;;  %v6537_v9 = vpop.permute.xlu0 %1977  ;;  %v237_v24 = vrot.slane %v6556_v31, 4 }
 0x297   : > { %7654 = vst [vmem:[#allocation4_spill] sm:$0xff] %v6535_v4  ;;  %v6539_v8 = vpop.permute.xlu2 %2012 }
 0x298   : > { %7655 = vst [vmem:[#allocation30_spill] sm:$0xff] %v6537_v9  ;;  %v3723_v9 = vperm.slane %v162_v26, 0  ;;  %v3918_v36 = vperm.slane %v237_v24, 0  ;;  %v236_v24 = vrot.slane %v6556_v31, 3 }
 0x299   : > { %7656 = vst [vmem:[#allocation31_spill] sm:$0xff] %v6539_v8 }
 0x29a   : > { %v4300_v57 = vmul.f32 %v3723_v9, %v6392_v40  ;;  %v6605_v6 = vperm.slane %v236_v24, 0 }
 0x29c   : > { %3510 = vperm.xlu1 %5239, %v3505_v42   ;;  %3524 = vperm.xlu0 %5238, %v3519_v20   ;;  %v3526_v20 = vperm.slane %v7653_v21, 4  ;;  %v3540_v42 = vperm.slane %v7653_v21, 6 }
 0x29d   : > { %3496 = vperm.xlu2 %5237, %v3491_v2   ;;  %v234_v2 = vrot.slane %v6556_v31, 1 }
 0x29e   : > { %v6544_v18 = vpop.permute.xlu1 %1984  ;;  %v6546_v60 = vpop.permute.xlu0 %1998 }
 0x29f   : > { %7657 = vst [vmem:[#allocation32_spill] sm:$0xff] %v6544_v18  ;;  %v6558_v8 = vpop.permute.xlu2 %2033  ;;  %v3915_v18 = vperm.slane %v234_v2, 0 }
 0x2a0   : > { %7658 = vst [vmem:[#allocation33_spill] sm:$0xff] %v6546_v60  ;;  %v3512_v60 = vperm.slane %v7653_v21, 2 }
 0x2a1   : > { %7659 = vst [vmem:[#allocation34_spill] sm:$0xff] %v6558_v8  ;;  %v165_v8 = vrot.slane %v6551_v32, 4  ;;  %v4043_v22 = vmul.f32 %v3915_v18, %v6392_v40  ;;  %v235_v40 = vrot.slane %v6556_v31, 2 }
 0x2a3   : > { %v3726_v49 = vperm.slane %v165_v8, 0 }
 0x2a4   : > { %3531 = vperm.xlu1 %5239, %v3526_v20   ;;  %3545 = vperm.xlu0 %5238, %v3540_v42   ;;  %v7662_v42 = vld [vmem:[#allocation6_spill] sm:$0xff] }
 0x2a5   : > { %3517 = vperm.xlu2 %5237, %v3512_v60   ;;  %v3547_v60 = vperm.slane %v7653_v21, 7  ;;  %v3554_v62 = vperm.slane %v7662_v42, 0 }
 0x2a6   : > { %v6566_v34 = vpop.permute.xlu1 %2005  ;;  %v6568_v4 = vpop.permute.xlu0 %2019 }
 0x2a7   : > { %7660 = vst [vmem:[#allocation35_spill] sm:$0xff] %v6566_v34  ;;  %v3287_v15 = vpop.permute.xlu2 %3286  ;;  %v3561_v34 = vperm.slane %v7662_v42, 1 }
 0x2a8   : > { %7661 = vst [vmem:[#allocation36_spill] sm:$0xff] %v6568_v4  ;;  %v3851_v61 = vmul.f32 %v3723_v9, %v3287_v15  ;;  %v4236_v26 = vmul.f32 %v3915_v18, %v3287_v15  ;;  %v3533_v4 = vperm.slane %v7653_v21, 5  ;;  %v164_v15 = vrot.slane %v6551_v32, 3 }
 0x2a9   : > { %v163_v18 = vrot.slane %v6551_v32, 2  ;;  %v3568_v21 = vperm.slane %v7662_v42, 2  ;;  %v4303_v9 = vmul.f32 %v3726_v49, %v6398_v25 }
 0x2aa   : > { %v4107_v2 = vadd.f32 %v4043_v22, %v3851_v61  ;;  %v4364_v20 = vsub.f32 %v4236_v26, %v4300_v57  ;;  %v3722_v26 = vperm.slane %v6551_v32, 0 }
 0x2ab   : > { %v3724_v14 = vperm.slane %v163_v18, 0 }
 0x2ac   : > { %4172 = vst.msk [vmem:[%s6577_s12 + $0x8] sm:$0xff] %vm4170_vm6, %v4107_v2  ;;  %3552 = vperm.xlu1 %5239, %v3547_v60   ;;  %3566 = vperm.xlu0 %5238, %v3561_v34   ;;  %v4046_v34 = vmul.f32 %v3918_v36, %v6398_v25  ;;  %v3914_v2 = vperm.slane %v6556_v31, 0  ;;  %v3582_v60 = vperm.slane %v7662_v42, 4  ;;  %v3589_v25 = vperm.slane %v7662_v42, 5 }
 0x2ad   : > { %5136 = vst.msk [vmem:[%s6577_s12 + $0x208] sm:$0xff] %vm4170_vm6, %v4364_v20  ;;  %3538 = vperm.xlu2 %5237, %v3533_v4   ;;  %v240_v20 = vrot.slane %v6556_v31, 7  ;;  %v4299_v24 = vmul.f32 %v3722_v26, %v6369_v3  ;;  %v4301_v5 = vmul.f32 %v3724_v14, %v6390_v17 }
 0x2ae   : > { %v6584_v61 = vpop.permute.xlu1 %2026  ;;  %v6586_v57 = vpop.permute.xlu0 %2040 }
 0x2af   : > { %7663 = vst [vmem:[#allocation6_spill] sm:$0xff] %v6584_v61  ;;  %v3308_v22 = vpop.permute.xlu2 %3307  ;;  %v168_v61 = vrot.slane %v6551_v32, 7 }
 0x2b0   : > { %7664 = vst [vmem:[#allocation37_spill] sm:$0xff] %v6586_v57  ;;  %v3854_v4 = vmul.f32 %v3726_v49, %v3308_v22  ;;  %v4239_v8 = vmul.f32 %v3918_v36, %v3308_v22  ;;  %v3916_v57 = vperm.slane %v235_v40, 0  ;;  %v3603_v36 = vperm.slane %v7662_v42, 7  ;;  %v6621_v40 = vld [vmem:[%s7499_s1 + $0x8] sm:$0xff] }
 0x2b1   : > { %v3575_v49 = vperm.slane %v7662_v42, 3  ;;  %v6603_v22 = vperm.slane %v164_v15, 0  ;;  %v4042_v15 = vmul.f32 %v3914_v2, %v6369_v3  ;;  %v3729_v18 = vperm.slane %v168_v61, 0  ;;  %v6628_v61 = vld [vmem:[%s7498_s0 + $0x8] sm:$0xff] }
 0x2b2   : > { %v4110_v58 = vadd.f32 %v4046_v34, %v3854_v4  ;;  %v4367_v37 = vsub.f32 %v4239_v8, %v4303_v9  ;;  %v166_v34 = vrot.slane %v6551_v32, 5  ;;  %v238_v9 = vrot.slane %v6556_v31, 5 }
 0x2b3   : > { %v167_v4 = vrot.slane %v6551_v32, 6  ;;  %v3921_v8 = vperm.slane %v240_v20, 0  ;;  %v242_v3 = vrot.slane %v6621_v40, 2 }
 0x2b4   : > { %4175 = vst.msk [vmem:[%s6577_s12 + $0x20] sm:$0xff] %vm4170_vm6, %v4110_v58  ;;  %3573 = vperm.xlu1 %5239, %v3568_v21   ;;  %3587 = vperm.xlu0 %5238, %v3582_v60   ;;  %v4044_v58 = vmul.f32 %v3916_v57, %v6390_v17  ;;  %v3919_v45 = vperm.slane %v238_v9, 0  ;;  %v170_v17 = vrot.slane %v6628_v61, 2  ;;  %v243_v9 = vrot.slane %v6621_v40, 3 }
 0x2b5   : > { %5139 = vst.msk [vmem:[%s6577_s12 + $0x220] sm:$0xff] %vm4170_vm6, %v4367_v37  ;;  %3559 = vperm.xlu2 %5237, %v3554_v62   ;;  %v4049_v35 = vmul.f32 %v3921_v8, %v6405_v29 }
 0x2b6   : > { %v3280_v21 = vpop.permute.xlu1 %3279  ;;  %v3294_v60 = vpop.permute.xlu0 %3293 }
 0x2b7   : > { %v3850_v55 = vmul.f32 %v3722_v26, %v3280_v21  ;;  %v4235_v32 = vmul.f32 %v3914_v2, %v3280_v21  ;;  %v3852_v20 = vmul.f32 %v3724_v14, %v3294_v60  ;;  %v4237_v37 = vmul.f32 %v3916_v57, %v3294_v60  ;;  %v3329_v62 = vpop.permute.xlu2 %3328 }
 0x2b8   : > { %v3857_v11 = vmul.f32 %v3729_v18, %v3329_v62  ;;  %v4242_v23 = vmul.f32 %v3921_v8, %v3329_v62  ;;  %v4306_v57 = vmul.f32 %v3729_v18, %v6405_v29  ;;  %v3610_v62 = vperm.slane %v6349_v28, 0 }
 0x2b9   : > { %v4106_v26 = vadd.f32 %v4042_v15, %v3850_v55  ;;  %v4363_v2 = vsub.f32 %v4235_v32, %v4299_v24  ;;  %v4108_v21 = vadd.f32 %v4044_v58, %v3852_v20  ;;  %v4365_v14 = vsub.f32 %v4237_v37, %v4301_v5 }
 0x2ba   : > { %v4113_v60 = vadd.f32 %v4049_v35, %v3857_v11  ;;  %v3727_v8 = vperm.slane %v166_v34, 0  ;;  %v3922_v55 = vperm.slane %v6621_v40, 0  ;;  %v4370_v29 = vsub.f32 %v4242_v23, %v4306_v57 }
 0x2bb   : > { %4171 = vst.msk [vmem:[%s6577_s12] sm:$0xff] %vm4170_vm6, %v4106_v26  ;;  %v3624_v5 = vperm.slane %v6349_v28, 2  ;;  %v239_v35 = vrot.slane %v6556_v31, 6  ;;  %v3728_v11 = vperm.slane %v167_v4, 0  ;;  %v3924_v15 = vperm.slane %v242_v3, 0 }
 0x2bc   : > { %5135 = vst.msk [vmem:[%s6577_s12 + $0x200] sm:$0xff] %vm4170_vm6, %v4363_v2  ;;  %3594 = vperm.xlu1 %5239, %v3589_v25   ;;  %3608 = vperm.xlu0 %5238, %v3603_v36   ;;  %v4045_v34 = vmul.f32 %v6605_v6, %v6379_v59  ;;  %v4302_v23 = vmul.f32 %v6603_v22, %v6379_v59  ;;  %v3732_v36 = vperm.slane %v170_v17, 0  ;;  %v245_v59 = vrot.slane %v6621_v40, 5 }
 0x2bd   : > { %4173 = vst.msk [vmem:[%s6577_s12 + $0x10] sm:$0xff] %vm4170_vm6, %v4108_v21  ;;  %3580 = vperm.xlu2 %5237, %v3575_v49   ;;  %v4047_v25 = vmul.f32 %v3919_v45, %v6382_v7  ;;  %v4304_v20 = vmul.f32 %v3727_v8, %v6382_v7  ;;  %v4052_v26 = vmul.f32 %v3924_v15, %v6417_v53  ;;  %v3920_v57 = vperm.slane %v239_v35, 0 }
 0x2be   : > { %5137 = vst.msk [vmem:[%s6577_s12 + $0x210] sm:$0xff] %vm4170_vm6, %v4365_v14  ;;  %v3301_v31 = vpop.permute.xlu1 %3300  ;;  %v3315_v4 = vpop.permute.xlu0 %3314  ;;  %v3631_v14 = vperm.slane %v6349_v28, 3  ;;  %v6671_v35 = vperm.slane %v243_v9, 0  ;;  %v4050_v9 = vmul.f32 %v3922_v55, %v6396_v43 }
 0x2bf   : > { %4178 = vst.msk [vmem:[%s6577_s12 + $0x38] sm:$0xff] %vm4170_vm6, %v4113_v60  ;;  %v3853_v24 = vmul.f32 %v6603_v22, %v3301_v31  ;;  %v4238_v49 = vmul.f32 %v6605_v6, %v3301_v31  ;;  %v3855_v58 = vmul.f32 %v3727_v8, %v3315_v4  ;;  %v4240_v18 = vmul.f32 %v3919_v45, %v3315_v4  ;;  %v3350_v32 = vpop.permute.xlu2 %3349 }
 0x2c0   : > { %5142 = vst.msk [vmem:[%s6577_s12 + $0x238] sm:$0xff] %vm4170_vm6, %v4370_v29  ;;  %v3860_v37 = vmul.f32 %v3732_v36, %v3350_v32  ;;  %v4245_v3 = vmul.f32 %v3924_v15, %v3350_v32  ;;  %v4309_v6 = vmul.f32 %v3732_v36, %v6417_v53  ;;  %v173_v45 = vrot.slane %v6628_v61, 5 }
 0x2c1   : > { %v4109_v2 = vadd.f32 %v4045_v34, %v3853_v24  ;;  %v4366_v21 = vsub.f32 %v4238_v49, %v4302_v23  ;;  %v4111_v22 = vadd.f32 %v4047_v25, %v3855_v58  ;;  %v4368_v17 = vsub.f32 %v4240_v18, %v4304_v20 }
 0x2c2   : > { %v4116_v7 = vadd.f32 %v4052_v26, %v3860_v37  ;;  %v3645_v60 = vperm.slane %v6349_v28, 5  ;;  %v3687_v8 = vperm.slane %v6279_v16, 3  ;;  %v3730_v29 = vperm.slane %v6628_v61, 0 }
 0x2c3   : > { %4174 = vst.msk [vmem:[%s6577_s12 + $0x18] sm:$0xff] %vm4170_vm6, %v4109_v2  ;;  %v171_v15 = vrot.slane %v6628_v61, 3  ;;  %v4373_v53 = vsub.f32 %v4245_v3, %v4309_v6  ;;  %v169_v34 = vrot.slane %v6628_v61, 1  ;;  %v241_v23 = vrot.slane %v6621_v40, 1 }
 0x2c4   : > { %5138 = vst.msk [vmem:[%s6577_s12 + $0x218] sm:$0xff] %vm4170_vm6, %v4366_v21  ;;  %3615 = vperm.xlu1 %5239, %v3610_v62   ;;  %3629 = vperm.xlu0 %5238, %v3624_v5   ;;  %v246_v25 = vrot.slane %v6621_v40, 6  ;;  %v3927_v36 = vperm.slane %v245_v59, 0  ;;  %v7665_v31 = vperm.slane %v7662_v42, 6  ;;  %v4048_v62 = vmul.f32 %v3920_v57, %v6400_v56 }
 0x2c5   : > { %4176 = vst.msk [vmem:[%s6577_s12 + $0x28] sm:$0xff] %vm4170_vm6, %v4111_v22  ;;  %v4305_v5 = vmul.f32 %v3728_v11, %v6400_v56  ;;  %v3735_v4 = vperm.slane %v173_v45, 0  ;;  %v4307_v59 = vmul.f32 %v3730_v29, %v6396_v43  ;;  %v172_v37 = vrot.slane %v6628_v61, 4 }
 0x2c6   : > { %3601 = vperm.xlu2 %5237, %v7665_v31   ;;  %5140 = vst.msk [vmem:[%s6577_s12 + $0x228] sm:$0xff] %vm4170_vm6, %v4368_v17  ;;  %v3322_v24 = vpop.permute.xlu1 %3321  ;;  %v3336_v49 = vpop.permute.xlu0 %3335  ;;  %v4055_v26 = vmul.f32 %v3927_v36, %v6425_v41  ;;  %v3731_v22 = vperm.slane %v169_v34, 0  ;;  %v3733_v45 = vperm.slane %v171_v15, 0  ;;  %v6709_v34 = vperm.slane %v246_v25, 0 }
 0x2c7   : > { %4181 = vst.msk [vmem:[%s6577_s12 + $0x50] sm:$0xff] %vm4170_vm6, %v4116_v7  ;;  %v3856_v58 = vmul.f32 %v3728_v11, %v3322_v24  ;;  %v4241_v18 = vmul.f32 %v3920_v57, %v3322_v24  ;;  %v3858_v42 = vmul.f32 %v3730_v29, %v3336_v49  ;;  %v4243_v32 = vmul.f32 %v3922_v55, %v3336_v49  ;;  %v3371_v20 = vpop.permute.xlu2 %3370  ;;  %v6701_v55 = vld [vmem:[%s7499_s1 + $0x10] sm:$0xff] }
 0x2c8   : > { %5145 = vst.msk [vmem:[%s6577_s12 + $0x250] sm:$0xff] %vm4170_vm6, %v4373_v53  ;;  %v3863_v56 = vmul.f32 %v3735_v4, %v3371_v20  ;;  %v4248_v3 = vmul.f32 %v3927_v36, %v3371_v20  ;;  %v3923_v57 = vperm.slane %v241_v23, 0  ;;  %v4312_v43 = vmul.f32 %v3735_v4, %v6425_v41  ;;  %v6717_v36 = vld [vmem:[%s7498_s0 + $0x10] sm:$0xff] }
 0x2c9   : > { %v4112_v2 = vadd.f32 %v4048_v62, %v3856_v58  ;;  %v4369_v11 = vsub.f32 %v4241_v18, %v4305_v5  ;;  %v4114_v21 = vadd.f32 %v4050_v9, %v3858_v42  ;;  %v4371_v6 = vsub.f32 %v4243_v32, %v4307_v59 }
 0x2ca   : > { %v4119_v17 = vadd.f32 %v4055_v26, %v3863_v56  ;;  %v3617_v7 = vperm.slane %v6349_v28, 1  ;;  %v3652_v29 = vperm.slane %v6349_v28, 6  ;;  %v174_v53 = vrot.slane %v6628_v61, 6 }
 0x2cb   : > { %4177 = vst.msk [vmem:[%s6577_s12 + $0x30] sm:$0xff] %vm4170_vm6, %v4112_v2  ;;  %v244_v23 = vrot.slane %v6621_v40, 4  ;;  %v4376_v41 = vsub.f32 %v4248_v3, %v4312_v43  ;;  %v3734_v15 = vperm.slane %v172_v37, 0  ;;  %v248_v31 = vrot.slane %v6701_v55, 1 }
 0x2cc   : > { %5141 = vst.msk [vmem:[%s6577_s12 + $0x230] sm:$0xff] %vm4170_vm6, %v4369_v11  ;;  %3636 = vperm.xlu1 %5239, %v3631_v14   ;;  %3650 = vperm.xlu0 %5238, %v3645_v60   ;;  %v175_v25 = vrot.slane %v6628_v61, 7  ;;  %v3930_v9 = vperm.slane %v6701_v55, 0  ;;  %v4053_v14 = vmul.f32 %v6671_v35, %v6402_v46  ;;  %v4051_v60 = vmul.f32 %v3923_v57, %v6407_v39 }
 0x2cd   : > { %4179 = vst.msk [vmem:[%s6577_s12 + $0x40] sm:$0xff] %vm4170_vm6, %v4114_v21  ;;  %v4308_v62 = vmul.f32 %v3731_v22, %v6407_v39  ;;  %v3738_v5 = vperm.slane %v6717_v36, 0  ;;  %v4310_v32 = vmul.f32 %v3733_v45, %v6402_v46  ;;  %v250_v20 = vrot.slane %v6701_v55, 3 }
 0x2ce   : > { %3622 = vperm.xlu2 %5237, %v3617_v7   ;;  %5143 = vst.msk [vmem:[%s6577_s12 + $0x240] sm:$0xff] %vm4170_vm6, %v4371_v6  ;;  %v3343_v4 = vpop.permute.xlu1 %3342  ;;  %v3357_v24 = vpop.permute.xlu0 %3356  ;;  %v4058_v37 = vmul.f32 %v3930_v9, %v6431_v13  ;;  %v3926_v2 = vperm.slane %v244_v23, 0  ;;  %v3694_v43 = vperm.slane %v6279_v16, 4  ;;  %v176_v6 = vrot.slane %v6717_v36, 1 }
 0x2cf   : > { %4184 = vst.msk [vmem:[%s6577_s12 + $0x68] sm:$0xff] %vm4170_vm6, %v4119_v17  ;;  %v3859_v61 = vmul.f32 %v3731_v22, %v3343_v4  ;;  %v4244_v49 = vmul.f32 %v3923_v57, %v3343_v4  ;;  %v3861_v58 = vmul.f32 %v3733_v45, %v3357_v24  ;;  %v4246_v18 = vmul.f32 %v6671_v35, %v3357_v24  ;;  %v3392_v42 = vpop.permute.xlu2 %3391 }
 0x2d0   : > { %5148 = vst.msk [vmem:[%s6577_s12 + $0x268] sm:$0xff] %vm4170_vm6, %v4376_v41  ;;  %v3866_v39 = vmul.f32 %v3738_v5, %v3392_v42  ;;  %v4251_v59 = vmul.f32 %v3930_v9, %v3392_v42  ;;  %v4315_v11 = vmul.f32 %v3738_v5, %v6431_v13  ;;  %v178_v35 = vrot.slane %v6717_v36, 3 }
 0x2d1   : > { %v4115_v56 = vadd.f32 %v4051_v60, %v3859_v61  ;;  %v4372_v3 = vsub.f32 %v4244_v49, %v4308_v62  ;;  %v4117_v26 = vadd.f32 %v4053_v14, %v3861_v58  ;;  %v4374_v21 = vsub.f32 %v4246_v18, %v4310_v32 }
 0x2d2   : > { %v3736_v22 = vperm.slane %v174_v53, 0  ;;  %v4122_v46 = vadd.f32 %v4058_v37, %v3866_v39  ;;  %v3638_v57 = vperm.slane %v6349_v28, 4  ;;  %v6746_v45 = vperm.slane %v248_v31, 0 }
 0x2d3   : > { %4180 = vst.msk [vmem:[%s6577_s12 + $0x48] sm:$0xff] %vm4170_vm6, %v4115_v56  ;;  %v247_v17 = vrot.slane %v6621_v40, 7  ;;  %v4379_v13 = vsub.f32 %v4251_v59, %v4315_v11  ;;  %v3737_v7 = vperm.slane %v175_v25, 0  ;;  %v251_v53 = vrot.slane %v6701_v55, 4 }
 0x2d4   : > { %5144 = vst.msk [vmem:[%s6577_s12 + $0x248] sm:$0xff] %vm4170_vm6, %v4372_v3  ;;  %3657 = vperm.xlu1 %5239, %v3652_v29   ;;  %3671 = vperm.xlu0 %5238, %v3666_v44   ;;  %v177_v23 = vrot.slane %v6717_v36, 2  ;;  %v3933_v41 = vperm.slane %v250_v20, 0  ;;  %v4056_v40 = vmul.f32 %v6709_v34, %v6409_v0  ;;  %v4054_v31 = vmul.f32 %v3926_v2, %v6419_v12 }
 0x2d5   : > { %4182 = vst.msk [vmem:[%s6577_s12 + $0x58] sm:$0xff] %vm4170_vm6, %v4117_v26  ;;  %v4311_v29 = vmul.f32 %v3734_v15, %v6419_v12  ;;  %v3741_v9 = vperm.slane %v178_v35, 0  ;;  %v4313_v24 = vmul.f32 %v3736_v22, %v6409_v0  ;;  %v253_v61 = vrot.slane %v6701_v55, 6 }
 0x2d6   : > { %3643 = vperm.xlu2 %5237, %v3638_v57   ;;  %5146 = vst.msk [vmem:[%s6577_s12 + $0x258] sm:$0xff] %vm4170_vm6, %v4374_v21  ;;  %v3364_v44 = vpop.permute.xlu1 %3363  ;;  %v3378_v25 = vpop.permute.xlu0 %3377  ;;  %v4061_v58 = vmul.f32 %v3933_v41, %v6437_v27  ;;  %v3929_v32 = vperm.slane %v247_v17, 0  ;;  %v3739_v59 = vperm.slane %v176_v6, 0  ;;  %v3659_v37 = vperm.slane %v6349_v28, 7  ;;  %v6800_v17 = vld [vmem:[%s7499_s1 + $0x18] sm:$0xff] }
 0x2d7   : > { %4187 = vst.msk [vmem:[%s6577_s12 + $0x80] sm:$0xff] %vm4170_vm6, %v4122_v46  ;;  %v3862_v14 = vmul.f32 %v3734_v15, %v3364_v44  ;;  %v4247_v60 = vmul.f32 %v3926_v2, %v3364_v44  ;;  %v3864_v62 = vmul.f32 %v3736_v22, %v3378_v25  ;;  %v4249_v5 = vmul.f32 %v6709_v34, %v3378_v25  ;;  %v3413_v4 = vpop.permute.xlu2 %3412  ;;  %v6812_v44 = vld [vmem:[%s7498_s0 + $0x18] sm:$0xff] }
 0x2d8   : > { %5151 = vst.msk [vmem:[%s6577_s12 + $0x280] sm:$0xff] %vm4170_vm6, %v4379_v13  ;;  %v3869_v12 = vmul.f32 %v3741_v9, %v3413_v4  ;;  %v4254_v49 = vmul.f32 %v3933_v41, %v3413_v4  ;;  %v4318_v20 = vmul.f32 %v3741_v9, %v6437_v27  ;;  %v181_v34 = vrot.slane %v6717_v36, 6 }
 0x2d9   : > { %v4118_v18 = vadd.f32 %v4054_v31, %v3862_v14  ;;  %v4375_v42 = vsub.f32 %v4247_v60, %v4311_v29  ;;  %v4120_v15 = vadd.f32 %v4056_v40, %v3864_v62  ;;  %v4377_v39 = vsub.f32 %v4249_v5, %v4313_v24 }
 0x2da   : > { %v4125_v0 = vadd.f32 %v4061_v58, %v3869_v12  ;;  %v3708_v56 = vperm.slane %v6279_v16, 6  ;;  %v179_v3 = vrot.slane %v6717_v36, 4  ;;  %v6778_v26 = vperm.slane %v251_v53, 0 }
 0x2db   : > { %4183 = vst.msk [vmem:[%s6577_s12 + $0x60] sm:$0xff] %vm4170_vm6, %v4118_v18  ;;  %v249_v2 = vrot.slane %v6701_v55, 2  ;;  %v4382_v27 = vsub.f32 %v4254_v49, %v4318_v20  ;;  %v3740_v28 = vperm.slane %v177_v23, 0  ;;  %v254_v11 = vrot.slane %v6701_v55, 7 }
 0x2dc   : > { %5147 = vst.msk [vmem:[%s6577_s12 + $0x260] sm:$0xff] %vm4170_vm6, %v4375_v42  ;;  %3678 = vperm.xlu1 %5239, %v3673_v63   ;;  %3692 = vperm.xlu0 %5238, %v3687_v8   ;;  %v180_v35 = vrot.slane %v6717_v36, 5  ;;  %v3936_v21 = vperm.slane %v253_v61, 0  ;;  %v4059_v22 = vmul.f32 %v6746_v45, %v6423_v19  ;;  %v4057_v46 = vmul.f32 %v3929_v32, %v6427_v52 }
 0x2dd   : > { %4185 = vst.msk [vmem:[%s6577_s12 + $0x70] sm:$0xff] %vm4170_vm6, %v4120_v15  ;;  %v4314_v63 = vmul.f32 %v3737_v7, %v6427_v52  ;;  %v3744_v57 = vperm.slane %v181_v34, 0  ;;  %v4316_v52 = vmul.f32 %v3739_v59, %v6423_v19  ;;  %v255_v31 = vrot.slane %v6800_v17, 1 }
 0x2de   : > { %3664 = vperm.xlu2 %5237, %v3659_v37   ;;  %5149 = vst.msk [vmem:[%s6577_s12 + $0x270] sm:$0xff] %vm4170_vm6, %v4377_v39  ;;  %v3385_v8 = vpop.permute.xlu1 %3384  ;;  %v3399_v6 = vpop.permute.xlu0 %3398  ;;  %v3932_v60 = vperm.slane %v249_v2, 0  ;;  %v183_v62 = vrot.slane %v6812_v44, 1  ;;  %v3680_v24 = vperm.slane %v6279_v16, 2  ;;  %v3715_v61 = vperm.slane %v6279_v16, 7 }
 0x2df   : > { %4190 = vst.msk [vmem:[%s6577_s12 + $0x98] sm:$0xff] %vm4170_vm6, %v4125_v0  ;;  %v3865_v13 = vmul.f32 %v3737_v7, %v3385_v8  ;;  %v4250_v53 = vmul.f32 %v3929_v32, %v3385_v8  ;;  %v3867_v23 = vmul.f32 %v3739_v59, %v3399_v6  ;;  %v4252_v41 = vmul.f32 %v6746_v45, %v3399_v6  ;;  %v3434_v40 = vpop.permute.xlu2 %3433 }
 0x2e0   : > { %5154 = vst.msk [vmem:[%s6577_s12 + $0x298] sm:$0xff] %vm4170_vm6, %v4382_v27  ;;  %v3872_v29 = vmul.f32 %v3744_v57, %v3434_v40  ;;  %v4257_v9 = vmul.f32 %v3936_v21, %v3434_v40  ;;  %v4064_v7 = vmul.f32 %v3936_v21, %v6445_v30  ;;  %v4321_v19 = vmul.f32 %v3744_v57, %v6445_v30 }
 0x2e1   : > { %v4121_v25 = vadd.f32 %v4057_v46, %v3865_v13  ;;  %v4378_v45 = vsub.f32 %v4250_v53, %v4314_v63  ;;  %v4123_v14 = vadd.f32 %v4059_v22, %v3867_v23  ;;  %v4380_v5 = vsub.f32 %v4252_v41, %v4316_v52 }
 0x2e2   : > { %v4128_v4 = vadd.f32 %v4064_v7, %v3872_v29  ;;  %v3742_v12 = vperm.slane %v179_v3, 0  ;;  %v182_v49 = vrot.slane %v6717_v36, 7  ;;  %v6822_v58 = vperm.slane %v254_v11, 0 }
 0x2e3   : > { %4186 = vst.msk [vmem:[%s6577_s12 + $0x78] sm:$0xff] %vm4170_vm6, %v4121_v25  ;;  %v4385_v30 = vsub.f32 %v4257_v9, %v4321_v19  ;;  %v252_v18 = vrot.slane %v6701_v55, 5  ;;  %v3743_v42 = vperm.slane %v180_v35, 0  ;;  %v256_v15 = vrot.slane %v6800_v17, 2 }
 0x2e4   : > { %5150 = vst.msk [vmem:[%s6577_s12 + $0x278] sm:$0xff] %vm4170_vm6, %v4378_v45  ;;  %3699 = vperm.xlu1 %5239, %v3694_v43   ;;  %3713 = vperm.xlu0 %5238, %v3708_v56   ;;  %v3939_v32 = vperm.slane %v255_v31, 0  ;;  %v4062_v36 = vmul.f32 %v6778_v26, %v6429_v33  ;;  %v4060_v20 = vmul.f32 %v3932_v60, %v6433_v51  ;;  %v3747_v39 = vperm.slane %v183_v62, 0 }
 0x2e5   : > { %4188 = vst.msk [vmem:[%s6577_s12 + $0x88] sm:$0xff] %vm4170_vm6, %v4123_v14  ;;  %v4317_v34 = vmul.f32 %v3740_v28, %v6433_v51  ;;  %v4319_v2 = vmul.f32 %v3742_v12, %v6429_v33  ;;  %v258_v27 = vrot.slane %v6800_v17, 4  ;;  %v3935_v46 = vperm.slane %v252_v18, 0 }
 0x2e6   : > { %3685 = vperm.xlu2 %5237, %v3680_v24   ;;  %5152 = vst.msk [vmem:[%s6577_s12 + $0x288] sm:$0xff] %vm4170_vm6, %v4380_v5  ;;  %v3406_v43 = vpop.permute.xlu1 %3405  ;;  %v3420_v55 = vpop.permute.xlu0 %3419  ;;  %v4067_v35 = vmul.f32 %v3939_v32, %v6454_v38  ;;  %v4324_v63 = vmul.f32 %v3747_v39, %v6454_v38  ;;  %v3701_v8 = vperm.slane %v6279_v16, 5  ;;  %v3745_v6 = vperm.slane %v182_v49, 0 }
 0x2e7   : > { %4193 = vst.msk [vmem:[%s6577_s12 + $0xb0] sm:$0xff] %vm4170_vm6, %v4128_v4  ;;  %v3868_v59 = vmul.f32 %v3740_v28, %v3406_v43  ;;  %v4253_v0 = vmul.f32 %v3932_v60, %v3406_v43  ;;  %v3870_v37 = vmul.f32 %v3742_v12, %v3420_v55  ;;  %v4255_v56 = vmul.f32 %v6778_v26, %v3420_v55  ;;  %v3455_v3 = vpop.permute.xlu2 %3454 }
 0x2e8   : > { %5157 = vst.msk [vmem:[%s6577_s12 + $0x2b0] sm:$0xff] %vm4170_vm6, %v4385_v30  ;;  %v3875_v51 = vmul.f32 %v3747_v39, %v3455_v3  ;;  %v4260_v11 = vmul.f32 %v3939_v32, %v3455_v3  ;;  %v186_v26 = vrot.slane %v6812_v44, 4  ;;  %v184_v13 = vrot.slane %v6812_v44, 2 }
 0x2e9   : > { %v4124_v21 = vadd.f32 %v4060_v20, %v3868_v59  ;;  %v4381_v22 = vsub.f32 %v4253_v0, %v4317_v34  ;;  %v4126_v28 = vadd.f32 %v4062_v36, %v3870_v37  ;;  %v4383_v57 = vsub.f32 %v4255_v56, %v4319_v2 }
 0x2ea   : > { %v4131_v33 = vadd.f32 %v4067_v35, %v3875_v51  ;;  %v3940_v53 = vperm.slane %v256_v15, 0  ;;  %v4388_v23 = vsub.f32 %v4260_v11, %v4324_v63  ;;  %v3746_v38 = vperm.slane %v6812_v44, 0  ;;  %v6904_v63 = vld [vmem:[%s7498_s0 + $0x20] sm:$0xff] }
 0x2eb   : > { %4189 = vst.msk [vmem:[%s6577_s12 + $0x90] sm:$0xff] %vm4170_vm6, %v4124_v21  ;;  %v259_v41 = vrot.slane %v6800_v17, 5  ;;  %v185_v40 = vrot.slane %v6812_v44, 3  ;;  %v3942_v52 = vperm.slane %v258_v27, 0  ;;  %v4065_v16 = vmul.f32 %v6822_v58, %v6435_v10  ;;  %v6893_v27 = vld [vmem:[%s7499_s1 + $0x20] sm:$0xff] }
 0x2ec   : > { %5153 = vst.msk [vmem:[%s6577_s12 + $0x290] sm:$0xff] %vm4170_vm6, %v4381_v22  ;;  %3720 = vperm.xlu1 %5239, %v3715_v61   ;;  %v4063_v31 = vmul.f32 %v3935_v46, %v6439_v1  ;;  %v4320_v29 = vmul.f32 %v3743_v42, %v6439_v1  ;;  %v3750_v9 = vperm.slane %v186_v26, 0  ;;  %v4322_v5 = vmul.f32 %v3745_v6, %v6435_v10 }
 0x2ed   : > { %4191 = vst.msk [vmem:[%s6577_s12 + $0xa0] sm:$0xff] %vm4170_vm6, %v4126_v28  ;;  %v261_v4 = vrot.slane %v6800_v17, 7  ;;  %v4070_v61 = vmul.f32 %v3942_v52, %v6463_v54  ;;  %v3938_v18 = vperm.slane %v6800_v17, 0  ;;  %v3748_v32 = vperm.slane %v184_v13, 0 }
 0x2ee   : > { %3706 = vperm.xlu2 %5237, %v3701_v8   ;;  %5155 = vst.msk [vmem:[%s6577_s12 + $0x2a0] sm:$0xff] %vm4170_vm6, %v4383_v57  ;;  %v3427_v7 = vpop.permute.xlu1 %3426  ;;  %v3441_v25 = vpop.permute.xlu0 %3440  ;;  %v187_v36 = vrot.slane %v6812_v44, 5  ;;  %v3943_v20 = vperm.slane %v259_v41, 0  ;;  %v257_v39 = vrot.slane %v6800_v17, 3  ;;  %v3749_v43 = vperm.slane %v185_v40, 0 }
 0x2ef   : > { %4196 = vst.msk [vmem:[%s6577_s12 + $0xc8] sm:$0xff] %vm4170_vm6, %v4131_v33  ;;  %v3871_v45 = vmul.f32 %v3743_v42, %v3427_v7  ;;  %v4256_v14 = vmul.f32 %v3935_v46, %v3427_v7  ;;  %v3873_v60 = vmul.f32 %v3745_v6, %v3441_v25  ;;  %v4258_v19 = vmul.f32 %v6822_v58, %v3441_v25  ;;  %v3476_v62 = vpop.permute.xlu2 %3475  ;;  %v7667_v7 = vld [vmem:[#allocation3_spill] sm:$0xff] }
 0x2f0   : > { %5160 = vst.msk [vmem:[%s6577_s12 + $0x2c8] sm:$0xff] %vm4170_vm6, %v4388_v23  ;;  %v3878_v1 = vmul.f32 %v3750_v9, %v3476_v62  ;;  %v4263_v24 = vmul.f32 %v3942_v52, %v3476_v62  ;;  %v4327_v58 = vmul.f32 %v3750_v9, %v6463_v54  ;;  %v189_v42 = vrot.slane %v6812_v44, 7 }
 0x2f1   : > { %v4127_v12 = vadd.f32 %v4063_v31, %v3871_v45  ;;  %v4384_v49 = vsub.f32 %v4256_v14, %v4320_v29  ;;  %v4129_v30 = vadd.f32 %v4065_v16, %v3873_v60  ;;  %v4386_v10 = vsub.f32 %v4258_v19, %v4322_v5  ;;  %v7666_v29 = vld [vmem:[#allocation5_spill] sm:$0xff] }
 0x2f2   : > { %v4134_v15 = vadd.f32 %v4070_v61, %v3878_v1  ;;  %v4391_v34 = vsub.f32 %v4263_v24, %v4327_v58  ;;  %v188_v54 = vrot.slane %v6812_v44, 6  ;;  %v3945_v55 = vperm.slane %v261_v4, 0 }
 0x2f3   : > { %4192 = vst.msk [vmem:[%s6577_s12 + $0xa8] sm:$0xff] %vm4170_vm6, %v4127_v12  ;;  %v4068_v59 = vmul.f32 %v3940_v53, %v6441_v47  ;;  %v4066_v0 = vmul.f32 %v3938_v18, %v6447_v50  ;;  %v4323_v37 = vmul.f32 %v3746_v38, %v6447_v50  ;;  %v3753_v56 = vperm.slane %v189_v42, 0 }
 0x2f4   : > { %5156 = vst.msk [vmem:[%s6577_s12 + $0x2a8] sm:$0xff] %vm4170_vm6, %v4384_v49  ;;  %v4325_v50 = vmul.f32 %v3748_v32, %v6441_v47  ;;  %v263_v22 = vrot.slane %v6893_v27, 2  ;;  %v4073_v26 = vmul.f32 %v3945_v55, %v6472_v48  ;;  %v3941_v6 = vperm.slane %v257_v39, 0 }
 0x2f5   : > { %4194 = vst.msk [vmem:[%s6577_s12 + $0xb8] sm:$0xff] %vm4170_vm6, %v4129_v30  ;;  %v4330_v47 = vmul.f32 %v3753_v56, %v6472_v48  ;;  %v191_v13 = vrot.slane %v6904_v63, 2  ;;  %v3946_v41 = vperm.slane %v6893_v27, 0  ;;  %v260_v52 = vrot.slane %v6800_v17, 6  ;;  %v7668_v30 = vld [vmem:[#allocation14_spill] sm:$0xff] }
 0x2f6   : > { %5158 = vst.msk [vmem:[%s6577_s12 + $0x2b8] sm:$0xff] %vm4170_vm6, %v4386_v10  ;;  %v3448_v3 = vpop.permute.xlu1 %3447  ;;  %v3462_v2 = vpop.permute.xlu0 %3461  ;;  %v3752_v16 = vperm.slane %v188_v54, 0  ;;  %v264_v31 = vrot.slane %v6893_v27, 3  ;;  %v3948_v48 = vperm.slane %v263_v22, 0  ;;  %v4071_v9 = vmul.f32 %v3943_v20, %v7666_v29 }
 0x2f7   : > { %4199 = vst.msk [vmem:[%s6577_s12 + $0xe0] sm:$0xff] %vm4170_vm6, %v4134_v15  ;;  %v3874_v44 = vmul.f32 %v3746_v38, %v3448_v3  ;;  %v4259_v51 = vmul.f32 %v3938_v18, %v3448_v3  ;;  %v3876_v11 = vmul.f32 %v3748_v32, %v3462_v2  ;;  %v4261_v35 = vmul.f32 %v3940_v53, %v3462_v2  ;;  %v3497_v21 = vpop.permute.xlu2 %3496  ;;  %v7669_v3 = vld [vmem:[#allocation8_spill] sm:$0xff] }
 0x2f8   : > { %5163 = vst.msk [vmem:[%s6577_s12 + $0x2e0] sm:$0xff] %vm4170_vm6, %v4391_v34  ;;  %v3881_v28 = vmul.f32 %v3753_v56, %v3497_v21  ;;  %v4266_v46 = vmul.f32 %v3945_v55, %v3497_v21  ;;  %v3751_v38 = vperm.slane %v187_v36, 0  ;;  %v4069_v25 = vmul.f32 %v3941_v6, %v7667_v7 }
 0x2f9   : > { %v4130_v57 = vadd.f32 %v4066_v0, %v3874_v44  ;;  %v4387_v33 = vsub.f32 %v4259_v51, %v4323_v37  ;;  %v4132_v8 = vadd.f32 %v4068_v59, %v3876_v11  ;;  %v4389_v53 = vsub.f32 %v4261_v35, %v4325_v50  ;;  %v7670_v44 = vld [vmem:[#allocation10_spill] sm:$0xff] }
 0x2fa   : > { %v4137_v23 = vadd.f32 %v4073_v26, %v3881_v28  ;;  %v4394_v40 = vsub.f32 %v4266_v46, %v4330_v47  ;;  %v4326_v45 = vmul.f32 %v3749_v43, %v7667_v7  ;;  %v3756_v14 = vperm.slane %v191_v13, 0  ;;  %v7671_v13 = vld [vmem:[#allocation7_spill] sm:$0xff] }
 0x2fb   : > { %4195 = vst.msk [vmem:[%s6577_s12 + $0xc0] sm:$0xff] %vm4170_vm6, %v4130_v57  ;;  %v4328_v24 = vmul.f32 %v3751_v38, %v7666_v29  ;;  %v266_v61 = vrot.slane %v6893_v27, 5  ;;  %v4076_v18 = vmul.f32 %v3948_v48, %v7668_v30  ;;  %v3944_v15 = vperm.slane %v260_v52, 0 }
 0x2fc   : > { %5159 = vst.msk [vmem:[%s6577_s12 + $0x2c0] sm:$0xff] %vm4170_vm6, %v4387_v33  ;;  %v4333_v32 = vmul.f32 %v3756_v14, %v7668_v30  ;;  %v194_v36 = vrot.slane %v6904_v63, 5  ;;  %v3754_v39 = vperm.slane %v6904_v63, 0  ;;  %v3949_v54 = vperm.slane %v264_v31, 0 }
 0x2fd   : > { %4197 = vst.msk [vmem:[%s6577_s12 + $0xd0] sm:$0xff] %vm4170_vm6, %v4132_v8  ;;  %v190_v59 = vrot.slane %v6904_v63, 1  ;;  %v262_v0 = vrot.slane %v6893_v27, 1  ;;  %v267_v37 = vrot.slane %v6893_v27, 6  ;;  %v3951_v56 = vperm.slane %v266_v61, 0 }
 0x2fe   : > { %5161 = vst.msk [vmem:[%s6577_s12 + $0x2d0] sm:$0xff] %vm4170_vm6, %v4389_v53  ;;  %v3469_v60 = vpop.permute.xlu1 %3468  ;;  %v3483_v19 = vpop.permute.xlu0 %3482  ;;  %v4074_v2 = vmul.f32 %v3946_v41, %v7669_v3  ;;  %v4072_v51 = vmul.f32 %v3944_v15, %v7670_v44  ;;  %v4329_v11 = vmul.f32 %v3752_v16, %v7670_v44  ;;  %v3759_v35 = vperm.slane %v194_v36, 0 }
 0x2ff   : > { %4202 = vst.msk [vmem:[%s6577_s12 + $0xf8] sm:$0xff] %vm4170_vm6, %v4137_v23  ;;  %v3877_v17 = vmul.f32 %v3749_v43, %v3469_v60  ;;  %v4262_v62 = vmul.f32 %v3941_v6, %v3469_v60  ;;  %v3879_v5 = vmul.f32 %v3751_v38, %v3483_v19  ;;  %v4264_v4 = vmul.f32 %v3943_v20, %v3483_v19  ;;  %v3518_v1 = vpop.permute.xlu2 %3517  ;;  %v6970_v19 = vld [vmem:[%s7498_s0 + $0x28] sm:$0xff] }
 0x300   : > { %5166 = vst.msk [vmem:[%s6577_s12 + $0x2f8] sm:$0xff] %vm4170_vm6, %v4394_v40  ;;  %v3884_v12 = vmul.f32 %v3756_v14, %v3518_v1  ;;  %v4269_v49 = vmul.f32 %v3948_v48, %v3518_v1  ;;  %v192_v43 = vrot.slane %v6904_v63, 3  ;;  %v4331_v33 = vmul.f32 %v3754_v39, %v7669_v3 }
 0x301   : > { %v4133_v58 = vadd.f32 %v4069_v25, %v3877_v17  ;;  %v4390_v42 = vsub.f32 %v4262_v62, %v4326_v45  ;;  %v4135_v10 = vadd.f32 %v4071_v9, %v3879_v5  ;;  %v4392_v20 = vsub.f32 %v4264_v4, %v4328_v24  ;;  %v7672_v4 = vld [vmem:[#allocation11_spill] sm:$0xff]  ;;  %v7673_v24 = vld [vmem:[#allocation12_spill] sm:$0xff] }
 0x302   : > { %v4140_v34 = vadd.f32 %v4076_v18, %v3884_v12  ;;  %v4397_v55 = vsub.f32 %v4269_v49, %v4333_v32  ;;  %v193_v8 = vrot.slane %v6904_v63, 4  ;;  %v4079_v53 = vmul.f32 %v3951_v56, %v7671_v13 }
 0x303   : > { %4198 = vst.msk [vmem:[%s6577_s12 + $0xd8] sm:$0xff] %vm4170_vm6, %v4133_v58  ;;  %v3755_v52 = vperm.slane %v190_v59, 0  ;;  %v4336_v31 = vmul.f32 %v3759_v35, %v7671_v13  ;;  %v3757_v29 = vperm.slane %v192_v43, 0  ;;  %v195_v7 = vrot.slane %v6904_v63, 6 }
 0x304   : > { %5162 = vst.msk [vmem:[%s6577_s12 + $0x2d8] sm:$0xff] %vm4170_vm6, %v4390_v42  ;;  %v3952_v25 = vperm.slane %v267_v37, 0  ;;  %v265_v45 = vrot.slane %v6893_v27, 4  ;;  %v3758_v60 = vperm.slane %v193_v8, 0  ;;  %v196_v62 = vrot.slane %v6904_v63, 7 }
 0x305   : > { %4200 = vst.msk [vmem:[%s6577_s12 + $0xe8] sm:$0xff] %vm4170_vm6, %v4135_v10  ;;  %v4077_v1 = vmul.f32 %v3949_v54, %v7672_v4  ;;  %v4332_v12 = vmul.f32 %v3755_v52, %v7673_v24  ;;  %v3762_v49 = vperm.slane %v6970_v19, 0  ;;  %v4334_v32 = vmul.f32 %v3757_v29, %v7672_v4 }
 0x306   : > { %5164 = vst.msk [vmem:[%s6577_s12 + $0x2e8] sm:$0xff] %vm4170_vm6, %v4392_v20  ;;  %v3490_v21 = vpop.permute.xlu1 %3489  ;;  %v3504_v50 = vpop.permute.xlu0 %3503  ;;  %v3950_v37 = vperm.slane %v265_v45, 0 }
 0x307   : > { %4205 = vst.msk [vmem:[%s6577_s12 + $0x110] sm:$0xff] %vm4170_vm6, %v4140_v34  ;;  %v3880_v22 = vmul.f32 %v3752_v16, %v3490_v21  ;;  %v4265_v28 = vmul.f32 %v3944_v15, %v3490_v21  ;;  %v3882_v46 = vmul.f32 %v3754_v39, %v3504_v50  ;;  %v4267_v26 = vmul.f32 %v3946_v41, %v3504_v50  ;;  %v3539_v57 = vpop.permute.xlu2 %3538  ;;  %v6958_v41 = vld [vmem:[%s7499_s1 + $0x28] sm:$0xff]  ;;  %v7674_v39 = vld [vmem:[#allocation19_spill] sm:$0xff] }
 0x308   : > { %5169 = vst.msk [vmem:[%s6577_s12 + $0x310] sm:$0xff] %vm4170_vm6, %v4397_v55  ;;  %v3887_v6 = vmul.f32 %v3759_v35, %v3539_v57  ;;  %v4272_v47 = vmul.f32 %v3951_v56, %v3539_v57  ;;  %v3947_v16 = vperm.slane %v262_v0, 0  ;;  %v269_v17 = vrot.slane %v6958_v41, 1 }
 0x309   : > { %v4136_v23 = vadd.f32 %v4072_v51, %v3880_v22  ;;  %v4393_v38 = vsub.f32 %v4265_v28, %v4329_v11  ;;  %v4138_v40 = vadd.f32 %v4074_v2, %v3882_v46  ;;  %v4395_v48 = vsub.f32 %v4267_v26, %v4331_v33  ;;  %v7675_v26 = vld [vmem:[#allocation13_spill] sm:$0xff]  ;;  %v7676_v33 = vld [vmem:[#allocation15_spill] sm:$0xff] }
 0x30a   : > { %v4143_v9 = vadd.f32 %v4079_v53, %v3887_v6  ;;  %v4400_v14 = vsub.f32 %v4272_v47, %v4336_v31  ;;  %v3954_v5 = vperm.slane %v6958_v41, 0  ;;  %v4075_v61 = vmul.f32 %v3947_v16, %v7673_v24 }
 0x30b   : > { %4201 = vst.msk [vmem:[%s6577_s12 + $0xf0] sm:$0xff] %vm4170_vm6, %v4136_v23  ;;  %v271_v36 = vrot.slane %v6958_v41, 3  ;;  %v199_v56 = vrot.slane %v6970_v19, 3  ;;  %v3760_v2 = vperm.slane %v195_v7, 0  ;;  %v197_v51 = vrot.slane %v6970_v19, 1 }
 0x30c   : > { %5165 = vst.msk [vmem:[%s6577_s12 + $0x2f0] sm:$0xff] %vm4170_vm6, %v4393_v38  ;;  %v4082_v43 = vmul.f32 %v3954_v5, %v7674_v39  ;;  %v3955_v11 = vperm.slane %v269_v17, 0  ;;  %v268_v35 = vrot.slane %v6893_v27, 7  ;;  %v3761_v50 = vperm.slane %v196_v62, 0 }
 0x30d   : > { %4203 = vst.msk [vmem:[%s6577_s12 + $0x100] sm:$0xff] %vm4170_vm6, %v4138_v40  ;;  %v272_v22 = vrot.slane %v6958_v41, 4  ;;  %v198_v28 = vrot.slane %v6970_v19, 2  ;;  %v3957_v46 = vperm.slane %v271_v36, 0  ;;  %v4080_v57 = vmul.f32 %v3952_v25, %v7675_v26 }
 0x30e   : > { %5167 = vst.msk [vmem:[%s6577_s12 + $0x300] sm:$0xff] %vm4170_vm6, %v4395_v48  ;;  %v3511_v30 = vpop.permute.xlu1 %3510  ;;  %v3525_v18 = vpop.permute.xlu0 %3524  ;;  %v4078_v8 = vmul.f32 %v3950_v37, %v7676_v33  ;;  %v4335_v6 = vmul.f32 %v3758_v60, %v7676_v33  ;;  %v3765_v47 = vperm.slane %v199_v56, 0  ;;  %v274_v31 = vrot.slane %v6958_v41, 6 }
 0x30f   : > { %4208 = vst.msk [vmem:[%s6577_s12 + $0x128] sm:$0xff] %vm4170_vm6, %v4143_v9  ;;  %v3883_v63 = vmul.f32 %v3755_v52, %v3511_v30  ;;  %v4268_v58 = vmul.f32 %v3947_v16, %v3511_v30  ;;  %v3885_v42 = vmul.f32 %v3757_v29, %v3525_v18  ;;  %v4270_v10 = vmul.f32 %v3949_v54, %v3525_v18  ;;  %v3560_v15 = vpop.permute.xlu2 %3559  ;;  %v7677_v9 = vld [vmem:[#allocation22_spill] sm:$0xff] }
 0x310   : > { %5172 = vst.msk [vmem:[%s6577_s12 + $0x328] sm:$0xff] %vm4170_vm6, %v4400_v14  ;;  %v3890_v20 = vmul.f32 %v3762_v49, %v3560_v15  ;;  %v4275_v34 = vmul.f32 %v3954_v5, %v3560_v15  ;;  %v4339_v54 = vmul.f32 %v3762_v49, %v7674_v39  ;;  %v4337_v16 = vmul.f32 %v3760_v2, %v7675_v26  ;;  %v7679_v15 = vld [vmem:[#allocation17_spill] sm:$0xff] }
 0x311   : > { %v4139_v55 = vadd.f32 %v4075_v61, %v3883_v63  ;;  %v4396_v59 = vsub.f32 %v4268_v58, %v4332_v12  ;;  %v4141_v0 = vadd.f32 %v4077_v1, %v3885_v42  ;;  %v4398_v3 = vsub.f32 %v4270_v10, %v4334_v32  ;;  %v7678_v42 = vld [vmem:[#allocation16_spill] sm:$0xff] }
 0x312   : > { %v4146_v44 = vadd.f32 %v4082_v43, %v3890_v20  ;;  %v4403_v21 = vsub.f32 %v4275_v34, %v4339_v54  ;;  %v4085_v7 = vmul.f32 %v3957_v46, %v7677_v9  ;;  %v202_v62 = vrot.slane %v6970_v19, 6  ;;  %v7034_v43 = vld [vmem:[%s7499_s1 + $0x30] sm:$0xff] }
 0x313   : > { %4204 = vst.msk [vmem:[%s6577_s12 + $0x108] sm:$0xff] %vm4170_vm6, %v4139_v55  ;;  %v3763_v4 = vperm.slane %v197_v51, 0  ;;  %v200_v24 = vrot.slane %v6970_v19, 4  ;;  %v3958_v61 = vperm.slane %v272_v22, 0  ;;  %v270_v12 = vrot.slane %v6958_v41, 2  ;;  %v7045_v51 = vld [vmem:[%s7498_s0 + $0x30] sm:$0xff] }
 0x314   : > { %5168 = vst.msk [vmem:[%s6577_s12 + $0x308] sm:$0xff] %vm4170_vm6, %v4396_v59  ;;  %v3764_v30 = vperm.slane %v198_v28, 0  ;;  %v275_v18 = vrot.slane %v6958_v41, 7  ;;  %v201_v63 = vrot.slane %v6970_v19, 5  ;;  %v3960_v58 = vperm.slane %v274_v31, 0 }
 0x315   : > { %4206 = vst.msk [vmem:[%s6577_s12 + $0x118] sm:$0xff] %vm4170_vm6, %v4141_v0  ;;  %v4083_v10 = vmul.f32 %v3955_v11, %v7678_v42  ;;  %v4338_v36 = vmul.f32 %v3761_v50, %v7679_v15  ;;  %v3768_v20 = vperm.slane %v202_v62, 0  ;;  %v4340_v56 = vmul.f32 %v3763_v4, %v7678_v42 }
 0x316   : > { %5170 = vst.msk [vmem:[%s6577_s12 + $0x318] sm:$0xff] %vm4170_vm6, %v4398_v3  ;;  %v3532_v27 = vpop.permute.xlu1 %3531  ;;  %v3546_v13 = vpop.permute.xlu0 %3545  ;;  %v276_v3 = vrot.slane %v7034_v43, 1  ;;  %v3956_v28 = vperm.slane %v270_v12, 0  ;;  %v204_v26 = vrot.slane %v7045_v51, 1 }
 0x317   : > { %4211 = vst.msk [vmem:[%s6577_s12 + $0x140] sm:$0xff] %vm4170_vm6, %v4146_v44  ;;  %v3886_v53 = vmul.f32 %v3758_v60, %v3532_v27  ;;  %v4271_v23 = vmul.f32 %v3950_v37, %v3532_v27  ;;  %v3888_v38 = vmul.f32 %v3760_v2, %v3546_v13  ;;  %v4273_v40 = vmul.f32 %v3952_v25, %v3546_v13  ;;  %v3581_v52 = vpop.permute.xlu2 %3580 }
 0x318   : > { %5175 = vst.msk [vmem:[%s6577_s12 + $0x340] sm:$0xff] %vm4170_vm6, %v4403_v21  ;;  %v3893_v48 = vmul.f32 %v3765_v47, %v3581_v52  ;;  %v4278_v29 = vmul.f32 %v3957_v46, %v3581_v52  ;;  %v3953_v60 = vperm.slane %v268_v35, 0  ;;  %v4342_v25 = vmul.f32 %v3765_v47, %v7677_v9  ;;  %v7680_v35 = vld [vmem:[#allocation9_spill] sm:$0xff] }
 0x319   : > { %v4142_v45 = vadd.f32 %v4078_v8, %v3886_v53  ;;  %v4399_v14 = vsub.f32 %v4271_v23, %v4335_v6  ;;  %v4144_v17 = vadd.f32 %v4080_v57, %v3888_v38  ;;  %v4401_v5 = vsub.f32 %v4273_v40, %v4337_v16  ;;  %v7681_v40 = vld [vmem:[#allocation18_spill] sm:$0xff]  ;;  %v7682_v16 = vld [vmem:[#allocation20_spill] sm:$0xff] }
 0x31a   : > { %v4149_v1 = vadd.f32 %v4085_v7, %v3893_v48  ;;  %v4406_v49 = vsub.f32 %v4278_v29, %v4342_v25  ;;  %v4081_v32 = vmul.f32 %v3953_v60, %v7679_v15  ;;  %v4088_v21 = vmul.f32 %v3960_v58, %v7680_v35 }
 0x31b   : > { %4207 = vst.msk [vmem:[%s6577_s12 + $0x120] sm:$0xff] %vm4170_vm6, %v4142_v45  ;;  %v4345_v46 = vmul.f32 %v3768_v20, %v7680_v35  ;;  %v3766_v8 = vperm.slane %v200_v24, 0  ;;  %v203_v6 = vrot.slane %v6970_v19, 7  ;;  %v3961_v47 = vperm.slane %v275_v18, 0 }
 0x31c   : > { %5171 = vst.msk [vmem:[%s6577_s12 + $0x320] sm:$0xff] %vm4170_vm6, %v4399_v14  ;;  %v273_v13 = vrot.slane %v6958_v41, 5  ;;  %v3767_v53 = vperm.slane %v201_v63, 0  ;;  %v277_v23 = vrot.slane %v7034_v43, 2  ;;  %v3963_v38 = vperm.slane %v276_v3, 0 }
 0x31d   : > { %4209 = vst.msk [vmem:[%s6577_s12 + $0x130] sm:$0xff] %vm4170_vm6, %v4144_v17  ;;  %v4086_v52 = vmul.f32 %v3958_v61, %v7681_v40  ;;  %v4084_v31 = vmul.f32 %v3956_v28, %v7682_v16  ;;  %v4341_v19 = vmul.f32 %v3764_v30, %v7682_v16  ;;  %v3771_v48 = vperm.slane %v204_v26, 0 }
 0x31e   : > { %5173 = vst.msk [vmem:[%s6577_s12 + $0x330] sm:$0xff] %vm4170_vm6, %v4401_v5  ;;  %v3553_v34 = vpop.permute.xlu1 %3552  ;;  %v3567_v39 = vpop.permute.xlu0 %3566  ;;  %v279_v25 = vrot.slane %v7034_v43, 4  ;;  %v3769_v42 = vperm.slane %v203_v6, 0  ;;  %v3964_v15 = vperm.slane %v277_v23, 0 }
 0x31f   : > { %4214 = vst.msk [vmem:[%s6577_s12 + $0x158] sm:$0xff] %vm4170_vm6, %v4149_v1  ;;  %v3889_v55 = vmul.f32 %v3761_v50, %v3553_v34  ;;  %v4274_v59 = vmul.f32 %v3953_v60, %v3553_v34  ;;  %v3891_v0 = vmul.f32 %v3763_v4, %v3567_v39  ;;  %v4276_v37 = vmul.f32 %v3955_v11, %v3567_v39  ;;  %v7683_v4 = vld [vmem:[#allocation27_spill] sm:$0xff] }
 0x320   : > { %v3602_v54 = vpop.permute.xlu2 %3601  ;;  %5178 = vst.msk [vmem:[%s6577_s12 + $0x358] sm:$0xff] %vm4170_vm6, %v4406_v49  ;;  %v4343_v60 = vmul.f32 %v3766_v8, %v7681_v40  ;;  %v4091_v1 = vmul.f32 %v3963_v38, %v7683_v4  ;;  %v4348_v18 = vmul.f32 %v3771_v48, %v7683_v4  ;;  %v206_v34 = vrot.slane %v7045_v51, 3 }
 0x321   : > { %v3896_v2 = vmul.f32 %v3768_v20, %v3602_v54  ;;  %v4281_v44 = vmul.f32 %v3960_v58, %v3602_v54  ;;  %v4145_v50 = vadd.f32 %v4081_v32, %v3889_v55  ;;  %v4402_v11 = vsub.f32 %v4274_v59, %v4338_v36  ;;  %v7684_v55 = vld [vmem:[#allocation21_spill] sm:$0xff] }
 0x322   : > { %v4147_v22 = vadd.f32 %v4083_v10, %v3891_v0  ;;  %v4404_v57 = vsub.f32 %v4276_v37, %v4340_v56  ;;  %v205_v10 = vrot.slane %v7045_v51, 2  ;;  %v3770_v36 = vperm.slane %v7045_v51, 0  ;;  %v7685_v0 = vld [vmem:[#allocation23_spill] sm:$0xff] }
 0x323   : > { %4210 = vst.msk [vmem:[%s6577_s12 + $0x138] sm:$0xff] %vm4170_vm6, %v4145_v50  ;;  %v4152_v33 = vadd.f32 %v4088_v21, %v3896_v2  ;;  %v4409_v27 = vsub.f32 %v4281_v44, %v4345_v46  ;;  %v280_v20 = vrot.slane %v7034_v43, 5  ;;  %v3966_v39 = vperm.slane %v279_v25, 0 }
 0x324   : > { %5174 = vst.msk [vmem:[%s6577_s12 + $0x338] sm:$0xff] %vm4170_vm6, %v4402_v11  ;;  %v4089_v59 = vmul.f32 %v3961_v47, %v7684_v55  ;;  %v4344_v54 = vmul.f32 %v3767_v53, %v7685_v0  ;;  %v3772_v40 = vperm.slane %v205_v10, 0 }
 0x325   : > { %4212 = vst.msk [vmem:[%s6577_s12 + $0x148] sm:$0xff] %vm4170_vm6, %v4147_v22  ;;  %v4346_v22 = vmul.f32 %v3769_v42, %v7684_v55  ;;  %v3967_v16 = vperm.slane %v280_v20, 0 }
 0x326   : > { %5176 = vst.msk [vmem:[%s6577_s12 + $0x348] sm:$0xff] %vm4170_vm6, %v4404_v57  ;;  %v3574_v29 = vpop.permute.xlu1 %3573  ;;  %v3588_v9 = vpop.permute.xlu0 %3587  ;;  %v7686_v57 = vld [vmem:[#allocation4_spill] sm:$0xff] }
 0x327   : > { %4217 = vst.msk [vmem:[%s6577_s12 + $0x170] sm:$0xff] %vm4170_vm6, %v4152_v33  ;;  %v3892_v41 = vmul.f32 %v3764_v30, %v3574_v29  ;;  %v4277_v7 = vmul.f32 %v3956_v28, %v3574_v29  ;;  %v3894_v45 = vmul.f32 %v3766_v8, %v3588_v9  ;;  %v4279_v14 = vmul.f32 %v3958_v61, %v3588_v9 }
 0x328   : > { %v3623_v17 = vpop.permute.xlu2 %3622  ;;  %5181 = vst.msk [vmem:[%s6577_s12 + $0x370] sm:$0xff] %vm4170_vm6, %v4409_v27  ;;  %v3959_v30 = vperm.slane %v273_v13, 0  ;;  %v207_v61 = vrot.slane %v7045_v51, 4  ;;  %v282_v28 = vrot.slane %v7034_v43, 7  ;;  %v4094_v33 = vmul.f32 %v3966_v39, %v7686_v57 }
 0x329   : > { %v3899_v62 = vmul.f32 %v3771_v48, %v3623_v17  ;;  %v4284_v5 = vmul.f32 %v3963_v38, %v3623_v17  ;;  %v4148_v24 = vadd.f32 %v4084_v31, %v3892_v41  ;;  %v4405_v12 = vsub.f32 %v4277_v7, %v4341_v19  ;;  %v7687_v41 = vld [vmem:[#allocation24_spill] sm:$0xff] }
 0x32a   : > { %v4150_v49 = vadd.f32 %v4086_v52, %v3894_v45  ;;  %v4407_v63 = vsub.f32 %v4279_v14, %v4343_v60  ;;  %v4087_v37 = vmul.f32 %v3959_v30, %v7685_v0  ;;  %v3774_v56 = vperm.slane %v207_v61, 0  ;;  %v7688_v45 = vld [vmem:[#allocation25_spill] sm:$0xff] }
 0x32b   : > { %4213 = vst.msk [vmem:[%s6577_s12 + $0x150] sm:$0xff] %vm4170_vm6, %v4148_v24  ;;  %v4155_v58 = vadd.f32 %v4091_v1, %v3899_v62  ;;  %v4412_v32 = vsub.f32 %v4284_v5, %v4348_v18  ;;  %v3962_v13 = vperm.slane %v7034_v43, 0  ;;  %v208_v52 = vrot.slane %v7045_v51, 5  ;;  %v7115_v5 = vld [vmem:[%s7499_s1 + $0x38] sm:$0xff] }
 0x32c   : > { %5177 = vst.msk [vmem:[%s6577_s12 + $0x350] sm:$0xff] %vm4170_vm6, %v4405_v12  ;;  %v278_v19 = vrot.slane %v7034_v43, 3  ;;  %v3773_v48 = vperm.slane %v206_v34, 0  ;;  %v209_v29 = vrot.slane %v7045_v51, 6  ;;  %v3969_v9 = vperm.slane %v282_v28, 0 }
 0x32d   : > { %4215 = vst.msk [vmem:[%s6577_s12 + $0x160] sm:$0xff] %vm4170_vm6, %v4150_v49  ;;  %v4092_v7 = vmul.f32 %v3964_v15, %v7687_v41  ;;  %v4090_v14 = vmul.f32 %v3962_v13, %v7688_v45  ;;  %v4347_v17 = vmul.f32 %v3770_v36, %v7688_v45  ;;  %v4349_v49 = vmul.f32 %v3772_v40, %v7687_v41 }
 0x32e   : > { %5179 = vst.msk [vmem:[%s6577_s12 + $0x360] sm:$0xff] %vm4170_vm6, %v4407_v63  ;;  %v3595_v3 = vpop.permute.xlu1 %3594  ;;  %v3609_v2 = vpop.permute.xlu0 %3608  ;;  %v7126_v63 = vld [vmem:[%s7498_s0 + $0x38] sm:$0xff] }
 0x32f   : > { %4220 = vst.msk [vmem:[%s6577_s12 + $0x188] sm:$0xff] %vm4170_vm6, %v4155_v58  ;;  %v3895_v44 = vmul.f32 %v3767_v53, %v3595_v3  ;;  %v4280_v35 = vmul.f32 %v3959_v30, %v3595_v3  ;;  %v3897_v21 = vmul.f32 %v3769_v42, %v3609_v2  ;;  %v4282_v50 = vmul.f32 %v3961_v47, %v3609_v2  ;;  %v7689_v58 = vld [vmem:[#allocation32_spill] sm:$0xff]  ;;  %v7690_v2 = vld [vmem:[#allocation26_spill] sm:$0xff] }
 0x330   : > { %v3644_v11 = vpop.permute.xlu2 %3643  ;;  %5184 = vst.msk [vmem:[%s6577_s12 + $0x388] sm:$0xff] %vm4170_vm6, %v4412_v32  ;;  %v4351_v47 = vmul.f32 %v3774_v56, %v7686_v57  ;;  %v210_v53 = vrot.slane %v7045_v51, 7  ;;  %v284_v30 = vrot.slane %v7115_v5, 2  ;;  %v4097_v42 = vmul.f32 %v3969_v9, %v7689_v58 }
 0x331   : > { %v3902_v46 = vmul.f32 %v3774_v56, %v3644_v11  ;;  %v4287_v26 = vmul.f32 %v3966_v39, %v3644_v11  ;;  %v4151_v8 = vadd.f32 %v4087_v37, %v3895_v44  ;;  %v4408_v6 = vsub.f32 %v4280_v35, %v4344_v54  ;;  %v7691_v35 = vld [vmem:[#allocation28_spill] sm:$0xff] }
 0x332   : > { %v4153_v27 = vadd.f32 %v4089_v59, %v3897_v21  ;;  %v4410_v23 = vsub.f32 %v4282_v50, %v4346_v22  ;;  %v3777_v60 = vperm.slane %v210_v53, 0  ;;  %v212_v34 = vrot.slane %v7126_v63, 2 }
 0x333   : > { %4216 = vst.msk [vmem:[%s6577_s12 + $0x168] sm:$0xff] %vm4170_vm6, %v4151_v8  ;;  %v4158_v38 = vadd.f32 %v4094_v33, %v3902_v46  ;;  %v4415_v31 = vsub.f32 %v4287_v26, %v4351_v47  ;;  %v3775_v59 = vperm.slane %v208_v52, 0  ;;  %v3970_v37 = vperm.slane %v7115_v5, 0  ;;  %v7692_v47 = vld [vmem:[#allocation35_spill] sm:$0xff] }
 0x334   : > { %5180 = vst.msk [vmem:[%s6577_s12 + $0x368] sm:$0xff] %vm4170_vm6, %v4408_v6  ;;  %v4354_v20 = vmul.f32 %v3777_v60, %v7689_v58  ;;  %v281_v54 = vrot.slane %v7034_v43, 6  ;;  %v3776_v56 = vperm.slane %v209_v29, 0  ;;  %v3972_v3 = vperm.slane %v284_v30, 0 }
 0x335   : > { %4218 = vst.msk [vmem:[%s6577_s12 + $0x178] sm:$0xff] %vm4170_vm6, %v4153_v27  ;;  %v4095_v44 = vmul.f32 %v3967_v16, %v7690_v2  ;;  %v4350_v50 = vmul.f32 %v3773_v48, %v7691_v35  ;;  %v3780_v11 = vperm.slane %v212_v34, 0  ;;  %v4352_v8 = vmul.f32 %v3775_v59, %v7690_v2 }
 0x336   : > { %5182 = vst.msk [vmem:[%s6577_s12 + $0x378] sm:$0xff] %vm4170_vm6, %v4410_v23  ;;  %v3616_v25 = vpop.permute.xlu1 %3615  ;;  %v3630_v62 = vpop.permute.xlu0 %3629  ;;  %v287_v6 = vrot.slane %v7115_v5, 5  ;;  %v4100_v53 = vmul.f32 %v3972_v3, %v7692_v47  ;;  %v3968_v52 = vperm.slane %v281_v54, 0  ;;  %v3778_v29 = vperm.slane %v7126_v63, 0 }
 0x337   : > { %4223 = vst.msk [vmem:[%s6577_s12 + $0x1a0] sm:$0xff] %vm4170_vm6, %v4158_v38  ;;  %v3898_v51 = vmul.f32 %v3770_v36, %v3616_v25  ;;  %v4283_v4 = vmul.f32 %v3962_v13, %v3616_v25  ;;  %v3900_v1 = vmul.f32 %v3772_v40, %v3630_v62  ;;  %v4285_v24 = vmul.f32 %v3964_v15, %v3630_v62  ;;  %v7694_v62 = vld [vmem:[#allocation30_spill] sm:$0xff] }
 0x338   : > { %v3665_v12 = vpop.permute.xlu2 %3664  ;;  %5187 = vst.msk [vmem:[%s6577_s12 + $0x3a0] sm:$0xff] %vm4170_vm6, %v4415_v31  ;;  %v3965_v36 = vperm.slane %v278_v19, 0  ;;  %v4357_v31 = vmul.f32 %v3780_v11, %v7692_v47  ;;  %v211_v45 = vrot.slane %v7126_v63, 1 }
 0x339   : > { %v3905_v18 = vmul.f32 %v3777_v60, %v3665_v12  ;;  %v4290_v61 = vmul.f32 %v3969_v9, %v3665_v12  ;;  %v4154_v10 = vadd.f32 %v4090_v14, %v3898_v51  ;;  %v4411_v15 = vsub.f32 %v4283_v4, %v4347_v17  ;;  %v7693_v60 = vld [vmem:[#allocation29_spill] sm:$0xff] }
 0x33a   : > { %v4156_v32 = vadd.f32 %v4092_v7, %v3900_v1  ;;  %v4413_v39 = vsub.f32 %v4285_v24, %v4349_v49  ;;  %v4093_v21 = vmul.f32 %v3965_v36, %v7691_v35  ;;  %v285_v9 = vrot.slane %v7115_v5, 3 }
 0x33b   : > { %4219 = vst.msk [vmem:[%s6577_s12 + $0x180] sm:$0xff] %vm4170_vm6, %v4154_v10  ;;  %v4161_v55 = vadd.f32 %v4097_v42, %v3905_v18  ;;  %v4418_v0 = vsub.f32 %v4290_v61, %v4354_v20  ;;  %v213_v7 = vrot.slane %v7126_v63, 3  ;;  %v283_v14 = vrot.slane %v7115_v5, 1 }
 0x33c   : > { %5183 = vst.msk [vmem:[%s6577_s12 + $0x380] sm:$0xff] %vm4170_vm6, %v4411_v15  ;;  %v3975_v17 = vperm.slane %v287_v6, 0  ;;  %v4098_v25 = vmul.f32 %v3970_v37, %v7693_v60  ;;  %v4096_v51 = vmul.f32 %v3968_v52, %v7694_v62  ;;  %v4353_v4 = vmul.f32 %v3776_v56, %v7694_v62 }
 0x33d   : > { %4221 = vst.msk [vmem:[%s6577_s12 + $0x190] sm:$0xff] %vm4170_vm6, %v4156_v32  ;;  %v4355_v42 = vmul.f32 %v3778_v29, %v7693_v60  ;;  %v3973_v10 = vperm.slane %v285_v9, 0  ;;  %v214_v35 = vrot.slane %v7126_v63, 4  ;;  %v7699_v9 = vld [vmem:[#allocation36_spill] sm:$0xff] }
 0x33e   : > { %5185 = vst.msk [vmem:[%s6577_s12 + $0x390] sm:$0xff] %vm4170_vm6, %v4413_v39  ;;  %v3637_v22 = vpop.permute.xlu1 %3636  ;;  %v3651_v28 = vpop.permute.xlu0 %3650 }
 0x33f   : > { %4226 = vst.msk [vmem:[%s6577_s12 + $0x1b8] sm:$0xff] %vm4170_vm6, %v4161_v55  ;;  %v3901_v46 = vmul.f32 %v3773_v48, %v3637_v22  ;;  %v4286_v43 = vmul.f32 %v3965_v36, %v3637_v22  ;;  %v3903_v26 = vmul.f32 %v3775_v59, %v3651_v28  ;;  %v4288_v57 = vmul.f32 %v3967_v16, %v3651_v28  ;;  %v7695_v36 = vld [vmem:[#allocation6_spill] sm:$0xff] }
 0x340   : > { %v3686_v33 = vpop.permute.xlu2 %3685  ;;  %5190 = vst.msk [vmem:[%s6577_s12 + $0x3b8] sm:$0xff] %vm4170_vm6, %v4418_v0  ;;  %v215_v16 = vrot.slane %v7126_v63, 5  ;;  %v4103_v20 = vmul.f32 %v3975_v17, %v7695_v36  ;;  %v3779_v59 = vperm.slane %v211_v45, 0  ;;  %v3971_v0 = vperm.slane %v283_v14, 0 }
 0x341   : > { %v3908_v27 = vmul.f32 %v3780_v11, %v3686_v33  ;;  %v4293_v13 = vmul.f32 %v3972_v3, %v3686_v33  ;;  %v4157_v23 = vadd.f32 %v4093_v21, %v3901_v46  ;;  %v4414_v38 = vsub.f32 %v4286_v43, %v4350_v50  ;;  %v7696_v21 = vld [vmem:[#allocation31_spill] sm:$0xff]  ;;  %v7697_v11 = vld [vmem:[#allocation33_spill] sm:$0xff] }
 0x342   : > { %v4159_v40 = vadd.f32 %v4095_v44, %v3903_v26  ;;  %v4416_v19 = vsub.f32 %v4288_v57, %v4352_v8  ;;  %v3783_v1 = vperm.slane %v215_v16, 0  ;;  %v3781_v3 = vperm.slane %v213_v7, 0 }
 0x343   : > { %4222 = vst.msk [vmem:[%s6577_s12 + $0x198] sm:$0xff] %vm4170_vm6, %v4157_v23  ;;  %v4164_v48 = vadd.f32 %v4100_v53, %v3908_v27  ;;  %v4421_v41 = vsub.f32 %v4293_v13, %v4357_v31  ;;  %v288_v44 = vrot.slane %v7115_v5, 6  ;;  %v4101_v50 = vmul.f32 %v3973_v10, %v7696_v21 }
 0x344   : > { %5186 = vst.msk [vmem:[%s6577_s12 + $0x398] sm:$0xff] %vm4170_vm6, %v4414_v38  ;;  %v4099_v22 = vmul.f32 %v3971_v0, %v7697_v11  ;;  %v4356_v28 = vmul.f32 %v3779_v59, %v7697_v11  ;;  %v286_v46 = vrot.slane %v7115_v5, 4  ;;  %v4358_v27 = vmul.f32 %v3781_v3, %v7696_v21  ;;  %v4811_v21 = vld [vmem:[%s6577_s12 + $0x70] sm:$0xff] (%p5321_p4)  ;;  %v4815_v11 = vld [vmem:[%s6577_s12 + $0x80] sm:$0xff] (%p5321_p4) }
 0x345   : > { %4224 = vst.msk [vmem:[%s6577_s12 + $0x1a8] sm:$0xff] %vm4170_vm6, %v4159_v40  ;;  %v216_v13 = vrot.slane %v7126_v63, 6  ;;  %v3976_v38 = vperm.slane %v288_v44, 0  ;;  %v3782_v40 = vperm.slane %v214_v35, 0  ;;  %v289_v45 = vrot.slane %v7115_v5, 7  ;;  %v4807_v44 = vld [vmem:[%s6577_s12 + $0x60] sm:$0xff] (%p5321_p4) }
 0x346   : > { %5188 = vst.msk [vmem:[%s6577_s12 + $0x3a8] sm:$0xff] %vm4170_vm6, %v4416_v19  ;;  %v3658_v24 = vpop.permute.xlu1 %3657  ;;  %v3672_v12 = vpop.permute.xlu0 %3671  ;;  %v217_v19 = vrot.slane %v7126_v63, 7  ;;  %v4809_v35 = vld [vmem:[%s6577_s12 + $0x68] sm:$0xff] (%p5321_p4) }
 0x347   : > { %4229 = vst.msk [vmem:[%s6577_s12 + $0x1d0] sm:$0xff] %vm4170_vm6, %v4164_v48  ;;  %v3904_v49 = vmul.f32 %v3776_v56, %v3658_v24  ;;  %v4289_v30 = vmul.f32 %v3968_v52, %v3658_v24  ;;  %v3906_v18 = vmul.f32 %v3778_v29, %v3672_v12  ;;  %v4291_v61 = vmul.f32 %v3970_v37, %v3672_v12  ;;  %v7698_v48 = vld [vmem:[#allocation34_spill] sm:$0xff] }
 0x348   : > { %v3707_v58 = vpop.permute.xlu2 %3706  ;;  %5193 = vst.msk [vmem:[%s6577_s12 + $0x3d0] sm:$0xff] %vm4170_vm6, %v4421_v41  ;;  %v4360_v37 = vmul.f32 %v3783_v1, %v7695_v36  ;;  %v3974_v52 = vperm.slane %v286_v46, 0  ;;  %v3784_v16 = vperm.slane %v216_v13, 0  ;;  %v4104_v29 = vmul.f32 %v3976_v38, %v7698_v48  ;;  %v4783_v36 = vld [vmem:[%s6577_s12] sm:$0xff] (%p5321_p4)  ;;  %v4821_v46 = vld [vmem:[%s6577_s12 + $0x98] sm:$0xff] (%p5321_p4) }
 0x349   : > { %v3911_v15 = vmul.f32 %v3783_v1, %v3707_v58  ;;  %v4296_v32 = vmul.f32 %v3975_v17, %v3707_v58  ;;  %v4160_v34 = vadd.f32 %v4096_v51, %v3904_v49  ;;  %v4417_v39 = vsub.f32 %v4289_v30, %v4353_v4  ;;  %4784 = vst [vmem:[%s7230_s4] sm:$0xff] (%p5321_p4), %v4783_v36  ;;  %v4837_v13 = vld [vmem:[%s6577_s12 + $0xd8] sm:$0xff] (%p5321_p4)  ;;  %v4911_v36 = vld [vmem:[%s6577_s12 + $0x200] sm:$0xff] (%p5321_p4) }
 0x34a   : > { %v4162_v55 = vadd.f32 %v4098_v25, %v3906_v18  ;;  %v4419_v54 = vsub.f32 %v4291_v61, %v4355_v42  ;;  %v4102_v41 = vmul.f32 %v3974_v52, %v7699_v9  ;;  %v4359_v7 = vmul.f32 %v3782_v40, %v7699_v9  ;;  %v7700_v18 = vld [vmem:[#allocation37_spill] sm:$0xff]  ;;  %4808 = vst [vmem:[%s7230_s4 + $0xc0] sm:$0xff] (%p5321_p4), %v4807_v44  ;;  %v4861_v9 = vld [vmem:[%s6577_s12 + $0x138] sm:$0xff] (%p5321_p4)  ;;  %v4935_v44 = vld [vmem:[%s6577_s12 + $0x260] sm:$0xff] (%p5321_p4) }
 0x34b   : > { %4225 = vst.msk [vmem:[%s6577_s12 + $0x1b0] sm:$0xff] %vm4170_vm6, %v4160_v34  ;;  %v4167_v56 = vadd.f32 %v4103_v20, %v3911_v15  ;;  %v4424_v2 = vsub.f32 %v4296_v32, %v4360_v37  ;;  %v4361_v51 = vmul.f32 %v3784_v16, %v7698_v48  ;;  %v3785_v5 = vperm.slane %v217_v19, 0  ;;  %v4785_v20 = vld [vmem:[%s6577_s12 + $0x8] sm:$0xff] (%p5321_p4)  ;;  %v4787_v34 = vld [vmem:[%s6577_s12 + $0x10] sm:$0xff] (%p5321_p4)  ;;  %v4797_v37 = vld [vmem:[%s6577_s12 + $0x38] sm:$0xff] (%p5321_p4) }
 0x34c   : > { %5189 = vst.msk [vmem:[%s6577_s12 + $0x3b0] sm:$0xff] %vm4170_vm6, %v4417_v39  ;;  %v3977_v49 = vperm.slane %v289_v45, 0  ;;  %v4789_v39 = vld [vmem:[%s6577_s12 + $0x18] sm:$0xff] (%p5321_p4)  ;;  %v4855_v19 = vld [vmem:[%s6577_s12 + $0x120] sm:$0xff] (%p5321_p4)  ;;  %v4857_v48 = vld [vmem:[%s6577_s12 + $0x128] sm:$0xff] (%p5321_p4) }
 0x34d   : > { %4227 = vst.msk [vmem:[%s6577_s12 + $0x1c0] sm:$0xff] %vm4170_vm6, %v4162_v55  ;;  %v4362_v58 = vmul.f32 %v3785_v5, %v7700_v18  ;;  %v4791_v55 = vld [vmem:[%s6577_s12 + $0x20] sm:$0xff] (%p5321_p4)  ;;  %v4867_v45 = vld [vmem:[%s6577_s12 + $0x150] sm:$0xff] (%p5321_p4) }
 0x34e   : > { %5191 = vst.msk [vmem:[%s6577_s12 + $0x3c0] sm:$0xff] %vm4170_vm6, %v4419_v54  ;;  %v3679_v43 = vpop.permute.xlu1 %3678  ;;  %v3693_v26 = vpop.permute.xlu0 %3692  ;;  %v4105_v61 = vmul.f32 %v3977_v49, %v7700_v18  ;;  %v4799_v54 = vld [vmem:[%s6577_s12 + $0x40] sm:$0xff] (%p5321_p4) }
 0x34f   : > { %4232 = vst.msk [vmem:[%s6577_s12 + $0x1e8] sm:$0xff] %vm4170_vm6, %v4167_v56  ;;  %v3907_v57 = vmul.f32 %v3779_v59, %v3679_v43  ;;  %v4292_v33 = vmul.f32 %v3971_v0, %v3679_v43  ;;  %v3909_v8 = vmul.f32 %v3781_v3, %v3693_v26  ;;  %v4294_v6 = vmul.f32 %v3973_v10, %v3693_v26  ;;  %v4793_v59 = vld [vmem:[%s6577_s12 + $0x28] sm:$0xff] (%p5321_p4)  ;;  %v4795_v0 = vld [vmem:[%s6577_s12 + $0x30] sm:$0xff] (%p5321_p4)  ;;  %v4823_v43 = vld [vmem:[%s6577_s12 + $0xa0] sm:$0xff] (%p5321_p4) }
 0x350   : > { %5196 = vst.msk [vmem:[%s6577_s12 + $0x3e8] sm:$0xff] %vm4170_vm6, %v4424_v2  ;;  %v4801_v56 = vld [vmem:[%s6577_s12 + $0x48] sm:$0xff] (%p5321_p4)  ;;  %v4803_v3 = vld [vmem:[%s6577_s12 + $0x50] sm:$0xff] (%p5321_p4)  ;;  %v4805_v2 = vld [vmem:[%s6577_s12 + $0x58] sm:$0xff] (%p5321_p4) }
 0x351   : > { %v4163_v47 = vadd.f32 %v4099_v22, %v3907_v57  ;;  %v4420_v53 = vsub.f32 %v4292_v33, %v4356_v28  ;;  %v4165_v23 = vadd.f32 %v4101_v50, %v3909_v8  ;;  %v4422_v31 = vsub.f32 %v4294_v6, %v4358_v27  ;;  %4786 = vst [vmem:[%s7230_s4 + $0x10] sm:$0xff] (%p5321_p4), %v4785_v20  ;;  %v4813_v50 = vld [vmem:[%s6577_s12 + $0x78] sm:$0xff] (%p5321_p4)  ;;  %v4817_v22 = vld [vmem:[%s6577_s12 + $0x88] sm:$0xff] (%p5321_p4)  ;;  %v4819_v28 = vld [vmem:[%s6577_s12 + $0x90] sm:$0xff] (%p5321_p4) }
 0x352   : > { %4788 = vst [vmem:[%s7230_s4 + $0x20] sm:$0xff] (%p5321_p4), %v4787_v34  ;;  %v4825_v26 = vld [vmem:[%s6577_s12 + $0xa8] sm:$0xff] (%p5321_p4)  ;;  %v4827_v57 = vld [vmem:[%s6577_s12 + $0xb0] sm:$0xff] (%p5321_p4)  ;;  %v4829_v33 = vld [vmem:[%s6577_s12 + $0xb8] sm:$0xff] (%p5321_p4) }
 0x353   : > { %4228 = vst.msk [vmem:[%s6577_s12 + $0x1c8] sm:$0xff] %vm4170_vm6, %v4163_v47  ;;  %v4831_v8 = vld [vmem:[%s6577_s12 + $0xc0] sm:$0xff] (%p5321_p4)  ;;  %v4833_v6 = vld [vmem:[%s6577_s12 + $0xc8] sm:$0xff] (%p5321_p4)  ;;  %v4835_v27 = vld [vmem:[%s6577_s12 + $0xd0] sm:$0xff] (%p5321_p4) }
 0x354   : > { %5192 = vst.msk [vmem:[%s6577_s12 + $0x3c8] sm:$0xff] %vm4170_vm6, %v4420_v53  ;;  %v4839_v47 = vld [vmem:[%s6577_s12 + $0xe0] sm:$0xff] (%p5321_p4)  ;;  %v4841_v53 = vld [vmem:[%s6577_s12 + $0xe8] sm:$0xff] (%p5321_p4)  ;;  %v4915_v34 = vld [vmem:[%s6577_s12 + $0x210] sm:$0xff] (%p5321_p4) }
 0x355   : > { %4230 = vst.msk [vmem:[%s6577_s12 + $0x1d8] sm:$0xff] %vm4170_vm6, %v4165_v23  ;;  %v4843_v23 = vld [vmem:[%s6577_s12 + $0xf0] sm:$0xff] (%p5321_p4)  ;;  %v4913_v20 = vld [vmem:[%s6577_s12 + $0x208] sm:$0xff] (%p5321_p4) }
 0x356   : > { %5194 = vst.msk [vmem:[%s6577_s12 + $0x3d8] sm:$0xff] %vm4170_vm6, %v4422_v31  ;;  %v3700_v14 = vpop.permute.xlu1 %3699  ;;  %v3714_v17 = vpop.permute.xlu0 %3713  ;;  %v4851_v31 = vld [vmem:[%s6577_s12 + $0x110] sm:$0xff] (%p5321_p4) }
 0x357   : > { %v3910_v60 = vmul.f32 %v3782_v40, %v3700_v14  ;;  %v4295_v63 = vmul.f32 %v3974_v52, %v3700_v14  ;;  %v3912_v25 = vmul.f32 %v3784_v16, %v3714_v17  ;;  %v4297_v62 = vmul.f32 %v3976_v38, %v3714_v17  ;;  %4790 = vst [vmem:[%s7230_s4 + $0x30] sm:$0xff] (%p5321_p4), %v4789_v39  ;;  %v4845_v38 = vld [vmem:[%s6577_s12 + $0xf8] sm:$0xff] (%p5321_p4)  ;;  %v4847_v40 = vld [vmem:[%s6577_s12 + $0x100] sm:$0xff] (%p5321_p4)  ;;  %v4849_v52 = vld [vmem:[%s6577_s12 + $0x108] sm:$0xff] (%p5321_p4) }
 0x358   : > { %4792 = vst [vmem:[%s7230_s4 + $0x40] sm:$0xff] (%p5321_p4), %v4791_v55  ;;  %v4853_v16 = vld [vmem:[%s6577_s12 + $0x118] sm:$0xff] (%p5321_p4)  ;;  %v4871_v17 = vld [vmem:[%s6577_s12 + $0x160] sm:$0xff] (%p5321_p4) }
 0x359   : > { %v4166_v4 = vadd.f32 %v4102_v41, %v3910_v60  ;;  %v4423_v1 = vsub.f32 %v4295_v63, %v4359_v7  ;;  %v4168_v24 = vadd.f32 %v4104_v29, %v3912_v25  ;;  %v4425_v12 = vsub.f32 %v4297_v62, %v4361_v51  ;;  %4794 = vst [vmem:[%s7230_s4 + $0x50] sm:$0xff] (%p5321_p4), %v4793_v59  ;;  %v4859_v29 = vld [vmem:[%s6577_s12 + $0x130] sm:$0xff] (%p5321_p4)  ;;  %v4863_v41 = vld [vmem:[%s6577_s12 + $0x140] sm:$0xff] (%p5321_p4)  ;;  %v4865_v7 = vld [vmem:[%s6577_s12 + $0x148] sm:$0xff] (%p5321_p4) }
 0x35a   : > { %4796 = vst [vmem:[%s7230_s4 + $0x60] sm:$0xff] (%p5321_p4), %v4795_v0  ;;  %v4869_v14 = vld [vmem:[%s6577_s12 + $0x158] sm:$0xff] (%p5321_p4)  ;;  %v4873_v60 = vld [vmem:[%s6577_s12 + $0x168] sm:$0xff] (%p5321_p4)  ;;  %v4875_v63 = vld [vmem:[%s6577_s12 + $0x170] sm:$0xff] (%p5321_p4) }
 0x35b   : > { %4231 = vst.msk [vmem:[%s6577_s12 + $0x1e0] sm:$0xff] %vm4170_vm6, %v4166_v4  ;;  %v4877_v25 = vld [vmem:[%s6577_s12 + $0x178] sm:$0xff] (%p5321_p4)  ;;  %v4879_v62 = vld [vmem:[%s6577_s12 + $0x180] sm:$0xff] (%p5321_p4)  ;;  %v4881_v51 = vld [vmem:[%s6577_s12 + $0x188] sm:$0xff] (%p5321_p4) }
 0x35c   : > { %5195 = vst.msk [vmem:[%s6577_s12 + $0x3e0] sm:$0xff] %vm4170_vm6, %v4423_v1  ;;  %v4883_v4 = vld [vmem:[%s6577_s12 + $0x190] sm:$0xff] (%p5321_p4)  ;;  %v4885_v1 = vld [vmem:[%s6577_s12 + $0x198] sm:$0xff] (%p5321_p4)  ;;  %v4897_v18 = vld [vmem:[%s6577_s12 + $0x1c8] sm:$0xff] (%p5321_p4) }
 0x35d   : > { %4233 = vst.msk [vmem:[%s6577_s12 + $0x1f0] sm:$0xff] %vm4170_vm6, %v4168_v24  ;;  %v4887_v24 = vld [vmem:[%s6577_s12 + $0x1a0] sm:$0xff] (%p5321_p4)  ;;  %v4917_v39 = vld [vmem:[%s6577_s12 + $0x218] sm:$0xff] (%p5321_p4)  ;;  %v4921_v59 = vld [vmem:[%s6577_s12 + $0x228] sm:$0xff] (%p5321_p4) }
 0x35e   : > { %5197 = vst.msk [vmem:[%s6577_s12 + $0x3f0] sm:$0xff] %vm4170_vm6, %v4425_v12  ;;  %v3721_v30 = vpop.permute.xlu1 %3720  ;;  %v4889_v12 = vld [vmem:[%s6577_s12 + $0x1a8] sm:$0xff] (%p5321_p4)  ;;  %v4919_v55 = vld [vmem:[%s6577_s12 + $0x220] sm:$0xff] (%p5321_p4)  ;;  %v4923_v0 = vld [vmem:[%s6577_s12 + $0x230] sm:$0xff] (%p5321_p4) }
 0x35f   : > { %v3913_v42 = vmul.f32 %v3785_v5, %v3721_v30  ;;  %v4298_v10 = vmul.f32 %v3977_v49, %v3721_v30  ;;  %4798 = vst [vmem:[%s7230_s4 + $0x70] sm:$0xff] (%p5321_p4), %v4797_v37  ;;  %v4891_v5 = vld [vmem:[%s6577_s12 + $0x1b0] sm:$0xff] (%p5321_p4)  ;;  %v4893_v49 = vld [vmem:[%s6577_s12 + $0x1b8] sm:$0xff] (%p5321_p4)  ;;  %v4895_v30 = vld [vmem:[%s6577_s12 + $0x1c0] sm:$0xff] (%p5321_p4) }
 0x360   : > { %4498 = sbr.rel (!%p5321_p4) target bundleno = 985 (0x3d9), region = 36  ;;  %4800 = vst [vmem:[%s7230_s4 + $0x80] sm:$0xff] (%p5321_p4), %v4799_v54  ;;  %v4925_v37 = vld [vmem:[%s6577_s12 + $0x238] sm:$0xff] (%p5321_p4)  ;;  %v4927_v54 = vld [vmem:[%s6577_s12 + $0x240] sm:$0xff] (%p5321_p4) }
 0x361   : > { %v4169_v15 = vadd.f32 %v4105_v61, %v3913_v42  ;;  %v4426_v32 = vsub.f32 %v4298_v10, %v4362_v58  ;;  %4802 = vst [vmem:[%s7230_s4 + $0x90] sm:$0xff] (%p5321_p4), %v4801_v56  ;;  %v4899_v61 = vld [vmem:[%s6577_s12 + $0x1d0] sm:$0xff] (%p5321_p4)  ;;  %v4901_v58 = vld [vmem:[%s6577_s12 + $0x1d8] sm:$0xff] (%p5321_p4)  ;;  %v4905_v10 = vld [vmem:[%s6577_s12 + $0x1e8] sm:$0xff] (%p5321_p4) }
 0x362   : > { %4804 = vst [vmem:[%s7230_s4 + $0xa0] sm:$0xff] (%p5321_p4), %v4803_v3  ;;  %v4903_v42 = vld [vmem:[%s6577_s12 + $0x1e0] sm:$0xff] (%p5321_p4)  ;;  %v4929_v56 = vld [vmem:[%s6577_s12 + $0x248] sm:$0xff] (%p5321_p4)  ;;  %v4931_v3 = vld [vmem:[%s6577_s12 + $0x250] sm:$0xff] (%p5321_p4) }
 0x363   : > { %4234 = vst.msk [vmem:[%s6577_s12 + $0x1f8] sm:$0xff] %vm4170_vm6, %v4169_v15 }
 0x364   : > { %5198 = vst.msk [vmem:[%s6577_s12 + $0x3f8] sm:$0xff] %vm4170_vm6, %v4426_v32  ;;  %v4907_v15 = vld [vmem:[%s6577_s12 + $0x1f0] sm:$0xff] (%p5321_p4) }
 0x365   : > { %4806 = vst [vmem:[%s7230_s4 + $0xb0] sm:$0xff] %v4805_v2  ;;  %v4933_v2 = vld [vmem:[%s6577_s12 + $0x258] sm:$0xff] }
 0x366   : > { %4810 = vst [vmem:[%s7230_s4 + $0xd0] sm:$0xff] %v4809_v35  ;;  %v4937_v35 = vld [vmem:[%s6577_s12 + $0x268] sm:$0xff] }
 0x367   : > { %4812 = vst [vmem:[%s7230_s4 + $0xe0] sm:$0xff] %v4811_v21  ;;  %v4939_v21 = vld [vmem:[%s6577_s12 + $0x270] sm:$0xff] }
 0x368   : > { %4814 = vst [vmem:[%s7230_s4 + $0xf0] sm:$0xff] %v4813_v50  ;;  %v4941_v50 = vld [vmem:[%s6577_s12 + $0x278] sm:$0xff] }
 0x369   : > { %4816 = vst [vmem:[%s7230_s4 + $0x100] sm:$0xff] %v4815_v11  ;;  %v4943_v11 = vld [vmem:[%s6577_s12 + $0x280] sm:$0xff] }
 0x36a   : > { %4818 = vst [vmem:[%s7230_s4 + $0x110] sm:$0xff] %v4817_v22  ;;  %v4909_v32 = vld [vmem:[%s6577_s12 + $0x1f8] sm:$0xff]  ;;  %v4945_v22 = vld [vmem:[%s6577_s12 + $0x288] sm:$0xff] }
 0x36b   : > { %4820 = vst [vmem:[%s7230_s4 + $0x120] sm:$0xff] %v4819_v28  ;;  %v4947_v28 = vld [vmem:[%s6577_s12 + $0x290] sm:$0xff] }
 0x36c   : > { %4822 = vst [vmem:[%s7230_s4 + $0x130] sm:$0xff] %v4821_v46  ;;  %v4949_v46 = vld [vmem:[%s6577_s12 + $0x298] sm:$0xff] }
 0x36d   : > { %4824 = vst [vmem:[%s7230_s4 + $0x140] sm:$0xff] %v4823_v43  ;;  %v4951_v43 = vld [vmem:[%s6577_s12 + $0x2a0] sm:$0xff] }
 0x36e   : > { %4826 = vst [vmem:[%s7230_s4 + $0x150] sm:$0xff] %v4825_v26  ;;  %v4953_v26 = vld [vmem:[%s6577_s12 + $0x2a8] sm:$0xff] }
 0x36f   : > { %4828 = vst [vmem:[%s7230_s4 + $0x160] sm:$0xff] %v4827_v57  ;;  %v4955_v57 = vld [vmem:[%s6577_s12 + $0x2b0] sm:$0xff] }
 0x370   : > { %4830 = vst [vmem:[%s7230_s4 + $0x170] sm:$0xff] %v4829_v33  ;;  %v4957_v33 = vld [vmem:[%s6577_s12 + $0x2b8] sm:$0xff] }
 0x371   : > { %4832 = vst [vmem:[%s7230_s4 + $0x180] sm:$0xff] %v4831_v8  ;;  %v4959_v8 = vld [vmem:[%s6577_s12 + $0x2c0] sm:$0xff] }
 0x372   : > { %4834 = vst [vmem:[%s7230_s4 + $0x190] sm:$0xff] %v4833_v6  ;;  %v4961_v6 = vld [vmem:[%s6577_s12 + $0x2c8] sm:$0xff] }
 0x373   : > { %4836 = vst [vmem:[%s7230_s4 + $0x1a0] sm:$0xff] %v4835_v27  ;;  %v4963_v27 = vld [vmem:[%s6577_s12 + $0x2d0] sm:$0xff] }
 0x374   : > { %4838 = vst [vmem:[%s7230_s4 + $0x1b0] sm:$0xff] %v4837_v13  ;;  %v4965_v13 = vld [vmem:[%s6577_s12 + $0x2d8] sm:$0xff] }
 0x375   : > { %4840 = vst [vmem:[%s7230_s4 + $0x1c0] sm:$0xff] %v4839_v47  ;;  %v4967_v47 = vld [vmem:[%s6577_s12 + $0x2e0] sm:$0xff] }
 0x376   : > { %4842 = vst [vmem:[%s7230_s4 + $0x1d0] sm:$0xff] %v4841_v53  ;;  %v4969_v53 = vld [vmem:[%s6577_s12 + $0x2e8] sm:$0xff] }
 0x377   : > { %4844 = vst [vmem:[%s7230_s4 + $0x1e0] sm:$0xff] %v4843_v23  ;;  %v4971_v23 = vld [vmem:[%s6577_s12 + $0x2f0] sm:$0xff] }
 0x378   : > { %4846 = vst [vmem:[%s7230_s4 + $0x1f0] sm:$0xff] %v4845_v38  ;;  %v4973_v38 = vld [vmem:[%s6577_s12 + $0x2f8] sm:$0xff] }
 0x379   : > { %4848 = vst [vmem:[%s7230_s4 + $0x200] sm:$0xff] %v4847_v40  ;;  %v4975_v40 = vld [vmem:[%s6577_s12 + $0x300] sm:$0xff] }
 0x37a   : > { %4850 = vst [vmem:[%s7230_s4 + $0x210] sm:$0xff] %v4849_v52  ;;  %v4977_v52 = vld [vmem:[%s6577_s12 + $0x308] sm:$0xff] }
 0x37b   : > { %4852 = vst [vmem:[%s7230_s4 + $0x220] sm:$0xff] %v4851_v31  ;;  %v4979_v31 = vld [vmem:[%s6577_s12 + $0x310] sm:$0xff] }
 0x37c   : > { %4854 = vst [vmem:[%s7230_s4 + $0x230] sm:$0xff] %v4853_v16  ;;  %v4981_v16 = vld [vmem:[%s6577_s12 + $0x318] sm:$0xff] }
 0x37d   : > { %4856 = vst [vmem:[%s7230_s4 + $0x240] sm:$0xff] %v4855_v19  ;;  %v4983_v19 = vld [vmem:[%s6577_s12 + $0x320] sm:$0xff] }
 0x37e   : > { %4858 = vst [vmem:[%s7230_s4 + $0x250] sm:$0xff] %v4857_v48  ;;  %v4985_v48 = vld [vmem:[%s6577_s12 + $0x328] sm:$0xff] }
 0x37f   : > { %4860 = vst [vmem:[%s7230_s4 + $0x260] sm:$0xff] %v4859_v29  ;;  %v4987_v29 = vld [vmem:[%s6577_s12 + $0x330] sm:$0xff] }
 0x380   : > { %4862 = vst [vmem:[%s7230_s4 + $0x270] sm:$0xff] %v4861_v9  ;;  %v4989_v9 = vld [vmem:[%s6577_s12 + $0x338] sm:$0xff] }
 0x381   : > { %4864 = vst [vmem:[%s7230_s4 + $0x280] sm:$0xff] %v4863_v41  ;;  %v4991_v41 = vld [vmem:[%s6577_s12 + $0x340] sm:$0xff] }
 0x382   : > { %4866 = vst [vmem:[%s7230_s4 + $0x290] sm:$0xff] %v4865_v7  ;;  %v4993_v7 = vld [vmem:[%s6577_s12 + $0x348] sm:$0xff] }
 0x383   : > { %4868 = vst [vmem:[%s7230_s4 + $0x2a0] sm:$0xff] %v4867_v45  ;;  %v4995_v45 = vld [vmem:[%s6577_s12 + $0x350] sm:$0xff] }
 0x384   : > { %4870 = vst [vmem:[%s7230_s4 + $0x2b0] sm:$0xff] %v4869_v14  ;;  %v4997_v14 = vld [vmem:[%s6577_s12 + $0x358] sm:$0xff] }
 0x385   : > { %4872 = vst [vmem:[%s7230_s4 + $0x2c0] sm:$0xff] %v4871_v17  ;;  %v4999_v17 = vld [vmem:[%s6577_s12 + $0x360] sm:$0xff] }
 0x386   : > { %4874 = vst [vmem:[%s7230_s4 + $0x2d0] sm:$0xff] %v4873_v60  ;;  %v5001_v60 = vld [vmem:[%s6577_s12 + $0x368] sm:$0xff] }
 0x387   : > { %4876 = vst [vmem:[%s7230_s4 + $0x2e0] sm:$0xff] %v4875_v63  ;;  %v5003_v63 = vld [vmem:[%s6577_s12 + $0x370] sm:$0xff] }
 0x388   : > { %4878 = vst [vmem:[%s7230_s4 + $0x2f0] sm:$0xff] %v4877_v25  ;;  %v5005_v25 = vld [vmem:[%s6577_s12 + $0x378] sm:$0xff] }
 0x389   : > { %4880 = vst [vmem:[%s7230_s4 + $0x300] sm:$0xff] %v4879_v62  ;;  %v5007_v62 = vld [vmem:[%s6577_s12 + $0x380] sm:$0xff] }
 0x38a   : > { %4882 = vst [vmem:[%s7230_s4 + $0x310] sm:$0xff] %v4881_v51  ;;  %v5009_v51 = vld [vmem:[%s6577_s12 + $0x388] sm:$0xff] }
 0x38b   : > { %4884 = vst [vmem:[%s7230_s4 + $0x320] sm:$0xff] %v4883_v4  ;;  %v5011_v4 = vld [vmem:[%s6577_s12 + $0x390] sm:$0xff] }
 0x38c   : > { %4886 = vst [vmem:[%s7230_s4 + $0x330] sm:$0xff] %v4885_v1  ;;  %v5013_v1 = vld [vmem:[%s6577_s12 + $0x398] sm:$0xff] }
 0x38d   : > { %4888 = vst [vmem:[%s7230_s4 + $0x340] sm:$0xff] %v4887_v24  ;;  %v5015_v24 = vld [vmem:[%s6577_s12 + $0x3a0] sm:$0xff] }
 0x38e   : > { %4890 = vst [vmem:[%s7230_s4 + $0x350] sm:$0xff] %v4889_v12  ;;  %v5017_v12 = vld [vmem:[%s6577_s12 + $0x3a8] sm:$0xff] }
 0x38f   : > { %4892 = vst [vmem:[%s7230_s4 + $0x360] sm:$0xff] %v4891_v5  ;;  %v5019_v5 = vld [vmem:[%s6577_s12 + $0x3b0] sm:$0xff] }
 0x390   : > { %4894 = vst [vmem:[%s7230_s4 + $0x370] sm:$0xff] %v4893_v49  ;;  %v5021_v49 = vld [vmem:[%s6577_s12 + $0x3b8] sm:$0xff] }
 0x391   : > { %4896 = vst [vmem:[%s7230_s4 + $0x380] sm:$0xff] %v4895_v30  ;;  %v5023_v30 = vld [vmem:[%s6577_s12 + $0x3c0] sm:$0xff] }
 0x392   : > { %4898 = vst [vmem:[%s7230_s4 + $0x390] sm:$0xff] %v4897_v18  ;;  %v5025_v18 = vld [vmem:[%s6577_s12 + $0x3c8] sm:$0xff] }
 0x393   : > { %4900 = vst [vmem:[%s7230_s4 + $0x3a0] sm:$0xff] %v4899_v61  ;;  %v5027_v61 = vld [vmem:[%s6577_s12 + $0x3d0] sm:$0xff] }
 0x394   : > { %4902 = vst [vmem:[%s7230_s4 + $0x3b0] sm:$0xff] %v4901_v58  ;;  %v5029_v58 = vld [vmem:[%s6577_s12 + $0x3d8] sm:$0xff] }
 0x395   : > { %4904 = vst [vmem:[%s7230_s4 + $0x3c0] sm:$0xff] %v4903_v42  ;;  %v5031_v42 = vld [vmem:[%s6577_s12 + $0x3e0] sm:$0xff] }
 0x396   : > { %4906 = vst [vmem:[%s7230_s4 + $0x3d0] sm:$0xff] %v4905_v10  ;;  %v5033_v10 = vld [vmem:[%s6577_s12 + $0x3e8] sm:$0xff] }
 0x397   : > { %4908 = vst [vmem:[%s7230_s4 + $0x3e0] sm:$0xff] %v4907_v15  ;;  %v5035_v15 = vld [vmem:[%s6577_s12 + $0x3f0] sm:$0xff] }
 0x398   : > { %4910 = vst [vmem:[%s7230_s4 + $0x3f0] sm:$0xff] %v4909_v32  ;;  %v5037_v32 = vld [vmem:[%s6577_s12 + $0x3f8] sm:$0xff] }
 0x399   : > { %4912 = vst [vmem:[%s7230_s4 + $0x400] sm:$0xff] %v4911_v36 }
 0x39a   : > { %4914 = vst [vmem:[%s7230_s4 + $0x410] sm:$0xff] %v4913_v20 }
 0x39b   : > { %4916 = vst [vmem:[%s7230_s4 + $0x420] sm:$0xff] %v4915_v34 }
 0x39c   : > { %4918 = vst [vmem:[%s7230_s4 + $0x430] sm:$0xff] %v4917_v39 }
 0x39d   : > { %4920 = vst [vmem:[%s7230_s4 + $0x440] sm:$0xff] %v4919_v55 }
 0x39e   : > { %4922 = vst [vmem:[%s7230_s4 + $0x450] sm:$0xff] %v4921_v59 }
 0x39f   : > { %4924 = vst [vmem:[%s7230_s4 + $0x460] sm:$0xff] %v4923_v0 }
 0x3a0   : > { %4926 = vst [vmem:[%s7230_s4 + $0x470] sm:$0xff] %v4925_v37 }
 0x3a1   : > { %4928 = vst [vmem:[%s7230_s4 + $0x480] sm:$0xff] %v4927_v54 }
 0x3a2   : > { %4930 = vst [vmem:[%s7230_s4 + $0x490] sm:$0xff] %v4929_v56 }
 0x3a3   : > { %4932 = vst [vmem:[%s7230_s4 + $0x4a0] sm:$0xff] %v4931_v3 }
 0x3a4   : > { %4934 = vst [vmem:[%s7230_s4 + $0x4b0] sm:$0xff] %v4933_v2 }
 0x3a5   : > { %4936 = vst [vmem:[%s7230_s4 + $0x4c0] sm:$0xff] %v4935_v44 }
 0x3a6   : > { %4938 = vst [vmem:[%s7230_s4 + $0x4d0] sm:$0xff] %v4937_v35 }
 0x3a7   : > { %4940 = vst [vmem:[%s7230_s4 + $0x4e0] sm:$0xff] %v4939_v21 }
 0x3a8   : > { %4942 = vst [vmem:[%s7230_s4 + $0x4f0] sm:$0xff] %v4941_v50 }
 0x3a9   : > { %4944 = vst [vmem:[%s7230_s4 + $0x500] sm:$0xff] %v4943_v11 }
 0x3aa   : > { %4946 = vst [vmem:[%s7230_s4 + $0x510] sm:$0xff] %v4945_v22 }
 0x3ab   : > { %4948 = vst [vmem:[%s7230_s4 + $0x520] sm:$0xff] %v4947_v28 }
 0x3ac   : > { %4950 = vst [vmem:[%s7230_s4 + $0x530] sm:$0xff] %v4949_v46 }
 0x3ad   : > { %4952 = vst [vmem:[%s7230_s4 + $0x540] sm:$0xff] %v4951_v43 }
 0x3ae   : > { %4954 = vst [vmem:[%s7230_s4 + $0x550] sm:$0xff] %v4953_v26 }
 0x3af   : > { %4956 = vst [vmem:[%s7230_s4 + $0x560] sm:$0xff] %v4955_v57 }
 0x3b0   : > { %4958 = vst [vmem:[%s7230_s4 + $0x570] sm:$0xff] %v4957_v33 }
 0x3b1   : > { %4960 = vst [vmem:[%s7230_s4 + $0x580] sm:$0xff] %v4959_v8 }
 0x3b2   : > { %4962 = vst [vmem:[%s7230_s4 + $0x590] sm:$0xff] %v4961_v6 }
 0x3b3   : > { %4964 = vst [vmem:[%s7230_s4 + $0x5a0] sm:$0xff] %v4963_v27 }
 0x3b4   : > { %4966 = vst [vmem:[%s7230_s4 + $0x5b0] sm:$0xff] %v4965_v13 }
 0x3b5   : > { %4968 = vst [vmem:[%s7230_s4 + $0x5c0] sm:$0xff] %v4967_v47 }
 0x3b6   : > { %4970 = vst [vmem:[%s7230_s4 + $0x5d0] sm:$0xff] %v4969_v53 }
 0x3b7   : > { %4972 = vst [vmem:[%s7230_s4 + $0x5e0] sm:$0xff] %v4971_v23 }
 0x3b8   : > { %4974 = vst [vmem:[%s7230_s4 + $0x5f0] sm:$0xff] %v4973_v38 }
 0x3b9   : > { %4976 = vst [vmem:[%s7230_s4 + $0x600] sm:$0xff] %v4975_v40 }
 0x3ba   : > { %4978 = vst [vmem:[%s7230_s4 + $0x610] sm:$0xff] %v4977_v52 }
 0x3bb   : > { %4980 = vst [vmem:[%s7230_s4 + $0x620] sm:$0xff] %v4979_v31 }
 0x3bc   : > { %4982 = vst [vmem:[%s7230_s4 + $0x630] sm:$0xff] %v4981_v16 }
 0x3bd   : > { %4984 = vst [vmem:[%s7230_s4 + $0x640] sm:$0xff] %v4983_v19 }
 0x3be   : > { %4986 = vst [vmem:[%s7230_s4 + $0x650] sm:$0xff] %v4985_v48 }
 0x3bf   : > { %4988 = vst [vmem:[%s7230_s4 + $0x660] sm:$0xff] %v4987_v29 }
 0x3c0   : > { %4990 = vst [vmem:[%s7230_s4 + $0x670] sm:$0xff] %v4989_v9 }
 0x3c1   : > { %4992 = vst [vmem:[%s7230_s4 + $0x680] sm:$0xff] %v4991_v41 }
 0x3c2   : > { %4994 = vst [vmem:[%s7230_s4 + $0x690] sm:$0xff] %v4993_v7 }
 0x3c3   : > { %4996 = vst [vmem:[%s7230_s4 + $0x6a0] sm:$0xff] %v4995_v45 }
 0x3c4   : > { %4998 = vst [vmem:[%s7230_s4 + $0x6b0] sm:$0xff] %v4997_v14 }
 0x3c5   : > { %5000 = vst [vmem:[%s7230_s4 + $0x6c0] sm:$0xff] %v4999_v17 }
 0x3c6   : > { %5002 = vst [vmem:[%s7230_s4 + $0x6d0] sm:$0xff] %v5001_v60 }
 0x3c7   : > { %5004 = vst [vmem:[%s7230_s4 + $0x6e0] sm:$0xff] %v5003_v63 }
 0x3c8   : > { %5006 = vst [vmem:[%s7230_s4 + $0x6f0] sm:$0xff] %v5005_v25 }
 0x3c9   : > { %5008 = vst [vmem:[%s7230_s4 + $0x700] sm:$0xff] %v5007_v62 }
 0x3ca   : > { %5010 = vst [vmem:[%s7230_s4 + $0x710] sm:$0xff] %v5009_v51 }
 0x3cb   : > { %5012 = vst [vmem:[%s7230_s4 + $0x720] sm:$0xff] %v5011_v4 }
 0x3cc   : > { %5014 = vst [vmem:[%s7230_s4 + $0x730] sm:$0xff] %v5013_v1 }
 0x3cd   : > { %5016 = vst [vmem:[%s7230_s4 + $0x740] sm:$0xff] %v5015_v24 }
 0x3ce   : > { %5018 = vst [vmem:[%s7230_s4 + $0x750] sm:$0xff] %v5017_v12 }
 0x3cf   : > { %5020 = vst [vmem:[%s7230_s4 + $0x760] sm:$0xff] %v5019_v5 }
 0x3d0   : > { %5022 = vst [vmem:[%s7230_s4 + $0x770] sm:$0xff] %v5021_v49 }
 0x3d1   : > { %5024 = vst [vmem:[%s7230_s4 + $0x780] sm:$0xff] %v5023_v30 }
 0x3d2   : > { %5026 = vst [vmem:[%s7230_s4 + $0x790] sm:$0xff] %v5025_v18 }
 0x3d3   : > { %5028 = vst [vmem:[%s7230_s4 + $0x7a0] sm:$0xff] %v5027_v61 }
 0x3d4   : > { %5030 = vst [vmem:[%s7230_s4 + $0x7b0] sm:$0xff] %v5029_v58 }
 0x3d5   : > { %5032 = vst [vmem:[%s7230_s4 + $0x7c0] sm:$0xff] %v5031_v42 }
 0x3d6   : > { %5034 = vst [vmem:[%s7230_s4 + $0x7d0] sm:$0xff] %v5033_v10 }
 0x3d7   : > { %5036 = vst [vmem:[%s7230_s4 + $0x7e0] sm:$0xff] %v5035_v15 }
 0x3d8   : > { %5038 = vst [vmem:[%s7230_s4 + $0x7f0] sm:$0xff] %v5037_v32 }
 0x3d9 PF: > { %p10_p7 = scmp.ge.s32.totalorder %s5308_s16, 4   ;;  %s7701_s12 = smov %s5258_s13 }
 0x3da   : > { %s7702_s13 = smov %s5319_s19  ;;  %s7703_s14 = smov %s5308_s16 }
 0x3db   :  { %12 = sbr.rel (!%p10_p7) target bundleno = 2 (0x2), region = 98 }

</bundles_post_ra>
